<compile_context>
chip_gen: v7x
topology: tpu7x:2x2x1
jax: 0.10.0
libtpu: 0.0.40
codegen_flags: <defaults>
</compile_context>

<pallas_src>
import functools

import jax
import jax.numpy as jnp
from jax.experimental import pallas as pl
from jax.experimental.pallas import tpu as pltpu

# Keep host-side reference matmuls f32-accurate so the numerical check against
# the in-kernel (MXU f32) matmuls is tight.
jax.config.update("jax_default_matmul_precision", "highest")

_GELU_C = 0.7978845608028654  # sqrt(2/pi)


def _transformer_layer_kernel(
    x_ref, ln1g_ref, ln1b_ref,
    wq_ref, wk_ref, wv_ref, wo_ref, bo_ref,
    ln2g_ref, ln2b_ref,
    wff1_ref, bff1_ref, wff2_ref, bff2_ref,
    o_ref,
    *, heads, scale, eps):
    """One fused transformer layer for a single batch element (tile (1, N, D))."""
    x = x_ref[0].astype(jnp.float32)                         # (N, D)
    n, d = x.shape

    def layernorm(v, g_ref, b_ref):
        mu = jnp.mean(v, axis=-1, keepdims=True)
        var = jnp.mean((v - mu) ** 2, axis=-1, keepdims=True)
        vn = (v - mu) * jax.lax.rsqrt(var + eps)
        return vn * g_ref[...].astype(jnp.float32) + b_ref[...].astype(jnp.float32)

    # ---- Residual(PreNorm(Attention)) ----
    xn = layernorm(x, ln1g_ref, ln1b_ref)
    attn_out = jnp.zeros((n, d), jnp.float32)
    for h in range(heads):                                   # static unroll over heads
        q_h = jnp.dot(xn, wq_ref[h].astype(jnp.float32),
                      preferred_element_type=jnp.float32)    # (N, dh)
        k_h = jnp.dot(xn, wk_ref[h].astype(jnp.float32),
                      preferred_element_type=jnp.float32)    # (N, dh)
        v_h = jnp.dot(xn, wv_ref[h].astype(jnp.float32),
                      preferred_element_type=jnp.float32)    # (N, dh)
        dots = jax.lax.dot_general(
            q_h, k_h, (((1,), (1,)), ((), ())),
            preferred_element_type=jnp.float32) * scale      # (N, N) = q @ k^T
        dots = dots - jnp.max(dots, axis=-1, keepdims=True)  # stable softmax
        p = jnp.exp(dots)
        p = p / jnp.sum(p, axis=-1, keepdims=True)
        o_h = jnp.dot(p, v_h, preferred_element_type=jnp.float32)   # (N, dh)
        # concat_h(o_h) @ W_out == sum_h o_h @ W_out[h]  -> fold projection in.
        attn_out = attn_out + jnp.dot(o_h, wo_ref[h].astype(jnp.float32),
                                      preferred_element_type=jnp.float32)
    attn_out = attn_out + bo_ref[...].astype(jnp.float32)
    # nn.Dropout(p=0.0) is the identity.
    x1 = x + attn_out

    # ---- Residual(PreNorm(FeedForward)) ----
    x1n = layernorm(x1, ln2g_ref, ln2b_ref)
    hmid = jnp.dot(x1n, wff1_ref[...].astype(jnp.float32),
                   preferred_element_type=jnp.float32) + bff1_ref[...].astype(jnp.float32)
    # TODO(synk): torch nn.GELU() defaults to the exact erf GELU; tanh
    # approximation (EUP-friendly) is used here, max abs deviation ~1e-3.
    hmid = 0.5 * hmid * (1.0 + jnp.tanh(_GELU_C * (hmid + 0.044715 * hmid * hmid * hmid)))
    ff = jnp.dot(hmid, wff2_ref[...].astype(jnp.float32),
                 preferred_element_type=jnp.float32) + bff2_ref[...].astype(jnp.float32)

    o_ref[0] = (x1 + ff).astype(o_ref.dtype)


def transformer_forward(x, params, *, heads, dim_head):
    """Pallas equivalent of Transformer.forward(x, mask=None)."""
    # TODO(synk): the optional boolean `mask` branch of Attention.forward is
    # not implemented (the module is exercised with mask=None).
    B, N, D = x.shape
    inner = heads * dim_head
    scale = dim_head ** (-0.5)
    eps = 1e-5

    kernel = functools.partial(_transformer_layer_kernel,
                               heads=heads, scale=scale, eps=eps)

    def full2d(shape):
        return pl.BlockSpec(shape, lambda b: (0, 0))

    def full3d(shape):
        return pl.BlockSpec(shape, lambda b: (0, 0, 0))

    for layer in params:
        mlp_dim = layer["w_ff1"].shape[1]
        # Host-side (free) layout plumbing: split fused QKV / output projection
        # into per-head stacked weights -> kernel only indexes the leading axis.
        w_qkv = layer["w_qkv"]                                       # (D, 3*inner)
        wq = w_qkv[:, 0 * inner:1 * inner].reshape(D, heads, dim_head).transpose(1, 0, 2)
        wk = w_qkv[:, 1 * inner:2 * inner].reshape(D, heads, dim_head).transpose(1, 0, 2)
        wv = w_qkv[:, 2 * inner:3 * inner].reshape(D, heads, dim_head).transpose(1, 0, 2)
        wo = layer["w_out"].reshape(heads, dim_head, D)              # (H, dh, D)

        x = pl.pallas_call(
            kernel,
            out_shape=jax.ShapeDtypeStruct((B, N, D), x.dtype),
            grid_spec=pltpu.PrefetchScalarGridSpec(
                num_scalar_prefetch=0,
                grid=(B,),
                in_specs=[
                    pl.BlockSpec((1, N, D), lambda b: (b, 0, 0)),    # x
                    full2d((1, D)), full2d((1, D)),                  # ln1 gamma/beta
                    full3d((heads, D, dim_head)),                    # Wq (H, D, dh)
                    full3d((heads, D, dim_head)),                    # Wk
                    full3d((heads, D, dim_head)),                    # Wv
                    full3d((heads, dim_head, D)),                    # Wo (H, dh, D)
                    full2d((1, D)),                                  # b_out
                    full2d((1, D)), full2d((1, D)),                  # ln2 gamma/beta
                    full2d((D, mlp_dim)), full2d((1, mlp_dim)),      # ff1 W, b
                    full2d((mlp_dim, D)), full2d((1, D)),            # ff2 W, b
                ],
                out_specs=pl.BlockSpec((1, N, D), lambda b: (b, 0, 0)),
            ),
            compiler_params=pltpu.CompilerParams(
                dimension_semantics=("parallel",),
            ),
        )(x, layer["ln1_g"], layer["ln1_b"], wq, wk, wv, wo, layer["b_out"],
          layer["ln2_g"], layer["ln2_b"], layer["w_ff1"], layer["b_ff1"],
          layer["w_ff2"], layer["b_ff2"])
    return x


def init_params(key, depth, dim, heads, dim_head, mlp_dim, dtype=jnp.float32):
    inner = heads * dim_head
    params = []
    for _ in range(depth):
        key, *ks = jax.random.split(key, 7)
        params.append(dict(
            ln1_g=jnp.ones((1, dim), dtype), ln1_b=jnp.zeros((1, dim), dtype),
            w_qkv=0.05 * jax.random.normal(ks[0], (dim, 3 * inner), dtype),
            w_out=0.05 * jax.random.normal(ks[1], (inner, dim), dtype),
            b_out=0.05 * jax.random.normal(ks[2], (1, dim), dtype),
            ln2_g=jnp.ones((1, dim), dtype), ln2_b=jnp.zeros((1, dim), dtype),
            w_ff1=0.05 * jax.random.normal(ks[3], (dim, mlp_dim), dtype),
            b_ff1=0.05 * jax.random.normal(ks[4], (1, mlp_dim), dtype),
            w_ff2=0.05 * jax.random.normal(ks[5], (mlp_dim, dim), dtype),
            b_ff2=jnp.zeros((1, dim), dtype),
        ))
    return params


def reference_forward(x, params, *, heads, dim_head):
    """Pure-JAX reference (same math as the PyTorch module, mask=None, p=0)."""
    eps = 1e-5
    scale = dim_head ** (-0.5)
    hp = jax.lax.Precision.HIGHEST

    def layernorm(v, g, b):
        mu = jnp.mean(v, axis=-1, keepdims=True)
        var = jnp.mean((v - mu) ** 2, axis=-1, keepdims=True)
        return (v - mu) / jnp.sqrt(var + eps) * g + b

    def gelu_tanh(v):
        return 0.5 * v * (1.0 + jnp.tanh(_GELU_C * (v + 0.044715 * v ** 3)))

    B, N, D = x.shape
    for layer in params:
        xn = layernorm(x, layer["ln1_g"], layer["ln1_b"])
        qkv = jnp.einsum("bnd,de->bne", xn, layer["w_qkv"], precision=hp)
        q, k, v = jnp.split(qkv, 3, axis=-1)
        to_heads = lambda t: t.reshape(B, N, heads, dim_head).transpose(0, 2, 1, 3)
        q, k, v = to_heads(q), to_heads(k), to_heads(v)
        dots = jnp.einsum("bhid,bhjd->bhij", q, k, precision=hp) * scale
        attn = jax.nn.softmax(dots, axis=-1)
        out = jnp.einsum("bhij,bhjd->bhid", attn, v, precision=hp)
        out = out.transpose(0, 2, 1, 3).reshape(B, N, heads * dim_head)
        out = jnp.einsum("bne,ed->bnd", out, layer["w_out"], precision=hp) + layer["b_out"]
        x = x + out
        xn = layernorm(x, layer["ln2_g"], layer["ln2_b"])
        hmid = jnp.einsum("bnd,dm->bnm", xn, layer["w_ff1"], precision=hp) + layer["b_ff1"]
        hmid = gelu_tanh(hmid)
        ff = jnp.einsum("bnm,md->bnd", hmid, layer["w_ff2"], precision=hp) + layer["b_ff2"]
        x = x + ff
    return x


if __name__ == "__main__":
    # Small shapes consistent with the module: batch=2, seq=8, dim=32,
    # heads=4, dim_head=8 (inner=32), mlp_dim=64, depth=2.
    B, N = 2, 8
    dim, heads, dim_head, mlp_dim, depth = 32, 4, 8, 64, 2

    key = jax.random.PRNGKey(0)
    key, xk = jax.random.split(key)
    x = jax.random.normal(xk, (B, N, dim), dtype=jnp.float32)
    params = init_params(key, depth, dim, heads, dim_head, mlp_dim)

    out = transformer_forward(x, params, heads=heads, dim_head=dim_head)
    out = jax.block_until_ready(out)

    ref = reference_forward(x, params, heads=heads, dim_head=dim_head)
    assert out.shape == (B, N, dim), out.shape
    assert out.dtype == x.dtype, out.dtype
    err = float(jnp.max(jnp.abs(out - ref)))
    # Loose-but-meaningful tolerance: wrong math would be O(0.1-1); matmul
    # rounding differences (MXU f32 passes vs host f32) are <<1e-3.
    assert err < 2e-3, f"max abs error vs reference: {err}"

    print("KERNEL_OK")
</pallas_src>

<mosaic_0001>
module attributes {stable_mosaic.version = 11 : i64} {
  func.func @_transformer_layer_kernel(%arg0: i32, %arg1: memref<1x8x32xf32, #tpu.memory_space<vmem>>, %arg2: memref<1x32xf32, #tpu.memory_space<vmem>>, %arg3: memref<1x32xf32, #tpu.memory_space<vmem>>, %arg4: memref<4x32x8xf32, #tpu.memory_space<vmem>>, %arg5: memref<4x32x8xf32, #tpu.memory_space<vmem>>, %arg6: memref<4x32x8xf32, #tpu.memory_space<vmem>>, %arg7: memref<4x8x32xf32, #tpu.memory_space<vmem>>, %arg8: memref<1x32xf32, #tpu.memory_space<vmem>>, %arg9: memref<1x32xf32, #tpu.memory_space<vmem>>, %arg10: memref<1x32xf32, #tpu.memory_space<vmem>>, %arg11: memref<32x64xf32, #tpu.memory_space<vmem>>, %arg12: memref<1x64xf32, #tpu.memory_space<vmem>>, %arg13: memref<64x32xf32, #tpu.memory_space<vmem>>, %arg14: memref<1x32xf32, #tpu.memory_space<vmem>>, %arg15: memref<1x8x32xf32, #tpu.memory_space<vmem>>) attributes {dimension_semantics = [#tpu.dimension_semantics<parallel>], iteration_bounds = array<i64: 2>, scalar_prefetch = 0 : i64, scratch_operands = 0 : i64, tpu.core_type = #tpu.core_type<tc>, window_params = [{transform_indices = @transform_0, window_bounds = array<i64: 1, 8, 32>}, {pipeline_mode = #tpu.pipeline_mode<synchronous>, transform_indices = @transform_1, window_bounds = array<i64: 1, 32>}, {pipeline_mode = #tpu.pipeline_mode<synchronous>, transform_indices = @transform_2, window_bounds = array<i64: 1, 32>}, {pipeline_mode = #tpu.pipeline_mode<synchronous>, transform_indices = @transform_3, window_bounds = array<i64: 4, 32, 8>}, {pipeline_mode = #tpu.pipeline_mode<synchronous>, transform_indices = @transform_4, window_bounds = array<i64: 4, 32, 8>}, {pipeline_mode = #tpu.pipeline_mode<synchronous>, transform_indices = @transform_5, window_bounds = array<i64: 4, 32, 8>}, {pipeline_mode = #tpu.pipeline_mode<synchronous>, transform_indices = @transform_6, window_bounds = array<i64: 4, 8, 32>}, {pipeline_mode = #tpu.pipeline_mode<synchronous>, transform_indices = @transform_7, window_bounds = array<i64: 1, 32>}, {pipeline_mode = #tpu.pipeline_mode<synchronous>, transform_indices = @transform_8, window_bounds = array<i64: 1, 32>}, {pipeline_mode = #tpu.pipeline_mode<synchronous>, transform_indices = @transform_9, window_bounds = array<i64: 1, 32>}, {pipeline_mode = #tpu.pipeline_mode<synchronous>, transform_indices = @transform_10, window_bounds = array<i64: 32, 64>}, {pipeline_mode = #tpu.pipeline_mode<synchronous>, transform_indices = @transform_11, window_bounds = array<i64: 1, 64>}, {pipeline_mode = #tpu.pipeline_mode<synchronous>, transform_indices = @transform_12, window_bounds = array<i64: 64, 32>}, {pipeline_mode = #tpu.pipeline_mode<synchronous>, transform_indices = @transform_13, window_bounds = array<i64: 1, 32>}, {transform_indices = @transform_14, window_bounds = array<i64: 1, 8, 32>}]} {
    %c0 = arith.constant 0 : index
    %c0_0 = arith.constant 0 : index
    %c0_1 = arith.constant 0 : index
    %0 = vector.load %arg1[%c0, %c0_0, %c0_1] : memref<1x8x32xf32, #tpu.memory_space<vmem>>, vector<1x8x32xf32>
    %1 = vector.shape_cast %0 : vector<1x8x32xf32> to vector<8x32xf32>
    %cst = arith.constant dense<0.000000e+00> : vector<8xf32>
    %2 = vector.multi_reduction <add>, %1, %cst [1] : vector<8x32xf32> to vector<8xf32>
    %3 = vector.shape_cast %2 : vector<8xf32> to vector<8x1xf32>
    %cst_2 = arith.constant 3.200000e+01 : f32
    %4 = vector.broadcast %cst_2 : f32 to vector<8x1xf32>
    %5 = arith.divf %3, %4 : vector<8x1xf32>
    %6 = vector.broadcast %5 : vector<8x1xf32> to vector<8x32xf32>
    %7 = arith.subf %1, %6 : vector<8x32xf32>
    %8 = arith.mulf %7, %7 : vector<8x32xf32>
    %cst_3 = arith.constant dense<0.000000e+00> : vector<8xf32>
    %9 = vector.multi_reduction <add>, %8, %cst_3 [1] : vector<8x32xf32> to vector<8xf32>
    %10 = vector.shape_cast %9 : vector<8xf32> to vector<8x1xf32>
    %cst_4 = arith.constant 3.200000e+01 : f32
    %11 = vector.broadcast %cst_4 : f32 to vector<8x1xf32>
    %12 = arith.divf %10, %11 : vector<8x1xf32>
    %13 = vector.broadcast %5 : vector<8x1xf32> to vector<8x32xf32>
    %14 = arith.subf %1, %13 : vector<8x32xf32>
    %cst_5 = arith.constant 9.99999974E-6 : f32
    %15 = vector.broadcast %cst_5 : f32 to vector<8x1xf32>
    %16 = arith.addf %12, %15 : vector<8x1xf32>
    %17 = math.rsqrt %16 : vector<8x1xf32>
    %18 = vector.broadcast %17 : vector<8x1xf32> to vector<8x32xf32>
    %19 = arith.mulf %14, %18 : vector<8x32xf32>
    %c0_6 = arith.constant 0 : index
    %c0_7 = arith.constant 0 : index
    %20 = vector.load %arg2[%c0_6, %c0_7] : memref<1x32xf32, #tpu.memory_space<vmem>>, vector<1x32xf32>
    %21 = vector.broadcast %20 : vector<1x32xf32> to vector<8x32xf32>
    %22 = arith.mulf %19, %21 : vector<8x32xf32>
    %c0_8 = arith.constant 0 : index
    %c0_9 = arith.constant 0 : index
    %23 = vector.load %arg3[%c0_8, %c0_9] : memref<1x32xf32, #tpu.memory_space<vmem>>, vector<1x32xf32>
    %24 = vector.broadcast %23 : vector<1x32xf32> to vector<8x32xf32>
    %25 = arith.addf %22, %24 : vector<8x32xf32>
    %cst_10 = arith.constant 0.000000e+00 : f32
    %26 = vector.broadcast %cst_10 : f32 to vector<8x32xf32>
    %c0_11 = arith.constant 0 : index
    %c0_12 = arith.constant 0 : index
    %c0_13 = arith.constant 0 : index
    %27 = vector.load %arg4[%c0_11, %c0_12, %c0_13] : memref<4x32x8xf32, #tpu.memory_space<vmem>>, vector<1x32x8xf32>
    %28 = vector.shape_cast %27 : vector<1x32x8xf32> to vector<32x8xf32>
    %cst_14 = arith.constant dense<0.000000e+00> : vector<8x8xf32>
    %29 = tpu.matmul %25, %28, %cst_14 {dimension_numbers = #tpu.dot_dimension_numbers<[1], [0], [0], [1], [0, 0, 1, 1], [], []>, precision = #tpu.contract_precision<fp32>} : vector<8x32xf32>, vector<32x8xf32>, vector<8x8xf32> -> vector<8x8xf32>
    %c0_15 = arith.constant 0 : index
    %c0_16 = arith.constant 0 : index
    %c0_17 = arith.constant 0 : index
    %30 = vector.load %arg5[%c0_15, %c0_16, %c0_17] : memref<4x32x8xf32, #tpu.memory_space<vmem>>, vector<1x32x8xf32>
    %31 = vector.shape_cast %30 : vector<1x32x8xf32> to vector<32x8xf32>
    %cst_18 = arith.constant dense<0.000000e+00> : vector<8x8xf32>
    %32 = tpu.matmul %25, %31, %cst_18 {dimension_numbers = #tpu.dot_dimension_numbers<[1], [0], [0], [1], [0, 0, 1, 1], [], []>, precision = #tpu.contract_precision<fp32>} : vector<8x32xf32>, vector<32x8xf32>, vector<8x8xf32> -> vector<8x8xf32>
    %c0_19 = arith.constant 0 : index
    %c0_20 = arith.constant 0 : index
    %c0_21 = arith.constant 0 : index
    %33 = vector.load %arg6[%c0_19, %c0_20, %c0_21] : memref<4x32x8xf32, #tpu.memory_space<vmem>>, vector<1x32x8xf32>
    %34 = vector.shape_cast %33 : vector<1x32x8xf32> to vector<32x8xf32>
    %cst_22 = arith.constant dense<0.000000e+00> : vector<8x8xf32>
    %35 = tpu.matmul %25, %34, %cst_22 {dimension_numbers = #tpu.dot_dimension_numbers<[1], [0], [0], [1], [0, 0, 1, 1], [], []>, precision = #tpu.contract_precision<fp32>} : vector<8x32xf32>, vector<32x8xf32>, vector<8x8xf32> -> vector<8x8xf32>
    %cst_23 = arith.constant dense<0.000000e+00> : vector<8x8xf32>
    %36 = tpu.matmul %29, %32, %cst_23 {dimension_numbers = #tpu.dot_dimension_numbers<[1], [1], [0], [0], [0, 0, 1, 0], [], []>, precision = #tpu.contract_precision<fp32>} : vector<8x8xf32>, vector<8x8xf32>, vector<8x8xf32> -> vector<8x8xf32>
    %cst_24 = arith.constant 0.353553385 : f32
    %37 = vector.broadcast %cst_24 : f32 to vector<8x8xf32>
    %38 = arith.mulf %36, %37 : vector<8x8xf32>
    %cst_25 = arith.constant dense<0xFF800000> : vector<8xf32>
    %39 = vector.multi_reduction <maximumf>, %38, %cst_25 [1] : vector<8x8xf32> to vector<8xf32>
    %40 = vector.shape_cast %39 : vector<8xf32> to vector<8x1xf32>
    %41 = vector.broadcast %40 : vector<8x1xf32> to vector<8x8xf32>
    %42 = arith.subf %38, %41 : vector<8x8xf32>
    %43 = math.exp %42 : vector<8x8xf32>
    %cst_26 = arith.constant dense<0.000000e+00> : vector<8xf32>
    %44 = vector.multi_reduction <add>, %43, %cst_26 [1] : vector<8x8xf32> to vector<8xf32>
    %45 = vector.shape_cast %44 : vector<8xf32> to vector<8x1xf32>
    %46 = vector.broadcast %45 : vector<8x1xf32> to vector<8x8xf32>
    %47 = arith.divf %43, %46 : vector<8x8xf32>
    %cst_27 = arith.constant dense<0.000000e+00> : vector<8x8xf32>
    %48 = tpu.matmul %47, %35, %cst_27 {dimension_numbers = #tpu.dot_dimension_numbers<[1], [0], [0], [1], [0, 0, 1, 1], [], []>, precision = #tpu.contract_precision<fp32>} : vector<8x8xf32>, vector<8x8xf32>, vector<8x8xf32> -> vector<8x8xf32>
    %c0_28 = arith.constant 0 : index
    %c0_29 = arith.constant 0 : index
    %c0_30 = arith.constant 0 : index
    %49 = vector.load %arg7[%c0_28, %c0_29, %c0_30] : memref<4x8x32xf32, #tpu.memory_space<vmem>>, vector<1x8x32xf32>
    %50 = vector.shape_cast %49 : vector<1x8x32xf32> to vector<8x32xf32>
    %cst_31 = arith.constant dense<0.000000e+00> : vector<8x32xf32>
    %51 = tpu.matmul %48, %50, %cst_31 {dimension_numbers = #tpu.dot_dimension_numbers<[1], [0], [0], [1], [0, 0, 1, 1], [], []>, precision = #tpu.contract_precision<fp32>} : vector<8x8xf32>, vector<8x32xf32>, vector<8x32xf32> -> vector<8x32xf32>
    %52 = arith.addf %26, %51 : vector<8x32xf32>
    %c1 = arith.constant 1 : index
    %c0_32 = arith.constant 0 : index
    %c0_33 = arith.constant 0 : index
    %53 = vector.load %arg4[%c1, %c0_32, %c0_33] : memref<4x32x8xf32, #tpu.memory_space<vmem>>, vector<1x32x8xf32>
    %54 = vector.shape_cast %53 : vector<1x32x8xf32> to vector<32x8xf32>
    %cst_34 = arith.constant dense<0.000000e+00> : vector<8x8xf32>
    %55 = tpu.matmul %25, %54, %cst_34 {dimension_numbers = #tpu.dot_dimension_numbers<[1], [0], [0], [1], [0, 0, 1, 1], [], []>, precision = #tpu.contract_precision<fp32>} : vector<8x32xf32>, vector<32x8xf32>, vector<8x8xf32> -> vector<8x8xf32>
    %c1_35 = arith.constant 1 : index
    %c0_36 = arith.constant 0 : index
    %c0_37 = arith.constant 0 : index
    %56 = vector.load %arg5[%c1_35, %c0_36, %c0_37] : memref<4x32x8xf32, #tpu.memory_space<vmem>>, vector<1x32x8xf32>
    %57 = vector.shape_cast %56 : vector<1x32x8xf32> to vector<32x8xf32>
    %cst_38 = arith.constant dense<0.000000e+00> : vector<8x8xf32>
    %58 = tpu.matmul %25, %57, %cst_38 {dimension_numbers = #tpu.dot_dimension_numbers<[1], [0], [0], [1], [0, 0, 1, 1], [], []>, precision = #tpu.contract_precision<fp32>} : vector<8x32xf32>, vector<32x8xf32>, vector<8x8xf32> -> vector<8x8xf32>
    %c1_39 = arith.constant 1 : index
    %c0_40 = arith.constant 0 : index
    %c0_41 = arith.constant 0 : index
    %59 = vector.load %arg6[%c1_39, %c0_40, %c0_41] : memref<4x32x8xf32, #tpu.memory_space<vmem>>, vector<1x32x8xf32>
    %60 = vector.shape_cast %59 : vector<1x32x8xf32> to vector<32x8xf32>
    %cst_42 = arith.constant dense<0.000000e+00> : vector<8x8xf32>
    %61 = tpu.matmul %25, %60, %cst_42 {dimension_numbers = #tpu.dot_dimension_numbers<[1], [0], [0], [1], [0, 0, 1, 1], [], []>, precision = #tpu.contract_precision<fp32>} : vector<8x32xf32>, vector<32x8xf32>, vector<8x8xf32> -> vector<8x8xf32>
    %cst_43 = arith.constant dense<0.000000e+00> : vector<8x8xf32>
    %62 = tpu.matmul %55, %58, %cst_43 {dimension_numbers = #tpu.dot_dimension_numbers<[1], [1], [0], [0], [0, 0, 1, 0], [], []>, precision = #tpu.contract_precision<fp32>} : vector<8x8xf32>, vector<8x8xf32>, vector<8x8xf32> -> vector<8x8xf32>
    %cst_44 = arith.constant 0.353553385 : f32
    %63 = vector.broadcast %cst_44 : f32 to vector<8x8xf32>
    %64 = arith.mulf %62, %63 : vector<8x8xf32>
    %cst_45 = arith.constant dense<0xFF800000> : vector<8xf32>
    %65 = vector.multi_reduction <maximumf>, %64, %cst_45 [1] : vector<8x8xf32> to vector<8xf32>
    %66 = vector.shape_cast %65 : vector<8xf32> to vector<8x1xf32>
    %67 = vector.broadcast %66 : vector<8x1xf32> to vector<8x8xf32>
    %68 = arith.subf %64, %67 : vector<8x8xf32>
    %69 = math.exp %68 : vector<8x8xf32>
    %cst_46 = arith.constant dense<0.000000e+00> : vector<8xf32>
    %70 = vector.multi_reduction <add>, %69, %cst_46 [1] : vector<8x8xf32> to vector<8xf32>
    %71 = vector.shape_cast %70 : vector<8xf32> to vector<8x1xf32>
    %72 = vector.broadcast %71 : vector<8x1xf32> to vector<8x8xf32>
    %73 = arith.divf %69, %72 : vector<8x8xf32>
    %cst_47 = arith.constant dense<0.000000e+00> : vector<8x8xf32>
    %74 = tpu.matmul %73, %61, %cst_47 {dimension_numbers = #tpu.dot_dimension_numbers<[1], [0], [0], [1], [0, 0, 1, 1], [], []>, precision = #tpu.contract_precision<fp32>} : vector<8x8xf32>, vector<8x8xf32>, vector<8x8xf32> -> vector<8x8xf32>
    %c1_48 = arith.constant 1 : index
    %c0_49 = arith.constant 0 : index
    %c0_50 = arith.constant 0 : index
    %75 = vector.load %arg7[%c1_48, %c0_49, %c0_50] : memref<4x8x32xf32, #tpu.memory_space<vmem>>, vector<1x8x32xf32>
    %76 = vector.shape_cast %75 : vector<1x8x32xf32> to vector<8x32xf32>
    %cst_51 = arith.constant dense<0.000000e+00> : vector<8x32xf32>
    %77 = tpu.matmul %74, %76, %cst_51 {dimension_numbers = #tpu.dot_dimension_numbers<[1], [0], [0], [1], [0, 0, 1, 1], [], []>, precision = #tpu.contract_precision<fp32>} : vector<8x8xf32>, vector<8x32xf32>, vector<8x32xf32> -> vector<8x32xf32>
    %78 = arith.addf %52, %77 : vector<8x32xf32>
    %c2 = arith.constant 2 : index
    %c0_52 = arith.constant 0 : index
    %c0_53 = arith.constant 0 : index
    %79 = vector.load %arg4[%c2, %c0_52, %c0_53] : memref<4x32x8xf32, #tpu.memory_space<vmem>>, vector<1x32x8xf32>
    %80 = vector.shape_cast %79 : vector<1x32x8xf32> to vector<32x8xf32>
    %cst_54 = arith.constant dense<0.000000e+00> : vector<8x8xf32>
    %81 = tpu.matmul %25, %80, %cst_54 {dimension_numbers = #tpu.dot_dimension_numbers<[1], [0], [0], [1], [0, 0, 1, 1], [], []>, precision = #tpu.contract_precision<fp32>} : vector<8x32xf32>, vector<32x8xf32>, vector<8x8xf32> -> vector<8x8xf32>
    %c2_55 = arith.constant 2 : index
    %c0_56 = arith.constant 0 : index
    %c0_57 = arith.constant 0 : index
    %82 = vector.load %arg5[%c2_55, %c0_56, %c0_57] : memref<4x32x8xf32, #tpu.memory_space<vmem>>, vector<1x32x8xf32>
    %83 = vector.shape_cast %82 : vector<1x32x8xf32> to vector<32x8xf32>
    %cst_58 = arith.constant dense<0.000000e+00> : vector<8x8xf32>
    %84 = tpu.matmul %25, %83, %cst_58 {dimension_numbers = #tpu.dot_dimension_numbers<[1], [0], [0], [1], [0, 0, 1, 1], [], []>, precision = #tpu.contract_precision<fp32>} : vector<8x32xf32>, vector<32x8xf32>, vector<8x8xf32> -> vector<8x8xf32>
    %c2_59 = arith.constant 2 : index
    %c0_60 = arith.constant 0 : index
    %c0_61 = arith.constant 0 : index
    %85 = vector.load %arg6[%c2_59, %c0_60, %c0_61] : memref<4x32x8xf32, #tpu.memory_space<vmem>>, vector<1x32x8xf32>
    %86 = vector.shape_cast %85 : vector<1x32x8xf32> to vector<32x8xf32>
    %cst_62 = arith.constant dense<0.000000e+00> : vector<8x8xf32>
    %87 = tpu.matmul %25, %86, %cst_62 {dimension_numbers = #tpu.dot_dimension_numbers<[1], [0], [0], [1], [0, 0, 1, 1], [], []>, precision = #tpu.contract_precision<fp32>} : vector<8x32xf32>, vector<32x8xf32>, vector<8x8xf32> -> vector<8x8xf32>
    %cst_63 = arith.constant dense<0.000000e+00> : vector<8x8xf32>
    %88 = tpu.matmul %81, %84, %cst_63 {dimension_numbers = #tpu.dot_dimension_numbers<[1], [1], [0], [0], [0, 0, 1, 0], [], []>, precision = #tpu.contract_precision<fp32>} : vector<8x8xf32>, vector<8x8xf32>, vector<8x8xf32> -> vector<8x8xf32>
    %cst_64 = arith.constant 0.353553385 : f32
    %89 = vector.broadcast %cst_64 : f32 to vector<8x8xf32>
    %90 = arith.mulf %88, %89 : vector<8x8xf32>
    %cst_65 = arith.constant dense<0xFF800000> : vector<8xf32>
    %91 = vector.multi_reduction <maximumf>, %90, %cst_65 [1] : vector<8x8xf32> to vector<8xf32>
    %92 = vector.shape_cast %91 : vector<8xf32> to vector<8x1xf32>
    %93 = vector.broadcast %92 : vector<8x1xf32> to vector<8x8xf32>
    %94 = arith.subf %90, %93 : vector<8x8xf32>
    %95 = math.exp %94 : vector<8x8xf32>
    %cst_66 = arith.constant dense<0.000000e+00> : vector<8xf32>
    %96 = vector.multi_reduction <add>, %95, %cst_66 [1] : vector<8x8xf32> to vector<8xf32>
    %97 = vector.shape_cast %96 : vector<8xf32> to vector<8x1xf32>
    %98 = vector.broadcast %97 : vector<8x1xf32> to vector<8x8xf32>
    %99 = arith.divf %95, %98 : vector<8x8xf32>
    %cst_67 = arith.constant dense<0.000000e+00> : vector<8x8xf32>
    %100 = tpu.matmul %99, %87, %cst_67 {dimension_numbers = #tpu.dot_dimension_numbers<[1], [0], [0], [1], [0, 0, 1, 1], [], []>, precision = #tpu.contract_precision<fp32>} : vector<8x8xf32>, vector<8x8xf32>, vector<8x8xf32> -> vector<8x8xf32>
    %c2_68 = arith.constant 2 : index
    %c0_69 = arith.constant 0 : index
    %c0_70 = arith.constant 0 : index
    %101 = vector.load %arg7[%c2_68, %c0_69, %c0_70] : memref<4x8x32xf32, #tpu.memory_space<vmem>>, vector<1x8x32xf32>
    %102 = vector.shape_cast %101 : vector<1x8x32xf32> to vector<8x32xf32>
    %cst_71 = arith.constant dense<0.000000e+00> : vector<8x32xf32>
    %103 = tpu.matmul %100, %102, %cst_71 {dimension_numbers = #tpu.dot_dimension_numbers<[1], [0], [0], [1], [0, 0, 1, 1], [], []>, precision = #tpu.contract_precision<fp32>} : vector<8x8xf32>, vector<8x32xf32>, vector<8x32xf32> -> vector<8x32xf32>
    %104 = arith.addf %78, %103 : vector<8x32xf32>
    %c3 = arith.constant 3 : index
    %c0_72 = arith.constant 0 : index
    %c0_73 = arith.constant 0 : index
    %105 = vector.load %arg4[%c3, %c0_72, %c0_73] : memref<4x32x8xf32, #tpu.memory_space<vmem>>, vector<1x32x8xf32>
    %106 = vector.shape_cast %105 : vector<1x32x8xf32> to vector<32x8xf32>
    %cst_74 = arith.constant dense<0.000000e+00> : vector<8x8xf32>
    %107 = tpu.matmul %25, %106, %cst_74 {dimension_numbers = #tpu.dot_dimension_numbers<[1], [0], [0], [1], [0, 0, 1, 1], [], []>, precision = #tpu.contract_precision<fp32>} : vector<8x32xf32>, vector<32x8xf32>, vector<8x8xf32> -> vector<8x8xf32>
    %c3_75 = arith.constant 3 : index
    %c0_76 = arith.constant 0 : index
    %c0_77 = arith.constant 0 : index
    %108 = vector.load %arg5[%c3_75, %c0_76, %c0_77] : memref<4x32x8xf32, #tpu.memory_space<vmem>>, vector<1x32x8xf32>
    %109 = vector.shape_cast %108 : vector<1x32x8xf32> to vector<32x8xf32>
    %cst_78 = arith.constant dense<0.000000e+00> : vector<8x8xf32>
    %110 = tpu.matmul %25, %109, %cst_78 {dimension_numbers = #tpu.dot_dimension_numbers<[1], [0], [0], [1], [0, 0, 1, 1], [], []>, precision = #tpu.contract_precision<fp32>} : vector<8x32xf32>, vector<32x8xf32>, vector<8x8xf32> -> vector<8x8xf32>
    %c3_79 = arith.constant 3 : index
    %c0_80 = arith.constant 0 : index
    %c0_81 = arith.constant 0 : index
    %111 = vector.load %arg6[%c3_79, %c0_80, %c0_81] : memref<4x32x8xf32, #tpu.memory_space<vmem>>, vector<1x32x8xf32>
    %112 = vector.shape_cast %111 : vector<1x32x8xf32> to vector<32x8xf32>
    %cst_82 = arith.constant dense<0.000000e+00> : vector<8x8xf32>
    %113 = tpu.matmul %25, %112, %cst_82 {dimension_numbers = #tpu.dot_dimension_numbers<[1], [0], [0], [1], [0, 0, 1, 1], [], []>, precision = #tpu.contract_precision<fp32>} : vector<8x32xf32>, vector<32x8xf32>, vector<8x8xf32> -> vector<8x8xf32>
    %cst_83 = arith.constant dense<0.000000e+00> : vector<8x8xf32>
    %114 = tpu.matmul %107, %110, %cst_83 {dimension_numbers = #tpu.dot_dimension_numbers<[1], [1], [0], [0], [0, 0, 1, 0], [], []>, precision = #tpu.contract_precision<fp32>} : vector<8x8xf32>, vector<8x8xf32>, vector<8x8xf32> -> vector<8x8xf32>
    %cst_84 = arith.constant 0.353553385 : f32
    %115 = vector.broadcast %cst_84 : f32 to vector<8x8xf32>
    %116 = arith.mulf %114, %115 : vector<8x8xf32>
    %cst_85 = arith.constant dense<0xFF800000> : vector<8xf32>
    %117 = vector.multi_reduction <maximumf>, %116, %cst_85 [1] : vector<8x8xf32> to vector<8xf32>
    %118 = vector.shape_cast %117 : vector<8xf32> to vector<8x1xf32>
    %119 = vector.broadcast %118 : vector<8x1xf32> to vector<8x8xf32>
    %120 = arith.subf %116, %119 : vector<8x8xf32>
    %121 = math.exp %120 : vector<8x8xf32>
    %cst_86 = arith.constant dense<0.000000e+00> : vector<8xf32>
    %122 = vector.multi_reduction <add>, %121, %cst_86 [1] : vector<8x8xf32> to vector<8xf32>
    %123 = vector.shape_cast %122 : vector<8xf32> to vector<8x1xf32>
    %124 = vector.broadcast %123 : vector<8x1xf32> to vector<8x8xf32>
    %125 = arith.divf %121, %124 : vector<8x8xf32>
    %cst_87 = arith.constant dense<0.000000e+00> : vector<8x8xf32>
    %126 = tpu.matmul %125, %113, %cst_87 {dimension_numbers = #tpu.dot_dimension_numbers<[1], [0], [0], [1], [0, 0, 1, 1], [], []>, precision = #tpu.contract_precision<fp32>} : vector<8x8xf32>, vector<8x8xf32>, vector<8x8xf32> -> vector<8x8xf32>
    %c3_88 = arith.constant 3 : index
    %c0_89 = arith.constant 0 : index
    %c0_90 = arith.constant 0 : index
    %127 = vector.load %arg7[%c3_88, %c0_89, %c0_90] : memref<4x8x32xf32, #tpu.memory_space<vmem>>, vector<1x8x32xf32>
    %128 = vector.shape_cast %127 : vector<1x8x32xf32> to vector<8x32xf32>
    %cst_91 = arith.constant dense<0.000000e+00> : vector<8x32xf32>
    %129 = tpu.matmul %126, %128, %cst_91 {dimension_numbers = #tpu.dot_dimension_numbers<[1], [0], [0], [1], [0, 0, 1, 1], [], []>, precision = #tpu.contract_precision<fp32>} : vector<8x8xf32>, vector<8x32xf32>, vector<8x32xf32> -> vector<8x32xf32>
    %130 = arith.addf %104, %129 : vector<8x32xf32>
    %c0_92 = arith.constant 0 : index
    %c0_93 = arith.constant 0 : index
    %131 = vector.load %arg8[%c0_92, %c0_93] : memref<1x32xf32, #tpu.memory_space<vmem>>, vector<1x32xf32>
    %132 = vector.broadcast %131 : vector<1x32xf32> to vector<8x32xf32>
    %133 = arith.addf %130, %132 : vector<8x32xf32>
    %134 = arith.addf %1, %133 : vector<8x32xf32>
    %cst_94 = arith.constant dense<0.000000e+00> : vector<8xf32>
    %135 = vector.multi_reduction <add>, %134, %cst_94 [1] : vector<8x32xf32> to vector<8xf32>
    %136 = vector.shape_cast %135 : vector<8xf32> to vector<8x1xf32>
    %cst_95 = arith.constant 3.200000e+01 : f32
    %137 = vector.broadcast %cst_95 : f32 to vector<8x1xf32>
    %138 = arith.divf %136, %137 : vector<8x1xf32>
    %139 = vector.broadcast %138 : vector<8x1xf32> to vector<8x32xf32>
    %140 = arith.subf %134, %139 : vector<8x32xf32>
    %141 = arith.mulf %140, %140 : vector<8x32xf32>
    %cst_96 = arith.constant dense<0.000000e+00> : vector<8xf32>
    %142 = vector.multi_reduction <add>, %141, %cst_96 [1] : vector<8x32xf32> to vector<8xf32>
    %143 = vector.shape_cast %142 : vector<8xf32> to vector<8x1xf32>
    %cst_97 = arith.constant 3.200000e+01 : f32
    %144 = vector.broadcast %cst_97 : f32 to vector<8x1xf32>
    %145 = arith.divf %143, %144 : vector<8x1xf32>
    %146 = vector.broadcast %138 : vector<8x1xf32> to vector<8x32xf32>
    %147 = arith.subf %134, %146 : vector<8x32xf32>
    %cst_98 = arith.constant 9.99999974E-6 : f32
    %148 = vector.broadcast %cst_98 : f32 to vector<8x1xf32>
    %149 = arith.addf %145, %148 : vector<8x1xf32>
    %150 = math.rsqrt %149 : vector<8x1xf32>
    %151 = vector.broadcast %150 : vector<8x1xf32> to vector<8x32xf32>
    %152 = arith.mulf %147, %151 : vector<8x32xf32>
    %c0_99 = arith.constant 0 : index
    %c0_100 = arith.constant 0 : index
    %153 = vector.load %arg9[%c0_99, %c0_100] : memref<1x32xf32, #tpu.memory_space<vmem>>, vector<1x32xf32>
    %154 = vector.broadcast %153 : vector<1x32xf32> to vector<8x32xf32>
    %155 = arith.mulf %152, %154 : vector<8x32xf32>
    %c0_101 = arith.constant 0 : index
    %c0_102 = arith.constant 0 : index
    %156 = vector.load %arg10[%c0_101, %c0_102] : memref<1x32xf32, #tpu.memory_space<vmem>>, vector<1x32xf32>
    %157 = vector.broadcast %156 : vector<1x32xf32> to vector<8x32xf32>
    %158 = arith.addf %155, %157 : vector<8x32xf32>
    %c0_103 = arith.constant 0 : index
    %c0_104 = arith.constant 0 : index
    %159 = vector.load %arg11[%c0_103, %c0_104] : memref<32x64xf32, #tpu.memory_space<vmem>>, vector<32x64xf32>
    %cst_105 = arith.constant dense<0.000000e+00> : vector<8x64xf32>
    %160 = tpu.matmul %158, %159, %cst_105 {dimension_numbers = #tpu.dot_dimension_numbers<[1], [0], [0], [1], [0, 0, 1, 1], [], []>, precision = #tpu.contract_precision<fp32>} : vector<8x32xf32>, vector<32x64xf32>, vector<8x64xf32> -> vector<8x64xf32>
    %c0_106 = arith.constant 0 : index
    %c0_107 = arith.constant 0 : index
    %161 = vector.load %arg12[%c0_106, %c0_107] : memref<1x64xf32, #tpu.memory_space<vmem>>, vector<1x64xf32>
    %162 = vector.broadcast %161 : vector<1x64xf32> to vector<8x64xf32>
    %163 = arith.addf %160, %162 : vector<8x64xf32>
    %cst_108 = arith.constant 5.000000e-01 : f32
    %164 = vector.broadcast %cst_108 : f32 to vector<8x64xf32>
    %165 = arith.mulf %164, %163 : vector<8x64xf32>
    %cst_109 = arith.constant 4.471500e-02 : f32
    %166 = vector.broadcast %cst_109 : f32 to vector<8x64xf32>
    %167 = arith.mulf %166, %163 : vector<8x64xf32>
    %168 = arith.mulf %167, %163 : vector<8x64xf32>
    %169 = arith.mulf %168, %163 : vector<8x64xf32>
    %170 = arith.addf %163, %169 : vector<8x64xf32>
    %cst_110 = arith.constant 0.797884583 : f32
    %171 = vector.broadcast %cst_110 : f32 to vector<8x64xf32>
    %172 = arith.mulf %171, %170 : vector<8x64xf32>
    %173 = math.tanh %172 : vector<8x64xf32>
    %cst_111 = arith.constant 1.000000e+00 : f32
    %174 = vector.broadcast %cst_111 : f32 to vector<8x64xf32>
    %175 = arith.addf %174, %173 : vector<8x64xf32>
    %176 = arith.mulf %165, %175 : vector<8x64xf32>
    %c0_112 = arith.constant 0 : index
    %c0_113 = arith.constant 0 : index
    %177 = vector.load %arg13[%c0_112, %c0_113] : memref<64x32xf32, #tpu.memory_space<vmem>>, vector<64x32xf32>
    %cst_114 = arith.constant dense<0.000000e+00> : vector<8x32xf32>
    %178 = tpu.matmul %176, %177, %cst_114 {dimension_numbers = #tpu.dot_dimension_numbers<[1], [0], [0], [1], [0, 0, 1, 1], [], []>, precision = #tpu.contract_precision<fp32>} : vector<8x64xf32>, vector<64x32xf32>, vector<8x32xf32> -> vector<8x32xf32>
    %c0_115 = arith.constant 0 : index
    %c0_116 = arith.constant 0 : index
    %179 = vector.load %arg14[%c0_115, %c0_116] : memref<1x32xf32, #tpu.memory_space<vmem>>, vector<1x32xf32>
    %180 = vector.broadcast %179 : vector<1x32xf32> to vector<8x32xf32>
    %181 = arith.addf %178, %180 : vector<8x32xf32>
    %182 = arith.addf %134, %181 : vector<8x32xf32>
    %c0_117 = arith.constant 0 : index
    %c0_118 = arith.constant 0 : index
    %c0_119 = arith.constant 0 : index
    %183 = vector.load %arg15[%c0_117, %c0_118, %c0_119] : memref<1x8x32xf32, #tpu.memory_space<vmem>>, vector<1x8x32xf32>
    %184 = vector.shape_cast %183 : vector<1x8x32xf32> to vector<8x32xf32>
    %185 = vector.shape_cast %182 : vector<8x32xf32> to vector<1x8x32xf32>
    tpu.vector_store %arg15[%c0_117, %c0_118, %c0_119], %185 {strides = array<i32>} : memref<1x8x32xf32, #tpu.memory_space<vmem>>, vector<1x8x32xf32>,
    return
  }
  func.func @transform_0(%arg0: i32) -> (i32, i32, i32) {
    %c0_i32 = arith.constant 0 : i32
    %c0_i32_0 = arith.constant 0 : i32
    %c0_i32_1 = arith.constant 0 : i32
    return %arg0, %c0_i32, %c0_i32_0 : i32, i32, i32
  }
  func.func @transform_1(%arg0: i32) -> (i32, i32) {
    %c0_i32 = arith.constant 0 : i32
    %c0_i32_0 = arith.constant 0 : i32
    %c0_i32_1 = arith.constant 0 : i32
    return %c0_i32, %c0_i32_0 : i32, i32
  }
  func.func @transform_2(%arg0: i32) -> (i32, i32) {
    %c0_i32 = arith.constant 0 : i32
    %c0_i32_0 = arith.constant 0 : i32
    %c0_i32_1 = arith.constant 0 : i32
    return %c0_i32, %c0_i32_0 : i32, i32
  }
  func.func @transform_3(%arg0: i32) -> (i32, i32, i32) {
    %c0_i32 = arith.constant 0 : i32
    %c0_i32_0 = arith.constant 0 : i32
    %c0_i32_1 = arith.constant 0 : i32
    %c0_i32_2 = arith.constant 0 : i32
    return %c0_i32, %c0_i32_0, %c0_i32_1 : i32, i32, i32
  }
  func.func @transform_4(%arg0: i32) -> (i32, i32, i32) {
    %c0_i32 = arith.constant 0 : i32
    %c0_i32_0 = arith.constant 0 : i32
    %c0_i32_1 = arith.constant 0 : i32
    %c0_i32_2 = arith.constant 0 : i32
    return %c0_i32, %c0_i32_0, %c0_i32_1 : i32, i32, i32
  }
  func.func @transform_5(%arg0: i32) -> (i32, i32, i32) {
    %c0_i32 = arith.constant 0 : i32
    %c0_i32_0 = arith.constant 0 : i32
    %c0_i32_1 = arith.constant 0 : i32
    %c0_i32_2 = arith.constant 0 : i32
    return %c0_i32, %c0_i32_0, %c0_i32_1 : i32, i32, i32
  }
  func.func @transform_6(%arg0: i32) -> (i32, i32, i32) {
    %c0_i32 = arith.constant 0 : i32
    %c0_i32_0 = arith.constant 0 : i32
    %c0_i32_1 = arith.constant 0 : i32
    %c0_i32_2 = arith.constant 0 : i32
    return %c0_i32, %c0_i32_0, %c0_i32_1 : i32, i32, i32
  }
  func.func @transform_7(%arg0: i32) -> (i32, i32) {
    %c0_i32 = arith.constant 0 : i32
    %c0_i32_0 = arith.constant 0 : i32
    %c0_i32_1 = arith.constant 0 : i32
    return %c0_i32, %c0_i32_0 : i32, i32
  }
  func.func @transform_8(%arg0: i32) -> (i32, i32) {
    %c0_i32 = arith.constant 0 : i32
    %c0_i32_0 = arith.constant 0 : i32
    %c0_i32_1 = arith.constant 0 : i32
    return %c0_i32, %c0_i32_0 : i32, i32
  }
  func.func @transform_9(%arg0: i32) -> (i32, i32) {
    %c0_i32 = arith.constant 0 : i32
    %c0_i32_0 = arith.constant 0 : i32
    %c0_i32_1 = arith.constant 0 : i32
    return %c0_i32, %c0_i32_0 : i32, i32
  }
  func.func @transform_10(%arg0: i32) -> (i32, i32) {
    %c0_i32 = arith.constant 0 : i32
    %c0_i32_0 = arith.constant 0 : i32
    %c0_i32_1 = arith.constant 0 : i32
    return %c0_i32, %c0_i32_0 : i32, i32
  }
  func.func @transform_11(%arg0: i32) -> (i32, i32) {
    %c0_i32 = arith.constant 0 : i32
    %c0_i32_0 = arith.constant 0 : i32
    %c0_i32_1 = arith.constant 0 : i32
    return %c0_i32, %c0_i32_0 : i32, i32
  }
  func.func @transform_12(%arg0: i32) -> (i32, i32) {
    %c0_i32 = arith.constant 0 : i32
    %c0_i32_0 = arith.constant 0 : i32
    %c0_i32_1 = arith.constant 0 : i32
    return %c0_i32, %c0_i32_0 : i32, i32
  }
  func.func @transform_13(%arg0: i32) -> (i32, i32) {
    %c0_i32 = arith.constant 0 : i32
    %c0_i32_0 = arith.constant 0 : i32
    %c0_i32_1 = arith.constant 0 : i32
    return %c0_i32, %c0_i32_0 : i32, i32
  }
  func.func @transform_14(%arg0: i32) -> (i32, i32, i32) {
    %c0_i32 = arith.constant 0 : i32
    %c0_i32_0 = arith.constant 0 : i32
    %c0_i32_1 = arith.constant 0 : i32
    return %arg0, %c0_i32, %c0_i32_0 : i32, i32, i32
  }
}

</mosaic_0001>

<bundles_post_ra>
// kernel: tpu_custom_call.1
= control target key start
LH: loop header
LB: loop body
LE: loop exit
PB: predicated region body
PF: predicated region fallthrough
CT: control target
= control target key end

     0   :  { %s17384_s0 = inlined_call_operand.vmem [shape: f32[2,8,32], index: 0, kind: input, shape index: {}]   ;;  %s17385_s1 = inlined_call_operand.vmem [shape: f32[1,32], index: 1, kind: input, shape index: {}]   ;;  %s17386_s2 = inlined_call_operand.vmem [shape: f32[1,32], index: 2, kind: input, shape index: {}]   ;;  %s17387_s3 = inlined_call_operand.vmem [shape: f32[4,32,8], index: 3, kind: input, shape index: {}]   ;;  %s17388_s4 = inlined_call_operand.vmem [shape: f32[4,32,8], index: 4, kind: input, shape index: {}]   ;;  %s17389_s5 = inlined_call_operand.vmem [shape: f32[4,32,8], index: 5, kind: input, shape index: {}]   ;;  %s17390_s6 = inlined_call_operand.vmem [shape: f32[4,8,32], index: 6, kind: input, shape index: {}]   ;;  %s17391_s7 = inlined_call_operand.vmem [shape: f32[1,32], index: 7, kind: input, shape index: {}]   ;;  %s17392_s8 = inlined_call_operand.vmem [shape: f32[1,32], index: 8, kind: input, shape index: {}]   ;;  %s17393_s9 = inlined_call_operand.vmem [shape: f32[1,32], index: 9, kind: input, shape index: {}]   ;;  %s17394_s10 = inlined_call_operand.vmem [shape: f32[32,64], index: 10, kind: input, shape index: {}]   ;;  %s17395_s11 = inlined_call_operand.vmem [shape: f32[1,64], index: 11, kind: input, shape index: {}]   ;;  %s17396_s12 = inlined_call_operand.vmem [shape: f32[64,32], index: 12, kind: input, shape index: {}]   ;;  %s17397_s13 = inlined_call_operand.vmem [shape: f32[1,32], index: 13, kind: input, shape index: {}]   ;;  %s17398_s14 = inlined_call_operand.hbm [shape: f32[2,8,32], index: 14, kind: output, shape index: {}]  }
   0x1   :  { %17402 = sst [smem:[#allocation8_spill]] %s17384_s0 }
   0x2   :  { %19 = vsyncpa [#allocation3], 0 }
   0x3   :  { %21 = vsyncpa [#allocation3 + $0x1], 0  ;;  %s15944_s29 = smov 0   ;;  %s15946_s30 = smov 0  }
   0x4   :  { %s15948_s15 = smov 0   ;;  %s15950_s16 = smov 0  }
   0x5 LB: > { %17403 = sst [smem:[#allocation5_spill]] %s15859_s15  ;;  %s15965_s17 = sadd.s32 4294967295, %s15863_s16   ;;  %s15863_s16 = sphi %s15950_s16, %s17409_s16   ;;  %s15859_s15 = sphi %s15948_s15, %s17414_s15   ;;  %s15855_s30 = sphi %s15946_s30, %s17413_s30   ;;  %s15851_s29 = sphi %s15944_s29, %s17412_s29  }
   0x6   : > { %s13010_s18 = sadd.s32 4294967294, %s15863_s16   ;;  %s15969_s19 = sadd.s32 1, %s15863_s16  }
   0x7   : > { %17404 = sst [smem:[#allocation6_spill]] %s15969_s19  ;;  %s333_s20 = sadd.s32 1, %s15859_s15 }
   0x8   : > { %s330_s21 = ssub.s32 %s15863_s16, %s15969_s19  ;;  %p343_p0 = scmp.ne.s32.totalorder %s15859_s15, %s15855_s30 }
   0x9   : > { %p331_p1 = scmp.eq.s32.totalorder %s330_s21, 0  ;;  %p344_p2 = scmp.eq.s32.totalorder %s15965_s17, 1 }
   0xa   : > { %p349_p3 = scmp.ne.s32.totalorder %s15855_s30, %s15851_s29  ;;  %p350_p4 = scmp.eq.s32.totalorder %s13010_s18, 1 }
   0xb   : > { %s15980_s22 = scalar_select %p331_p1, %s15859_s15, %s333_s20  }
   0xc   : > { %p15982_p5 = por %p344_p2, %p343_p0  ;;  %p15986_p6 = por %p350_p4, %p349_p3 }
   0xd   : > { %17405 = sst [smem:[#allocation7_spill]] %s15980_s22  ;;  %p13013_p7 = scmp.ge.s32.totalorder %s15863_s16, 1 }
   0xe   : > { %p414_p8 = scmp.lt.s32.totalorder %s15863_s16, 3 }
  0x10   : > { %p415_p9 = pnand %p13013_p7, %p414_p8 }
  0x11   : > { %p459_p10 = scmp.lt.s32.totalorder (!%p415_p9), %s15965_s17, 1  ;;  %vm464_vm0 = vcmask (!%p415_p9), 261120   ;;  %s17408_s0 = sld [smem:[#allocation8_spill]] (!%p415_p9)  ;;  %v495_v7 = vld [vmem:[%s17387_s3] sm:$0xff] (!%p415_p9)  ;;  %v496_v8 = vld [vmem:[%s17387_s3 + $0x8] sm:$0xff] (!%p415_p9)  ;;  %v497_v13 = vld [vmem:[%s17387_s3 + $0x10] sm:$0xff] (!%p415_p9) }
  0x12   : > { %418 = sbr.rel (%p415_p9) target bundleno = 5725 (0x165d), region = 76  ;;  %v503_v9 = vand.u32 (!%p415_p9), 4294901760, %v495_v7  ;;  %v506_v10 = vand.u32 (!%p415_p9), 4294901760, %v496_v8  ;;  %v498_v14 = vld [vmem:[%s17387_s3 + $0x18] sm:$0xff] (!%p415_p9)  ;;  %v509_v17 = vand.u32 (!%p415_p9), 4294901760, %v497_v13  ;;  %v15865_v30 = vmov (!%p415_p9), 0.0|0.0  }
  0x13   : > { %v512_v18 = vand.u32 (!%p415_p9), 4294901760, %v498_v14  ;;  %14992 = vmatprep.subr.bf16.mxu0 (!%p415_p9), %v15865_v30  ;;  %14986 = vmatprep.subr.bf16.mxu1 (!%p415_p9), %v15865_v30  ;;  %vm15866_vm1 = vmmov (!%p415_p9), 0   ;;  %v15867_v36 = vmov (!%p415_p9), 0.0   ;;  %v987_v44 = vld [vmem:[%s17388_s4] sm:$0xff] (!%p415_p9)  ;;  %v988_v47 = vld [vmem:[%s17388_s4 + $0x8] sm:$0xff] (!%p415_p9)  ;;  %v989_v53 = vld [vmem:[%s17388_s4 + $0x10] sm:$0xff] (!%p415_p9) }
  0x14   : > { %v16008_v11 = vsub.f32 (!%p415_p9), %v495_v7, %v503_v9  ;;  %v16010_v12 = vsub.f32 (!%p415_p9), %v496_v8, %v506_v10  ;;  %v16022_v21 = vsub.f32 (!%p415_p9), %v497_v13, %v509_v17  ;;  %v16034_v34 = vpack.c.bf16 (!%p415_p9), %v506_v10, %v503_v9  ;;  %13673 = vmatprep.mubr.msk.f32.mxu0 (!%p415_p9), %vm15866_vm1, %v15867_v36  ;;  %v13016_v46 = vld [vmem:[%s17385_s1] ss:$0 sm:$0xff] (!%p415_p9)  ;;  %v990_v54 = vld [vmem:[%s17388_s4 + $0x18] sm:$0xff] (!%p415_p9)  ;;  %s456_s22 = sand.u32 (!%p415_p9), 1, %s15855_s30   ;;  %s13063_s19 = sshll.u32 (!%p415_p9), %s15965_s17, 7 }
  0x15   : > { %v16024_v22 = vsub.f32 (!%p415_p9), %v498_v14, %v512_v18  ;;  %13662 = vmatprep.mubr.msk.f32.mxu1 (!%p415_p9), %vm15866_vm1, %v15867_v36  ;;  %v16044_v37 = vpack.c.bf16 (!%p415_p9), %v512_v18, %v509_v17  ;;  %v13017_v49 = vld [vmem:[%s17386_s2] ss:$0 sm:$0xff] (!%p415_p9)  ;;  %v992_v50 = vand.u32 (!%p415_p9), 4294901760, %v987_v44  ;;  %v995_v52 = vand.u32 (!%p415_p9), 4294901760, %v988_v47  ;;  %s13014_s15 = sshll.u32 (!%p415_p9), %s456_s22, 3  ;;  %s17341_s27 = scalar_lea.hbm (!%p415_p9), %s17398_s14, %s13063_s19 }
  0x16   : > { %v584_v15 = vand.u32 (!%p415_p9), 4294901760, %v16008_v11  ;;  %v591_v16 = vand.u32 (!%p415_p9), 4294901760, %v16010_v12  ;;  %v598_v25 = vand.u32 (!%p415_p9), 4294901760, %v16022_v21  ;;  %v14999_v35 = vpack.c.bf16 (!%p415_p9), %v16010_v12, %v16008_v11  ;;  %14988 = vmatpush3.bf16.msra.mxu1 (!%p415_p9), %v16034_v34  ;;  %s458_s20 = scalar_lea.vmem (!%p415_p9), [#allocation2], %s13014_s15 }
  0x17   : > { %v605_v26 = vand.u32 (!%p415_p9), 4294901760, %v16024_v22  ;;  %14989 = vmatprep.subr.bf16.mxu1 (!%p415_p9), %v15865_v30  ;;  %v15002_v38 = vpack.c.bf16 (!%p415_p9), %v16024_v22, %v16022_v21  ;;  %v16072_v56 = vsub.f32 (!%p415_p9), %v987_v44, %v992_v50  ;;  %v16075_v58 = vsub.f32 (!%p415_p9), %v988_v47, %v995_v52 }
  0x18   : > { %v585_v19 = vsub.f32 (!%p415_p9), %v16008_v11, %v584_v15  ;;  %v592_v20 = vsub.f32 (!%p415_p9), %v16010_v12, %v591_v16  ;;  %v599_v28 = vsub.f32 (!%p415_p9), %v16022_v21, %v598_v25  ;;  %v16050_v39 = vpack.c.bf16 (!%p415_p9), %v591_v16, %v584_v15 }
  0x19   : > { %s460_s25 = scalar_select %p459_p10, %s15965_s17, 1  ;;  %v606_v29 = vsub.f32 %v16024_v22, %v605_v26  ;;  %v16052_v40 = vpack.c.bf16 %v605_v26, %v598_v25  ;;  %v998_v59 = vand.u32 4294901760, %v989_v53  ;;  %v1001_v60 = vand.u32 4294901760, %v990_v54  ;;  %v1479_v25 = vld [vmem:[%s17389_s5 + $0x18] sm:$0xff] }
  0x1a   : > { %v586_v23 = vand.u32 4294901760, %v585_v19  ;;  %v593_v24 = vand.u32 4294901760, %v592_v20  ;;  %v600_v31 = vand.u32 4294901760, %v599_v28  ;;  %14991 = vmatpush3.bf16.msra.mxu1 %v16044_v37  ;;  %v1476_v19 = vld [vmem:[%s17389_s5] sm:$0xff]  ;;  %v1477_v20 = vld [vmem:[%s17389_s5 + $0x8] sm:$0xff]  ;;  %v15035_v26 = vpack.c.bf16 %v16075_v58, %v16072_v56  ;;  %s15868_s17 = smov [#allocation2]  }
  0x1b   : > { %s13015_s26 = sshll.u32 %s460_s25, 3  ;;  %v607_v32 = vand.u32 4294901760, %v606_v29  ;;  %15022 = vmatprep.subr.bf16.mxu1 %v15865_v30  ;;  %v16085_v63 = vsub.f32 %v989_v53, %v998_v59  ;;  %v16112_v11 = vpack.c.bf16 %v1001_v60, %v998_v59  ;;  %v1481_v22 = vand.u32 4294901760, %v1476_v19 }
  0x1c   : > { %s15997_s18 = scalar_lea.vmem %s17408_s0, %s13015_s26  ;;  %v14993_v27 = vpack.c.bf16 %v593_v24, %v586_v23  ;;  %v1484_v23 = vand.u32 4294901760, %v1477_v20  ;;  %v1478_v24 = vld [vmem:[%s17389_s5 + $0x10] sm:$0xff]  ;;  %vm1965_vm2 = vcmask 64512   ;;  %vm12394_vm3 = vcmask 523264   ;;  %s12938_s26 = scalar_lea.sflag [#allocation3], %s456_s22 }
  0x1d   : > { %v463_v0 = vld [vmem:[%s15997_s18] sm:$0xff]  ;;  %v14996_v33 = vpack.c.bf16 %v607_v32, %v600_v31  ;;  %v1087_v8 = vand.u32 4294901760, %v16085_v63  ;;  %v1487_v29 = vand.u32 4294901760, %v1478_v24  ;;  %v1490_v31 = vand.u32 4294901760, %v1479_v25  ;;  %s15805_s0 = sshll.u32 %s15868_s17, 4  ;;  %s15806_s0 = int_to_ptr.vmem [resolvable:$false] %s15805_s0 }
  0x1e   : > { %v465_v1 = vsel %vm464_vm0, %v463_v0, 0.0  ;;  %14994 = vmatpush3.bf16.msra.mxu0 %v14993_v27  ;;  %v16156_v27 = vsub.f32 %v1476_v19, %v1481_v22  ;;  %v16158_v28 = vsub.f32 %v1477_v20, %v1484_v23  ;;  %s15807_s15 = scalar_lea.vmem %s15806_s0, 256 }
  0x1f   : > { %466 = vadd.xlane.f32.xlu0 %v465_v1  ;;  %14995 = vmatprep.subr.bf16.mxu0 %v15865_v30  ;;  %v1073_v1 = vand.u32 4294901760, %v16072_v56  ;;  %v1088_v14 = vsub.f32 %v16085_v63, %v1087_v8 }
  0x21   : > { %v1089_v17 = vand.u32 4294901760, %v1088_v14 }
  0x22   : > { %14997 = vmatpush3.bf16.msra.mxu0 %v14996_v33  ;;  %v16167_v33 = vsub.f32 %v1478_v24, %v1487_v29 }
  0x23   : > { %14998 = vmatprep.subr.bf16.mxu0 %v15865_v30 }
  0xac   : > { %v467_v2 = vpop.xlane.xlu0 %466 }
  0xad   : > { %v469_v3 = vmul.f32 0.03125, %v467_v2  ;;  %v1080_v2 = vand.u32 4294901760, %v16075_v58 }
  0xaf   : > { %v470_v4 = vsub.f32 %v463_v0, %v469_v3  ;;  %v16087_v0 = vsub.f32 %v990_v54, %v1001_v60  ;;  %v1081_v7 = vsub.f32 %v16075_v58, %v1080_v2  ;;  %v15071_v54 = vpack.c.bf16 %v16158_v28, %v16156_v27  ;;  %v13019_v58 = vld [vmem:[%s17387_s3 + $0x28] sm:$0xff] }
  0xb1   : > { %v471_v5 = vmul.f32 %v470_v4, %v470_v4  ;;  %v1094_v9 = vand.u32 4294901760, %v16087_v0  ;;  %v1082_v13 = vand.u32 4294901760, %v1081_v7  ;;  %v15038_v32 = vpack.c.bf16 %v16087_v0, %v16085_v63 }
  0xb2   : > { %v2889_v63 = vand.u32 4294901760, %v13019_v58 }
  0xb3   : > { %v472_v6 = vsel %vm464_vm0, %v471_v5, 0.0  ;;  %v16097_v5 = vpack.c.bf16 %v995_v52, %v992_v50  ;;  %v1095_v15 = vsub.f32 %v16087_v0, %v1094_v9  ;;  %v15050_v52 = vpack.c.bf16 %v1094_v9, %v1087_v8  ;;  %v13020_v0 = vld [vmem:[%s17387_s3 + $0x30] sm:$0xff] }
  0xb4   : > { %473 = vadd.xlane.f32.xlu0 %v472_v6  ;;  %v1074_v6 = vsub.f32 %v16072_v56, %v1073_v1 }
  0xb5   : > { %v1096_v18 = vand.u32 4294901760, %v1095_v15 }
  0xb6   : > { %v1075_v12 = vand.u32 4294901760, %v1074_v6 }
  0xb7   : > { %v15032_v21 = vpack.c.bf16 %v1096_v18, %v1089_v17 }
  0xb8   : > { %v15029_v16 = vpack.c.bf16 %v1082_v13, %v1075_v12 }
 0x141   : > { %v474_v41 = vpop.xlane.xlu0 %473 }
 0x142   : > { %v475_v42 = vmul.f32 0.03125, %v474_v41 }
 0x144   : > { %v476_v43 = vadd.f32 1e-05, %v475_v42  ;;  %v1576_v42 = vand.u32 4294901760, %v16167_v33 }
 0x146   : > { %15778 = vrsqrt.f32 %v476_v43 }
 0x150   : > { %v15779_v45 = vpop.eup %15778 }
 0x151   : > { %v478_v48 = vmul.f32 %v15779_v45, %v470_v4 }
 0x153   : > { %v486_v51 = vmul.f32 %v13016_v46, %v478_v48  ;;  %v1577_v46 = vsub.f32 %v16167_v33, %v1576_v42  ;;  %v15047_v48 = vpack.c.bf16 %v1080_v2, %v1073_v1  ;;  %v13021_v1 = vld [vmem:[%s17387_s3 + $0x38] sm:$0xff] }
 0x154   : > { %v2895_v6 = vand.u32 4294901760, %v13021_v1 }
 0x155   : > { %v494_v55 = vadd.f32 %v13017_v49, %v486_v51  ;;  %v1578_v50 = vand.u32 4294901760, %v1577_v46 }
 0x156   : > { %v2987_v8 = vsub.f32 %v13021_v1, %v2895_v6 }
 0x157   : > { %v500_v57 = vsel %vm464_vm0, %v494_v55, 0 }
 0x158   : > { %v16077_v61 = vand.u32 4294901760, %v500_v57 }
 0x15a   : > { %v16080_v62 = vsub.f32 %v500_v57, %v16077_v61  ;;  %13674 = vmatmul.mubr.f32.vlgmr.msra.gmra.mrb[0].mxu0 %v16077_v61  ;;  %v13018_v57 = vld [vmem:[%s17387_s3 + $0x20] sm:$0xff] }
 0x15b   : > { %15000 = vmatpush3.bf16.msra.mxu0 %v14999_v35  ;;  %13684 = vmatprep.mubr.msk.f32.mxu0 %vm15866_vm1, %v15867_v36  ;;  %v16169_v35 = vsub.f32 %v1479_v25, %v1490_v31  ;;  %v2886_v60 = vand.u32 4294901760, %v13018_v57 }
 0x15c   : > { %v16092_v3 = vand.u32 4294901760, %v16080_v62  ;;  %15001 = vmatprep.subr.bf16.mxu0 %v15865_v30 }
 0x15d   : > { %v1583_v43 = vand.u32 4294901760, %v16169_v35  ;;  %v15074_v55 = vpack.c.bf16 %v16169_v35, %v16167_v33  ;;  %v2966_v2 = vsub.f32 %v13018_v57, %v2886_v60  ;;  %v15095_v12 = vpack.c.bf16 %v2889_v63, %v2886_v60 }
 0x15e   : > { %v574_v4 = vsub.f32 %v16080_v62, %v16092_v3 }
 0x15f   : > { %15003 = vmatpush3.bf16.msra.mxu0 %v15002_v38  ;;  %v1562_v38 = vand.u32 4294901760, %v16156_v27  ;;  %v1584_v47 = vsub.f32 %v16169_v35, %v1583_v43  ;;  %v15086_v59 = vpack.c.bf16 %v1583_v43, %v1576_v42  ;;  %v2967_v9 = vand.u32 4294901760, %v2966_v2 }
 0x160   : > { %15004 = vmatprep.subr.bf16.mxu0 %v15865_v30  ;;  %v16108_v10 = vand.u32 4294901760, %v574_v4  ;;  %v2973_v4 = vsub.f32 %v13019_v58, %v2889_v63 }
 0x161   : > { %v1585_v51 = vand.u32 4294901760, %v1584_v47  ;;  %v2968_v13 = vsub.f32 %v2966_v2, %v2967_v9 }
 0x162   : > { %13663 = vmatmul.mubr.f32.vlgmr.msra.gmra.mrb[0].mxu1 %v16108_v10  ;;  %13685 = vmatmul.mubr.f32.vlgmr.msra.gmra.mrb[0].mxu0 %v16080_v62 }
 0x163   : > { %15006 = vmatpush3.bf16.msra.mxu0 %v16034_v34  ;;  %15024 = vmatpush3.bf16.msra.mxu1 %v16097_v5  ;;  %v15068_v53 = vpack.c.bf16 %v1585_v51, %v1578_v50  ;;  %v2969_v18 = vand.u32 4294901760, %v2968_v13 }
 0x164   : > { %15007 = vmatprep.subr.bf16.mxu0 %v15865_v30  ;;  %15025 = vmatprep.subr.bf16.mxu1 %v15865_v30 }
 0x165   : > { %13728 = vmatprep.mubr.msk.f32.mxu1 %vm15866_vm1, %v15867_v36  ;;  %13695 = vmatprep.mubr.msk.f32.mxu0 %vm15866_vm1, %v15867_v36 }
 0x167   : > { %15009 = vmatpush3.bf16.msra.mxu0 %v16044_v37  ;;  %15027 = vmatpush3.bf16.msra.mxu1 %v16112_v11 }
 0x168   : > { %15010 = vmatprep.subr.bf16.mxu0 %v15865_v30  ;;  %15028 = vmatprep.subr.bf16.mxu1 %v15865_v30 }
 0x16a   : > { %13729 = vmatmul.mubr.f32.vlgmr.msra.gmra.mrb[2].mxu1 %v16108_v10  ;;  %13696 = vmatmul.mubr.f32.vlgmr.msra.gmra.mrb[0].mxu0 %v16092_v3 }
 0x16b   : > { %15012 = vmatpush3.bf16.msra.mxu0 %v16050_v39  ;;  %15030 = vmatpush3.bf16.msra.mxu1 %v15029_v16  ;;  %v1569_v39 = vand.u32 4294901760, %v16158_v28  ;;  %v2988_v16 = vand.u32 4294901760, %v2987_v8 }
 0x16c   : > { %15013 = vmatprep.subr.bf16.mxu0 %v15865_v30  ;;  %15031 = vmatprep.subr.bf16.mxu1 %v15865_v30 }
 0x16d   : > { %13739 = vmatprep.mubr.msk.f32.mxu1 %vm15866_vm1, %v15867_v36  ;;  %13706 = vmatprep.mubr.msk.f32.mxu0 %vm15866_vm1, %v15867_v36  ;;  %v1570_v41 = vsub.f32 %v16158_v28, %v1569_v39  ;;  %v15083_v56 = vpack.c.bf16 %v1569_v39, %v1562_v38  ;;  %v13029_v39 = vld [vmem:[%s17389_s5 + $0x38] sm:$0xff] }
 0x16e   : > { %v3875_v42 = vand.u32 4294901760, %v13029_v39 }
 0x16f   : > { %15015 = vmatpush3.bf16.msra.mxu0 %v16052_v40  ;;  %15033 = vmatpush3.bf16.msra.mxu1 %v15032_v21  ;;  %v1563_v40 = vsub.f32 %v16156_v27, %v1562_v38  ;;  %v1571_v45 = vand.u32 4294901760, %v1570_v41  ;;  %v2989_v21 = vsub.f32 %v2987_v8, %v2988_v16  ;;  %v13028_v38 = vld [vmem:[%s17389_s5 + $0x30] sm:$0xff] }
 0x170   : > { %15016 = vmatprep.subr.bf16.mxu0 %v15865_v30  ;;  %15034 = vmatprep.subr.bf16.mxu1 %v15865_v30  ;;  %v3872_v41 = vand.u32 4294901760, %v13028_v38 }
 0x171   : > { %v1564_v44 = vand.u32 4294901760, %v1563_v40  ;;  %v2990_v24 = vand.u32 4294901760, %v2989_v21 }
 0x172   : > { %13740 = vmatmul.mubr.f32.vlgmr.msra.gmra.mrb[2].mxu1 %v16077_v61  ;;  %13707 = vmatmul.mubr.f32.vlgmr.msra.gmra.mrb[0].mxu0 %v16077_v61  ;;  %v3960_v43 = vsub.f32 %v13028_v38, %v3872_v41  ;;  %v15170_v51 = vpack.c.bf16 %v3875_v42, %v3872_v41 }
 0x173   : > { %15018 = vmatpush3.bf16.msra.mxu0 %v16034_v34  ;;  %15036 = vmatpush3.bf16.msra.mxu1 %v15035_v26  ;;  %v16179_v34 = vpack.c.bf16 %v1484_v23, %v1481_v22  ;;  %v15065_v49 = vpack.c.bf16 %v1571_v45, %v1564_v44  ;;  %v15107_v26 = vpack.c.bf16 %v2973_v4, %v2966_v2 }
 0x174   : > { %15019 = vmatprep.subr.bf16.mxu0 %v15865_v30  ;;  %15037 = vmatprep.subr.bf16.mxu1 %v15865_v30 }
 0x175   : > { %13750 = vmatprep.mubr.msk.f32.mxu1 %vm15866_vm1, %v15867_v36  ;;  %13717 = vmatprep.mubr.msk.f32.mxu0 %vm15866_vm1, %v15867_v36 }
 0x177   : > { %15021 = vmatpush3.bf16.msra.mxu0 %v16044_v37  ;;  %15039 = vmatpush3.bf16.msra.mxu1 %v15038_v32  ;;  %v16194_v37 = vpack.c.bf16 %v1490_v31, %v1487_v29  ;;  %v13026_v29 = vld [vmem:[%s17389_s5 + $0x20] sm:$0xff]  ;;  %v13027_v31 = vld [vmem:[%s17389_s5 + $0x28] sm:$0xff] }
 0x178   : > { %15040 = vmatprep.subr.bf16.mxu1 %v15865_v30  ;;  %15058 = vmatprep.subr.bf16.mxu0 %v15865_v30  ;;  %v3866_v33 = vand.u32 4294901760, %v13026_v29  ;;  %v3869_v35 = vand.u32 4294901760, %v13027_v31 }
 0x17a   : > { %13751 = vmatmul.mubr.f32.vlgmr.msra.gmra.mrb[2].mxu1 %v16080_v62  ;;  %13718 = vmatmul.mubr.f32.vlgmr.msra.gmra.mrb[0].mxu0 %v16077_v61  ;;  %v3953_v40 = vsub.f32 %v13027_v31, %v3869_v35  ;;  %v15167_v46 = vpack.c.bf16 %v3869_v35, %v3866_v33 }
 0x17b   : > { %15042 = vmatpush3.bf16.msra.mxu1 %v16097_v5  ;;  %15060 = vmatpush3.bf16.msra.mxu0 %v16179_v34 }
 0x17c   : > { %15043 = vmatprep.subr.bf16.mxu1 %v15865_v30  ;;  %15061 = vmatprep.subr.bf16.mxu0 %v15865_v30  ;;  %v3954_v45 = vand.u32 4294901760, %v3953_v40 }
 0x17d   : > { %13761 = vmatprep.mubr.msk.f32.mxu1 %vm15866_vm1, %v15867_v36  ;;  %13794 = vmatprep.mubr.msk.f32.mxu0 %vm15866_vm1, %v15867_v36 }
 0x17f   : > { %15045 = vmatpush3.bf16.msra.mxu1 %v16112_v11  ;;  %15063 = vmatpush3.bf16.msra.mxu0 %v16194_v37 }
 0x180   : > { %15046 = vmatprep.subr.bf16.mxu1 %v15865_v30  ;;  %15064 = vmatprep.subr.bf16.mxu0 %v15865_v30 }
 0x182   : > { %13762 = vmatmul.mubr.f32.vlgmr.msra.gmra.mrb[2].mxu1 %v16092_v3  ;;  %13795 = vmatmul.mubr.f32.vlgmr.msra.gmra.mrb[2].mxu0 %v16108_v10 }
 0x183   : > { %15048 = vmatpush3.bf16.msra.mxu1 %v15047_v48  ;;  %15066 = vmatpush3.bf16.msra.mxu0 %v15065_v49  ;;  %v3955_v48 = vsub.f32 %v3953_v40, %v3954_v45  ;;  %v3961_v49 = vand.u32 4294901760, %v3960_v43 }
 0x184   : > { %15049 = vmatprep.subr.bf16.mxu1 %v15865_v30  ;;  %15067 = vmatprep.subr.bf16.mxu0 %v15865_v30 }
 0x185   : > { %13772 = vmatprep.mubr.msk.f32.mxu1 %vm15866_vm1, %v15867_v36  ;;  %13805 = vmatprep.mubr.msk.f32.mxu0 %vm15866_vm1, %v15867_v36 }
 0x187   : > { %15051 = vmatpush3.bf16.msra.mxu1 %v15050_v52  ;;  %15069 = vmatpush3.bf16.msra.mxu0 %v15068_v53  ;;  %v3956_v53 = vand.u32 4294901760, %v3955_v48 }
 0x188   : > { %15052 = vmatprep.subr.bf16.mxu1 %v15865_v30  ;;  %15070 = vmatprep.subr.bf16.mxu0 %v15865_v30 }
 0x18a   : > { %13773 = vmatmul.mubr.f32.vlgmr.msra.gmra.mrb[2].mxu1 %v16077_v61  ;;  %13806 = vmatmul.mubr.f32.vlgmr.msra.gmra.mrb[2].mxu0 %v16077_v61 }
 0x18b   : > { %15054 = vmatpush3.bf16.msra.mxu1 %v16097_v5  ;;  %15072 = vmatpush3.bf16.msra.mxu0 %v15071_v54  ;;  %v2892_v5 = vand.u32 4294901760, %v13020_v0  ;;  %v3962_v54 = vsub.f32 %v3960_v43, %v3961_v49 }
 0x18c   : > { %15055 = vmatprep.subr.bf16.mxu1 %v15865_v30  ;;  %15073 = vmatprep.subr.bf16.mxu0 %v15865_v30 }
 0x18d   : > { %13783 = vmatprep.mubr.msk.f32.mxu1 %vm15866_vm1, %v15867_v36  ;;  %13816 = vmatprep.mubr.msk.f32.mxu0 %vm15866_vm1, %v15867_v36  ;;  %v2980_v7 = vsub.f32 %v13020_v0, %v2892_v5  ;;  %v15098_v17 = vpack.c.bf16 %v2895_v6, %v2892_v5  ;;  %v3963_v57 = vand.u32 4294901760, %v3962_v54  ;;  %v13022_v54 = vld [vmem:[%s17388_s4 + $0x20] sm:$0xff] }
 0x18f   : > { %15057 = vmatpush3.bf16.msra.mxu1 %v16112_v11  ;;  %15075 = vmatpush3.bf16.msra.mxu0 %v15074_v55  ;;  %v2974_v11 = vand.u32 4294901760, %v2973_v4  ;;  %v2981_v15 = vand.u32 4294901760, %v2980_v7  ;;  %v15110_v27 = vpack.c.bf16 %v2987_v8, %v2980_v7 }
 0x190   : > { %15076 = vmatprep.subr.bf16.mxu0 %v15865_v30  ;;  %13852 = vmatprep.subr.mxu1 %v15867_v36 }
 0x191   : > { %v2975_v14 = vsub.f32 %v2973_v4, %v2974_v11  ;;  %v2982_v20 = vsub.f32 %v2980_v7, %v2981_v15  ;;  %v15119_v28 = vpack.c.bf16 %v2974_v11, %v2967_v9  ;;  %v15122_v32 = vpack.c.bf16 %v2988_v16, %v2981_v15 }
 0x192   : > { %13784 = vmatmul.mubr.f32.vlgmr.msra.gmra.mrb[2].mxu1 %v16077_v61  ;;  %13817 = vmatmul.mubr.f32.vlgmr.msra.gmra.mrb[2].mxu0 %v16080_v62 }
 0x193   : > { %15078 = vmatpush3.bf16.msra.mxu0 %v16179_v34  ;;  %13827 = vmatprep.mubr.msk.f32.mxu0 %vm15866_vm1, %v15867_v36  ;;  %v2976_v19 = vand.u32 4294901760, %v2975_v14  ;;  %v2983_v23 = vand.u32 4294901760, %v2982_v20 }
 0x194   : > { %15079 = vmatprep.subr.bf16.mxu0 %v15865_v30  ;;  %13854 = vmatprep.mubr.msk.f32.mxu1 %vm15866_vm1, %v15867_v36 }
 0x195   : > { %v15101_v22 = vpack.c.bf16 %v2976_v19, %v2969_v18  ;;  %v15104_v25 = vpack.c.bf16 %v2990_v24, %v2983_v23 }
 0x197   : > { %15081 = vmatpush3.bf16.msra.mxu0 %v16194_v37 }
 0x198   : > { %15082 = vmatprep.subr.bf16.mxu0 %v15865_v30 }
 0x19a   : > { %13828 = vmatmul.mubr.f32.vlgmr.msra.gmra.mrb[2].mxu0 %v16092_v3 }
 0x19b   : > { %15084 = vmatpush3.bf16.msra.mxu0 %v15083_v56  ;;  %13838 = vmatprep.mubr.msk.f32.mxu0 %vm15866_vm1, %v15867_v36 }
 0x19c   : > { %15085 = vmatprep.subr.bf16.mxu0 %v15865_v30 }
 0x19f   : > { %15087 = vmatpush3.bf16.msra.mxu0 %v15086_v59 }
 0x1a0   : > { %15088 = vmatprep.subr.bf16.mxu0 %v15865_v30 }
 0x1a2   : > { %13839 = vmatmul.mubr.f32.vlgmr.msra.gmra.mrb[2].mxu0 %v16077_v61 }
 0x1a3   : > { %15090 = vmatpush3.bf16.msra.mxu0 %v16179_v34  ;;  %13849 = vmatprep.mubr.msk.f32.mxu0 %vm15866_vm1, %v15867_v36  ;;  %v3946_v34 = vsub.f32 %v13026_v29, %v3866_v33 }
 0x1a4   : > { %15091 = vmatprep.subr.bf16.mxu0 %v15865_v30 }
 0x1a5   : > { %v3947_v44 = vand.u32 4294901760, %v3946_v34  ;;  %v15179_v60 = vpack.c.bf16 %v3953_v40, %v3946_v34 }
 0x1a7   : > { %15093 = vmatpush3.bf16.msra.mxu0 %v16194_v37  ;;  %v3967_v37 = vsub.f32 %v13029_v39, %v3875_v42  ;;  %v3948_v47 = vsub.f32 %v3946_v34, %v3947_v44  ;;  %v15191_v0 = vpack.c.bf16 %v3954_v45, %v3947_v44 }
 0x1a8   : > { %15094 = vmatprep.subr.bf16.mxu0 %v15865_v30 }
 0x1a9   : > { %v3968_v50 = vand.u32 4294901760, %v3967_v37  ;;  %v3949_v52 = vand.u32 4294901760, %v3948_v47  ;;  %v15182_v63 = vpack.c.bf16 %v3967_v37, %v3960_v43 }
 0x1aa   : > { %13850 = vmatmul.mubr.f32.vlgmr.msra.gmra.mrb[2].mxu0 %v16077_v61 }
 0x1ab   : > { %15096 = vmatpush3.bf16.msra.mxu0 %v15095_v12  ;;  %13920 = vmatprep.mubr.msk.f32.mxu0 %vm15866_vm1, %v15867_v36  ;;  %v3969_v55 = vsub.f32 %v3967_v37, %v3968_v50  ;;  %v15173_v56 = vpack.c.bf16 %v3956_v53, %v3949_v52  ;;  %v15194_v1 = vpack.c.bf16 %v3968_v50, %v3961_v49 }
 0x1ac   : > { %15097 = vmatprep.subr.bf16.mxu0 %v15865_v30 }
 0x1ad   : > { %v3970_v58 = vand.u32 4294901760, %v3969_v55  ;;  %v13023_v55 = vld [vmem:[%s17388_s4 + $0x28] sm:$0xff] }
 0x1af   : > { %15099 = vmatpush3.bf16.msra.mxu0 %v15098_v17  ;;  %v15176_v59 = vpack.c.bf16 %v3970_v58, %v3963_v57  ;;  %v3379_v57 = vand.u32 4294901760, %v13023_v55  ;;  %v13024_v58 = vld [vmem:[%s17388_s4 + $0x30] sm:$0xff] }
 0x1b0   : > { %15100 = vmatprep.subr.bf16.mxu0 %v15865_v30 }
 0x1b2   : > { %13921 = vmatmul.mubr.f32.vlgmr.msra.gmra.mrb[4].mxu0 %v16108_v10 }
 0x1b3   : > { %15102 = vmatpush3.bf16.msra.mxu0 %v15101_v22  ;;  %13931 = vmatprep.mubr.msk.f32.mxu0 %vm15866_vm1, %v15867_v36 }
 0x1b4   : > { %15103 = vmatprep.subr.bf16.mxu0 %v15865_v30 }
 0x1b7   : > { %15105 = vmatpush3.bf16.msra.mxu0 %v15104_v25 }
 0x1b8   : > { %15106 = vmatprep.subr.bf16.mxu0 %v15865_v30 }
 0x1ba   : > { %13932 = vmatmul.mubr.f32.vlgmr.msra.gmra.mrb[4].mxu0 %v16077_v61 }
 0x1bb   : > { %15108 = vmatpush3.bf16.msra.mxu0 %v15107_v26  ;;  %13942 = vmatprep.mubr.msk.f32.mxu0 %vm15866_vm1, %v15867_v36 }
 0x1bc   : > { %15109 = vmatprep.subr.bf16.mxu0 %v15865_v30 }
 0x1bf   : > { %15111 = vmatpush3.bf16.msra.mxu0 %v15110_v27 }
 0x1c0   : > { %15112 = vmatprep.subr.bf16.mxu0 %v15865_v30 }
 0x1c2   : > { %13943 = vmatmul.mubr.f32.vlgmr.msra.gmra.mrb[4].mxu0 %v16080_v62 }
 0x1c3   : > { %15114 = vmatpush3.bf16.msra.mxu0 %v15095_v12  ;;  %13953 = vmatprep.mubr.msk.f32.mxu0 %vm15866_vm1, %v15867_v36 }
 0x1c4   : > { %15115 = vmatprep.subr.bf16.mxu0 %v15865_v30 }
 0x1c7   : > { %15117 = vmatpush3.bf16.msra.mxu0 %v15098_v17 }
 0x1c8   : > { %15118 = vmatprep.subr.bf16.mxu0 %v15865_v30 }
 0x1ca   : > { %13954 = vmatmul.mubr.f32.vlgmr.msra.gmra.mrb[4].mxu0 %v16092_v3 }
 0x1cb   : > { %15120 = vmatpush3.bf16.msra.mxu0 %v15119_v28  ;;  %13964 = vmatprep.mubr.msk.f32.mxu0 %vm15866_vm1, %v15867_v36 }
 0x1cc   : > { %15121 = vmatprep.subr.bf16.mxu0 %v15865_v30 }
 0x1cf   : > { %15123 = vmatpush3.bf16.msra.mxu0 %v15122_v32 }
 0x1d0   : > { %15124 = vmatprep.subr.bf16.mxu0 %v15865_v30 }
 0x1d2   : > { %13965 = vmatmul.mubr.f32.vlgmr.msra.gmra.mrb[4].mxu0 %v16077_v61 }
 0x1d3   : > { %15126 = vmatpush3.bf16.msra.mxu0 %v15095_v12  ;;  %13975 = vmatprep.mubr.msk.f32.mxu0 %vm15866_vm1, %v15867_v36 }
 0x1d4   : > { %15127 = vmatprep.subr.bf16.mxu0 %v15865_v30 }
 0x1d7   : > { %15129 = vmatpush3.bf16.msra.mxu0 %v15098_v17 }
 0x1d8   : > { %15166 = vmatprep.subr.bf16.mxu0 %v15865_v30 }
 0x1da   : > { %13976 = vmatmul.mubr.f32.vlgmr.msra.gmra.mrb[4].mxu0 %v16077_v61 }
 0x1db   : > { %15168 = vmatpush3.bf16.msra.mxu0 %v15167_v46  ;;  %14052 = vmatprep.mubr.msk.f32.mxu0 %vm15866_vm1, %v15867_v36 }
 0x1dc   : > { %15169 = vmatprep.subr.bf16.mxu0 %v15865_v30 }
 0x1df   : > { %15171 = vmatpush3.bf16.msra.mxu0 %v15170_v51 }
 0x1e0   : > { %15172 = vmatprep.subr.bf16.mxu0 %v15865_v30 }
 0x1e2   : > { %14053 = vmatmul.mubr.f32.vlgmr.msra.gmra.mrb[6].mxu0 %v16108_v10 }
 0x1e3   : > { %15174 = vmatpush3.bf16.msra.mxu0 %v15173_v56  ;;  %14063 = vmatprep.mubr.msk.f32.mxu0 %vm15866_vm1, %v15867_v36  ;;  %v3376_v56 = vand.u32 4294901760, %v13022_v54 }
 0x1e4   : > { %15175 = vmatprep.subr.bf16.mxu0 %v15865_v30 }
 0x1e7   : > { %15177 = vmatpush3.bf16.msra.mxu0 %v15176_v59  ;;  %v13025_v59 = vld [vmem:[%s17388_s4 + $0x38] sm:$0xff] }
 0x1e8   : > { %15178 = vmatprep.subr.bf16.mxu0 %v15865_v30 }
 0x1ea   : > { %14064 = vmatmul.mubr.f32.vlgmr.msra.gmra.mrb[6].mxu0 %v16077_v61 }
 0x1eb   : > { %15180 = vmatpush3.bf16.msra.mxu0 %v15179_v60  ;;  %14074 = vmatprep.mubr.msk.f32.mxu0 %vm15866_vm1, %v15867_v36  ;;  %v3456_v60 = vsub.f32 %v13022_v54, %v3376_v56 }
 0x1ec   : > { %15181 = vmatprep.subr.bf16.mxu0 %v15865_v30 }
 0x1ef   : > { %15183 = vmatpush3.bf16.msra.mxu0 %v15182_v63  ;;  %v3463_v63 = vsub.f32 %v13023_v55, %v3379_v57 }
 0x1f0   : > { %15184 = vmatprep.subr.bf16.mxu0 %v15865_v30 }
 0x1f2   : > { %14075 = vmatmul.mubr.f32.vlgmr.msra.gmra.mrb[6].mxu0 %v16080_v62 }
 0x1f3   : > { %15186 = vmatpush3.bf16.msra.mxu0 %v15167_v46  ;;  %14085 = vmatprep.mubr.msk.f32.mxu0 %vm15866_vm1, %v15867_v36 }
 0x1f4   : > { %15187 = vmatprep.subr.bf16.mxu0 %v15865_v30 }
 0x1f7   : > { %15189 = vmatpush3.bf16.msra.mxu0 %v15170_v51 }
 0x1f8   : > { %15190 = vmatprep.subr.bf16.mxu0 %v15865_v30 }
 0x1fa   : > { %14086 = vmatmul.mubr.f32.vlgmr.msra.gmra.mrb[6].mxu0 %v16092_v3 }
 0x1fb   : > { %15192 = vmatpush3.bf16.msra.mxu0 %v15191_v0  ;;  %14096 = vmatprep.mubr.msk.f32.mxu0 %vm15866_vm1, %v15867_v36  ;;  %v3382_v0 = vand.u32 4294901760, %v13024_v58 }
 0x1fc   : > { %15193 = vmatprep.subr.bf16.mxu0 %v15865_v30 }
 0x1ff   : > { %15195 = vmatpush3.bf16.msra.mxu0 %v15194_v1  ;;  %v3385_v1 = vand.u32 4294901760, %v13025_v59 }
 0x200   : > { %15196 = vmatprep.subr.bf16.mxu0 %v15865_v30 }
 0x202   : > { %14097 = vmatmul.mubr.f32.vlgmr.msra.gmra.mrb[6].mxu0 %v16077_v61 }
 0x203   : > { %15198 = vmatpush3.bf16.msra.mxu0 %v15167_v46  ;;  %14107 = vmatprep.mubr.msk.f32.mxu0 %vm15866_vm1, %v15867_v36 }
 0x204   : > { %15199 = vmatprep.subr.bf16.mxu0 %v15865_v30 }
 0x207   : > { %15201 = vmatpush3.bf16.msra.mxu0 %v15170_v51 }
 0x208   : > { %14170 = vmatprep.subr.mxu0 %v15867_v36 }
 0x20a   : > { %14108 = vmatmul.mubr.f32.vlgmr.msra.gmra.mrb[6].mxu0 %v16077_v61 }
 0x20b   : > { %14172 = vmatprep.mubr.msk.f32.mxu0 %vm15866_vm1, %v15867_v36 }
 0x235   : > { %v577_v2 = vpop.f32.mrb[0].mxu1 }
 0x236   : > { %v13664_v4 = vpop.f32.mrb[1].mxu1 }
 0x237   : > { %v3477_v4 = vsub.f32 %v13025_v59, %v3385_v1 }
 0x24d   : > { %v983_v5 = vpop.f32.mrb[0].mxu0 }
 0x24e   : > { %v15526_v6 = vadd.f32 %v983_v5, %v577_v2  ;;  %v13719_v7 = vpop.f32.mrb[1].mxu0  ;;  %v3470_v2 = vsub.f32 %v13024_v58, %v3382_v0  ;;  %v3457_v5 = vand.u32 4294901760, %v3456_v60 }
 0x24f   : > { %v15131_v7 = vpack.c.bf16 %v3379_v57, %v3376_v56 }
 0x250   : > { %v1967_v8 = vsel %vm1965_vm2, %v15526_v6, 0  ;;  %v3464_v6 = vand.u32 4294901760, %v3463_v63 }
 0x251   : > { %v2038_v9 = vand.u32 4294901760, %v1967_v8 }
 0x253   : > { %v2039_v11 = vsub.f32 %v1967_v8, %v2038_v9  ;;  %v3458_v8 = vsub.f32 %v3456_v60, %v3457_v5 }
 0x255   : > { %v2040_v12 = vand.u32 4294901760, %v2039_v11 }
 0x257   : > { %v2041_v16 = vsub.f32 %v2039_v11, %v2040_v12 }
 0x259   : > { %v2042_v19 = vand.u32 4294901760, %v2041_v16 }
 0x265   : > { %v1472_v13 = vpop.f32.mrb[2].mxu1 }
 0x266   : > { %v1970_v14 = vsel %vm1965_vm2, %v1472_v13, 0  ;;  %v13785_v15 = vpop.f32.mrb[3].mxu1  ;;  %v15134_v13 = vpack.c.bf16 %v3385_v1, %v3382_v0 }
 0x267   : > { %v1973_v17 = vand.u32 4294901760, %v1970_v14 }
 0x269   : > { %v2050_v18 = vsub.f32 %v1970_v14, %v1973_v17  ;;  %13853 = vmatpush3.xpose.msra.mxu1 %v1973_v17  ;;  %v3459_v14 = vand.u32 4294901760, %v3458_v8 }
 0x26a   : > { %13857 = vmatprep.subr.mxu1 %v15867_v36 }
 0x26b   : > { %v2051_v20 = vand.u32 4294901760, %v2050_v18 }
 0x26c   : > { %13855 = vmatmul.mubr.f32.vlgmr.msra.gmra.mrb[4].mxu1 %v2042_v19 }
 0x26d   : > { %v2052_v21 = vsub.f32 %v2050_v18, %v2051_v20  ;;  %13859 = vmatprep.mubr.msk.f32.mxu1 %vm15866_vm1, %v15867_v36 }
 0x26f   : > { %v2053_v22 = vand.u32 4294901760, %v2052_v21 }
 0x271   : > { %13858 = vmatpush3.xpose.msra.mxu1 %v2053_v22  ;;  %v15143_v22 = vpack.c.bf16 %v3463_v63, %v3456_v60 }
 0x272   : > { %13862 = vmatprep.subr.mxu1 %v15867_v36 }
 0x274   : > { %13860 = vmatmul.mubr.f32.vlgmr.msra.gmra.mrb[4].mxu1 %v2038_v9 }
 0x275   : > { %13863 = vmatpush3.xpose.msra.mxu1 %v2050_v18  ;;  %13864 = vmatprep.mubr.msk.f32.mxu1 %vm15866_vm1, %v15867_v36 }
 0x276   : > { %13867 = vmatprep.subr.mxu1 %v15867_v36 }
 0x27c   : > { %13865 = vmatmul.mubr.f32.vlgmr.msra.gmra.mrb[4].mxu1 %v2039_v11  ;;  %v3471_v11 = vand.u32 4294901760, %v3470_v2 }
 0x27d   : > { %13868 = vmatpush3.xpose.msra.mxu1 %v1973_v17  ;;  %v1961_v23 = vpop.f32.mrb[2].mxu0  ;;  %13869 = vmatprep.mubr.msk.f32.mxu1 %vm15866_vm1, %v15867_v36 }
 0x27e   : > { %v13851_v24 = vpop.f32.mrb[3].mxu0  ;;  %13872 = vmatprep.subr.mxu1 %v15867_v36  ;;  %v2434_v25 = vand.u32 4294901760, %v1961_v23  ;;  %v3472_v16 = vsub.f32 %v3470_v2, %v3471_v11 }
 0x27f   : > { %v15155_v24 = vpack.c.bf16 %v3464_v6, %v3457_v5 }
 0x280   : > { %v2511_v37 = vsub.f32 %v1961_v23, %v2434_v25  ;;  %v3473_v19 = vand.u32 4294901760, %v3472_v16  ;;  %v15146_v23 = vpack.c.bf16 %v3477_v4, %v3470_v2 }
 0x282   : > { %v2512_v47 = vand.u32 4294901760, %v2511_v37 }
 0x284   : > { %13870 = vmatmul.mubr.f32.vlgmr.msra.gmra.mrb[4].mxu1 %v2040_v12  ;;  %v2513_v50 = vsub.f32 %v2511_v37, %v2512_v47  ;;  %v3478_v12 = vand.u32 4294901760, %v3477_v4 }
 0x285   : > { %13873 = vmatpush3.xpose.msra.mxu1 %v2051_v20  ;;  %13874 = vmatprep.mubr.msk.f32.mxu1 %vm15866_vm1, %v15867_v36 }
 0x286   : > { %13877 = vmatprep.subr.mxu1 %v15867_v36  ;;  %v2514_v53 = vand.u32 4294901760, %v2513_v50 }
 0x28c   : > { %13875 = vmatmul.mubr.f32.vlgmr.msra.gmra.mrb[4].mxu1 %v2038_v9 }
 0x28d   : > { %13878 = vmatpush3.xpose.msra.mxu1 %v1973_v17  ;;  %13879 = vmatprep.mubr.msk.f32.mxu1 %vm15866_vm1, %v15867_v36  ;;  %v3479_v17 = vsub.f32 %v3477_v4, %v3478_v12 }
 0x28e   : > { %13882 = vmatprep.subr.mxu1 %v15867_v36 }
 0x28f   : > { %v3480_v20 = vand.u32 4294901760, %v3479_v17 }
 0x291   : > { %v15140_v21 = vpack.c.bf16 %v3480_v20, %v3473_v19 }
 0x294   : > { %13880 = vmatmul.mubr.f32.vlgmr.msra.gmra.mrb[4].mxu1 %v2038_v9  ;;  %v3465_v9 = vsub.f32 %v3463_v63, %v3464_v6 }
 0x295   : > { %13883 = vmatpush3.msra.mxu1 %v2434_v25  ;;  %13884 = vmatprep.mubr.msk.f32.mxu1 %vm15866_vm1, %v15867_v36 }
 0x296   : > { %13887 = vmatprep.subr.mxu1 %v15867_v36  ;;  %v3466_v15 = vand.u32 4294901760, %v3465_v9 }
 0x298   : > { %v15137_v18 = vpack.c.bf16 %v3466_v15, %v3459_v14 }
 0x2ad   : > { %v16386_v26 = vpop.f32.mrb[4].mxu0 }
 0x2ae   : > { %v13977_v27 = vpop.f32.mrb[5].mxu0 }
 0x2dd   : > { %v16388_v28 = vpop.f32.mrb[6].mxu0 }
 0x2de   : > { %v14109_v29 = vpop.f32.mrb[7].mxu0 }
 0x367   : > { %v2414_v31 = vpop.f32.mrb[4].mxu1 }
 0x368   : > { %v2418_v32 = vmul.f32 0.35355338, %v2414_v31  ;;  %v13881_v33 = vpop.f32.mrb[5].mxu1  ;;  %v4351_v31 = vsel %vm1965_vm2, %v16386_v26, 0 }
 0x36a   : > { %v2419_v35 = vsel %vm1965_vm2, %v2418_v32, -inf }
 0x36b   : > { %2420 = vmax.xlane.f32.xlu1 %v2419_v35 }
 0x3f8   : > { %v2421_v38 = vpop.xlane.xlu1 %2420 }
 0x3f9   : > { %v2422_v39 = vsub.f32 %v2418_v32, %v2421_v38  ;;  %v4422_v32 = vand.u32 4294901760, %v4351_v31 }
 0x3fb   : > { %v2423_v34 = vmul.f32 1.442695, %v2422_v39  ;;  %v4423_v33 = vsub.f32 %v4351_v31, %v4422_v32 }
 0x3fd   : > { %15780 = vpow2.f32 %v2423_v34  ;;  %v4424_v35 = vand.u32 4294901760, %v4423_v33 }
 0x3ff   : > { %v4425_v39 = vsub.f32 %v4423_v33, %v4424_v35 }
 0x407   : > { %v15781_v40 = vpop.eup %15780 }
 0x408   : > { %v2425_v41 = vsel %vm1965_vm2, %v15781_v40, 0.0 }
 0x409   : > { %2426 = vadd.xlane.f32.xlu1 %v2425_v41 }
 0x496   : > { %v2427_v42 = vpop.xlane.xlu1 %2426 }
 0x497   : > { %15782 = vrcp.f32 %v2427_v42 }
 0x4a1   : > { %v15783_v43 = vpop.eup %15782 }
 0x4a2   : > { %v2429_v44 = vmul.f32 %v15783_v43, %v15781_v40  ;;  %v4426_v43 = vand.u32 4294901760, %v4425_v39 }
 0x4a4   : > { %v2431_v45 = vsel %vm1965_vm2, %v2429_v44, 0 }
 0x4a5   : > { %v2499_v46 = vand.u32 4294901760, %v2431_v45 }
 0x4a7   : > { %v2500_v48 = vsub.f32 %v2431_v45, %v2499_v46  ;;  %v4818_v45 = vand.u32 4294901760, %v16388_v28 }
 0x4a9   : > { %v2501_v49 = vand.u32 4294901760, %v2500_v48  ;;  %v4895_v57 = vsub.f32 %v16388_v28, %v4818_v45  ;;  %v13030_v28 = vld [vmem:[%s17390_s6 + $0x8] sm:$0xff] }
 0x4ab   : > { %v2502_v51 = vsub.f32 %v2500_v48, %v2501_v49  ;;  %v4896_v63 = vand.u32 4294901760, %v4895_v57 }
 0x4ad   : > { %v2503_v52 = vand.u32 4294901760, %v2502_v51  ;;  %v4897_v2 = vsub.f32 %v4895_v57, %v4896_v63 }
 0x4af   : > { %13885 = vmatmul.mubr.f32.vlgmr.msra.gmra.mrb[6].mxu1 %v2503_v52  ;;  %v4898_v6 = vand.u32 4294901760, %v4897_v2 }
 0x4b0   : > { %13888 = vmatpush3.msra.mxu1 %v2514_v53  ;;  %13889 = vmatprep.mubr.msk.f32.mxu1 %vm15866_vm1, %v15867_v36 }
 0x4b1   : > { %13892 = vmatprep.subr.mxu1 %v15867_v36 }
 0x4b7   : > { %13890 = vmatmul.mubr.f32.vlgmr.msra.gmra.mrb[6].mxu1 %v2499_v46 }
 0x4b8   : > { %13893 = vmatpush3.msra.mxu1 %v2511_v37  ;;  %13894 = vmatprep.mubr.msk.f32.mxu1 %vm15866_vm1, %v15867_v36 }
 0x4b9   : > { %13897 = vmatprep.subr.mxu1 %v15867_v36 }
 0x4bf   : > { %13895 = vmatmul.mubr.f32.vlgmr.msra.gmra.mrb[6].mxu1 %v2500_v48 }
 0x4c0   : > { %13898 = vmatpush3.msra.mxu1 %v2434_v25  ;;  %13899 = vmatprep.mubr.msk.f32.mxu1 %vm15866_vm1, %v15867_v36 }
 0x4c1   : > { %13902 = vmatprep.subr.mxu1 %v15867_v36 }
 0x4c7   : > { %13900 = vmatmul.mubr.f32.vlgmr.msra.gmra.mrb[6].mxu1 %v2501_v49 }
 0x4c8   : > { %13903 = vmatpush3.msra.mxu1 %v2512_v47  ;;  %13904 = vmatprep.mubr.msk.f32.mxu1 %vm15866_vm1, %v15867_v36 }
 0x4c9   : > { %13907 = vmatprep.subr.mxu1 %v15867_v36 }
 0x4cf   : > { %13905 = vmatmul.mubr.f32.vlgmr.msra.gmra.mrb[6].mxu1 %v2499_v46 }
 0x4d0   : > { %13908 = vmatpush3.msra.mxu1 %v2434_v25  ;;  %13909 = vmatprep.mubr.msk.f32.mxu1 %vm15866_vm1, %v15867_v36  ;;  %v15158_v25 = vpack.c.bf16 %v3478_v12, %v3471_v11 }
 0x4d1   : > { %15130 = vmatprep.subr.bf16.mxu1 %v15865_v30 }
 0x4d7   : > { %13910 = vmatmul.mubr.f32.vlgmr.msra.gmra.mrb[6].mxu1 %v2499_v46 }
 0x4d8   : > { %15132 = vmatpush3.bf16.msra.mxu1 %v15131_v7  ;;  %13986 = vmatprep.mubr.msk.f32.mxu1 %vm15866_vm1, %v15867_v36 }
 0x4d9   : > { %15133 = vmatprep.subr.bf16.mxu1 %v15865_v30 }
 0x4dc   : > { %15135 = vmatpush3.bf16.msra.mxu1 %v15134_v13 }
 0x4dd   : > { %15136 = vmatprep.subr.bf16.mxu1 %v15865_v30 }
 0x4df   : > { %13987 = vmatmul.mubr.f32.vlgmr.msra.gmra.mrb[8].mxu1 %v16108_v10 }
 0x4e0   : > { %15138 = vmatpush3.bf16.msra.mxu1 %v15137_v18  ;;  %13997 = vmatprep.mubr.msk.f32.mxu1 %vm15866_vm1, %v15867_v36 }
 0x4e1   : > { %15139 = vmatprep.subr.bf16.mxu1 %v15865_v30 }
 0x4e4   : > { %15141 = vmatpush3.bf16.msra.mxu1 %v15140_v21 }
 0x4e5   : > { %15142 = vmatprep.subr.bf16.mxu1 %v15865_v30 }
 0x4e7   : > { %13998 = vmatmul.mubr.f32.vlgmr.msra.gmra.mrb[8].mxu1 %v16077_v61 }
 0x4e8   : > { %15144 = vmatpush3.bf16.msra.mxu1 %v15143_v22  ;;  %14008 = vmatprep.mubr.msk.f32.mxu1 %vm15866_vm1, %v15867_v36 }
 0x4e9   : > { %15145 = vmatprep.subr.bf16.mxu1 %v15865_v30 }
 0x4ec   : > { %15147 = vmatpush3.bf16.msra.mxu1 %v15146_v23  ;;  %v13035_v23 = vld [vmem:[%s17388_s4 + $0x40] sm:$0xff] }
 0x4ed   : > { %15148 = vmatprep.subr.bf16.mxu1 %v15865_v30 }
 0x4ef   : > { %14009 = vmatmul.mubr.f32.vlgmr.msra.gmra.mrb[8].mxu1 %v16080_v62 }
 0x4f0   : > { %15150 = vmatpush3.bf16.msra.mxu1 %v15131_v7  ;;  %14019 = vmatprep.mubr.msk.f32.mxu1 %vm15866_vm1, %v15867_v36 }
 0x4f1   : > { %15151 = vmatprep.subr.bf16.mxu1 %v15865_v30 }
 0x4f4   : > { %15153 = vmatpush3.bf16.msra.mxu1 %v15134_v13 }
 0x4f5   : > { %15154 = vmatprep.subr.bf16.mxu1 %v15865_v30 }
 0x4f7   : > { %14020 = vmatmul.mubr.f32.vlgmr.msra.gmra.mrb[8].mxu1 %v16092_v3 }
 0x4f8   : > { %15156 = vmatpush3.bf16.msra.mxu1 %v15155_v24  ;;  %14030 = vmatprep.mubr.msk.f32.mxu1 %vm15866_vm1, %v15867_v36  ;;  %v13036_v24 = vld [vmem:[%s17388_s4 + $0x48] sm:$0xff] }
 0x4f9   : > { %15157 = vmatprep.subr.bf16.mxu1 %v15865_v30 }
 0x4fc   : > { %15159 = vmatpush3.bf16.msra.mxu1 %v15158_v25 }
 0x4fd   : > { %15160 = vmatprep.subr.bf16.mxu1 %v15865_v30 }
 0x4ff   : > { %14031 = vmatmul.mubr.f32.vlgmr.msra.gmra.mrb[8].mxu1 %v16077_v61 }
 0x500   : > { %15162 = vmatpush3.bf16.msra.mxu1 %v15131_v7  ;;  %14041 = vmatprep.mubr.msk.f32.mxu1 %vm15866_vm1, %v15867_v36  ;;  %v5269_v7 = vand.u32 4294901760, %v13030_v28 }
 0x501   : > { %15163 = vmatprep.subr.bf16.mxu1 %v15865_v30 }
 0x502   : > { %v5346_v8 = vsub.f32 %v13030_v28, %v5269_v7  ;;  %14171 = vmatpush3.msra.mxu0 %v5269_v7 }
 0x503   : > { %14180 = vmatprep.subr.mxu0 %v15867_v36 }
 0x504   : > { %15165 = vmatpush3.bf16.msra.mxu1 %v15134_v13  ;;  %v5347_v9 = vand.u32 4294901760, %v5346_v8  ;;  %v2879_v13 = vld [vmem:[%s17390_s6] sm:$0xff] }
 0x505   : > { %14110 = vmatprep.subr.mxu1 %v15867_v36  ;;  %v16506_v14 = vand.u32 4294901760, %v2879_v13 }
 0x506   : > { %v5348_v11 = vsub.f32 %v5346_v8, %v5347_v9 }
 0x507   : > { %14042 = vmatmul.mubr.f32.vlgmr.msra.gmra.mrb[8].mxu1 %v16077_v61  ;;  %v16509_v15 = vsub.f32 %v2879_v13, %v16506_v14 }
 0x508   : > { %14112 = vmatprep.mubr.msk.f32.mxu1 %vm15866_vm1, %v15867_v36  ;;  %v5349_v12 = vand.u32 4294901760, %v5348_v11 }
 0x509   : > { %v5796_v20 = vand.u32 4294901760, %v16509_v15 }
 0x5aa   : > { %v16452_v27 = vpop.f32.mrb[6].mxu1 }
 0x5ab   : > { %v13911_v29 = vpop.f32.mrb[7].mxu1  ;;  %v5715_v21 = vsel %vm1965_vm2, %v16452_v27, 0  ;;  %v5797_v27 = vsub.f32 %v16509_v15, %v5796_v20 }
 0x5ac   : > { %v16523_v25 = vand.u32 4294901760, %v5715_v21 }
 0x5ae   : > { %v16538_v39 = vsub.f32 %v5715_v21, %v16523_v25 }
 0x5da   : > { %v3856_v38 = vpop.f32.mrb[8].mxu1 }
 0x5db   : > { %v4354_v34 = vsel %vm1965_vm2, %v3856_v38, 0  ;;  %v14043_v40 = vpop.f32.mrb[9].mxu1  ;;  %v13038_v38 = vld [vmem:[%s17388_s4 + $0x58] sm:$0xff] }
 0x5dc   : > { %v4357_v41 = vand.u32 4294901760, %v4354_v34  ;;  %v5798_v40 = vand.u32 4294901760, %v5797_v27 }
 0x5de   : > { %v4434_v42 = vsub.f32 %v4354_v34, %v4357_v41  ;;  %14111 = vmatpush3.xpose.msra.mxu1 %v4357_v41 }
 0x5df   : > { %14115 = vmatprep.subr.mxu1 %v15867_v36 }
 0x5e0   : > { %v4435_v37 = vand.u32 4294901760, %v4434_v42 }
 0x5e1   : > { %14113 = vmatmul.mubr.f32.vlgmr.msra.gmra.mrb[10].mxu1 %v4426_v43 }
 0x5e2   : > { %v4436_v44 = vsub.f32 %v4434_v42, %v4435_v37  ;;  %14117 = vmatprep.mubr.msk.f32.mxu1 %vm15866_vm1, %v15867_v36 }
 0x5e4   : > { %v4437_v26 = vand.u32 4294901760, %v4436_v44  ;;  %v5785_v44 = vand.u32 4294901760, %v16538_v39 }
 0x5e6   : > { %14116 = vmatpush3.xpose.msra.mxu1 %v4437_v26  ;;  %v13031_v26 = vld [vmem:[%s17387_s3 + $0x40] sm:$0xff] }
 0x5e7   : > { %14120 = vmatprep.subr.mxu1 %v15867_v36 }
 0x5e9   : > { %14118 = vmatmul.mubr.f32.vlgmr.msra.gmra.mrb[10].mxu1 %v4422_v32 }
 0x5ea   : > { %14121 = vmatpush3.xpose.msra.mxu1 %v4434_v42  ;;  %14122 = vmatprep.mubr.msk.f32.mxu1 %vm15866_vm1, %v15867_v36 }
 0x5eb   : > { %14125 = vmatprep.subr.mxu1 %v15867_v36 }
 0x5f1   : > { %14123 = vmatmul.mubr.f32.vlgmr.msra.gmra.mrb[10].mxu1 %v4423_v33  ;;  %v6662_v33 = vand.u32 4294901760, %v13036_v24 }
 0x5f2   : > { %14126 = vmatpush3.xpose.msra.mxu1 %v4357_v41  ;;  %14127 = vmatprep.mubr.msk.f32.mxu1 %vm15866_vm1, %v15867_v36 }
 0x5f3   : > { %14130 = vmatprep.subr.mxu1 %v15867_v36  ;;  %v16543_v42 = vsub.f32 %v13036_v24, %v6662_v33 }
 0x5f9   : > { %14128 = vmatmul.mubr.f32.vlgmr.msra.gmra.mrb[10].mxu1 %v4424_v35  ;;  %v13037_v35 = vld [vmem:[%s17388_s4 + $0x50] sm:$0xff] }
 0x5fa   : > { %14131 = vmatpush3.xpose.msra.mxu1 %v4435_v37  ;;  %14132 = vmatprep.mubr.msk.f32.mxu1 %vm15866_vm1, %v15867_v36  ;;  %v6665_v43 = vand.u32 4294901760, %v13037_v35  ;;  %v6668_v37 = vand.u32 4294901760, %v13038_v38 }
 0x5fb   : > { %14135 = vmatprep.subr.mxu1 %v15867_v36 }
 0x601   : > { %14133 = vmatmul.mubr.f32.vlgmr.msra.gmra.mrb[10].mxu1 %v4422_v32 }
 0x602   : > { %14136 = vmatpush3.xpose.msra.mxu1 %v4357_v41  ;;  %14137 = vmatprep.mubr.msk.f32.mxu1 %vm15866_vm1, %v15867_v36 }
 0x603   : > { %14140 = vmatprep.subr.mxu1 %v15867_v36 }
 0x609   : > { %14138 = vmatmul.mubr.f32.vlgmr.msra.gmra.mrb[10].mxu1 %v4422_v32  ;;  %v6659_v32 = vand.u32 4294901760, %v13035_v23 }
 0x60a   : > { %14141 = vmatpush3.msra.mxu1 %v4818_v45  ;;  %14142 = vmatprep.mubr.msk.f32.mxu1 %vm15866_vm1, %v15867_v36 }
 0x60b   : > { %14145 = vmatprep.subr.mxu1 %v15867_v36  ;;  %v16541_v41 = vsub.f32 %v13035_v23, %v6659_v32 }
 0x6dc   : > { %v4798_v46 = vpop.f32.mrb[10].mxu1 }
 0x6dd   : > { %v4802_v47 = vmul.f32 0.35355338, %v4798_v46  ;;  %v14139_v48 = vpop.f32.mrb[11].mxu1  ;;  %v16559_v46 = vsub.f32 %v13037_v35, %v6665_v43 }
 0x6de   : > { %v6740_v48 = vand.u32 4294901760, %v16541_v41 }
 0x6df   : > { %v4803_v49 = vsel %vm1965_vm2, %v4802_v47, -inf }
 0x6e0   : > { %4804 = vmax.xlane.f32.xlu0 %v4803_v49  ;;  %v6747_v49 = vand.u32 4294901760, %v16543_v42 }
 0x76d   : > { %v4805_v50 = vpop.xlane.xlu0 %4804 }
 0x76e   : > { %v4806_v51 = vsub.f32 %v4802_v47, %v4805_v50  ;;  %v16561_v47 = vsub.f32 %v13038_v38, %v6668_v37  ;;  %v6169_v50 = vand.u32 4294901760, %v13031_v26 }
 0x770   : > { %v4807_v52 = vmul.f32 1.442695, %v4806_v51  ;;  %v15254_v38 = vpack.c.bf16 %v16561_v47, %v16559_v46 }
 0x772   : > { %15784 = vpow2.f32 %v4807_v52  ;;  %v5786_v52 = vsub.f32 %v16538_v39, %v5785_v44 }
 0x774   : > { %v5787_v2 = vand.u32 4294901760, %v5786_v52 }
 0x77c   : > { %v15785_v53 = vpop.eup %15784 }
 0x77d   : > { %v4809_v54 = vsel %vm1965_vm2, %v15785_v53, 0.0 }
 0x77e   : > { %4810 = vadd.xlane.f32.xlu1 %v4809_v54  ;;  %v13034_v54 = vld [vmem:[%s17387_s3 + $0x58] sm:$0xff] }
 0x80b   : > { %v4811_v55 = vpop.xlane.xlu1 %4810 }
 0x80c   : > { %15786 = vrcp.f32 %v4811_v55  ;;  %v16579_v55 = vpack.c.bf16 %v6662_v33, %v6659_v32 }
 0x816   : > { %v15787_v56 = vpop.eup %15786 }
 0x817   : > { %v4813_v58 = vmul.f32 %v15787_v56, %v15785_v53  ;;  %v13033_v53 = vld [vmem:[%s17387_s3 + $0x50] sm:$0xff]  ;;  %v6741_v56 = vsub.f32 %v16541_v41, %v6740_v48 }
 0x819   : > { %v4815_v59 = vsel %vm1965_vm2, %v4813_v58, 0  ;;  %v6754_v58 = vand.u32 4294901760, %v16559_v46 }
 0x81a   : > { %v4883_v60 = vand.u32 4294901760, %v4815_v59 }
 0x81b   : > { %v6755_v28 = vsub.f32 %v16559_v46, %v6754_v58  ;;  %v13041_v46 = vld [vmem:[%s17389_s5 + $0x50] sm:$0xff] }
 0x81c   : > { %v4884_v0 = vsub.f32 %v4815_v59, %v4883_v60  ;;  %v6761_v59 = vand.u32 4294901760, %v16561_v47 }
 0x81e   : > { %v4885_v1 = vand.u32 4294901760, %v4884_v0 }
 0x820   : > { %v4886_v4 = vsub.f32 %v4884_v0, %v4885_v1 }
 0x822   : > { %v4887_v5 = vand.u32 4294901760, %v4886_v4  ;;  %v16601_v4 = vpack.c.bf16 %v6668_v37, %v6665_v43  ;;  %v15266_v43 = vpack.c.bf16 %v6761_v59, %v6754_v58  ;;  %v13040_v37 = vld [vmem:[%s17389_s5 + $0x48] sm:$0xff] }
 0x824   : > { %14143 = vmatmul.mubr.f32.vlgmr.msra.gmra.mrb[12].mxu1 %v4887_v5  ;;  %v6742_v5 = vand.u32 4294901760, %v6741_v56 }
 0x825   : > { %14146 = vmatpush3.msra.mxu1 %v4898_v6  ;;  %14147 = vmatprep.mubr.msk.f32.mxu1 %vm15866_vm1, %v15867_v36 }
 0x826   : > { %14150 = vmatprep.subr.mxu1 %v15867_v36 }
 0x82c   : > { %14148 = vmatmul.mubr.f32.vlgmr.msra.gmra.mrb[12].mxu1 %v4883_v60 }
 0x82d   : > { %14151 = vmatpush3.msra.mxu1 %v4895_v57  ;;  %14152 = vmatprep.mubr.msk.f32.mxu1 %vm15866_vm1, %v15867_v36  ;;  %v6748_v57 = vsub.f32 %v16543_v42, %v6747_v49 }
 0x82e   : > { %14155 = vmatprep.subr.mxu1 %v15867_v36 }
 0x82f   : > { %v6749_v6 = vand.u32 4294901760, %v6748_v57 }
 0x834   : > { %14153 = vmatmul.mubr.f32.vlgmr.msra.gmra.mrb[12].mxu1 %v4884_v0  ;;  %v6175_v0 = vand.u32 4294901760, %v13033_v53 }
 0x835   : > { %14156 = vmatpush3.msra.mxu1 %v4818_v45  ;;  %14157 = vmatprep.mubr.msk.f32.mxu1 %vm15866_vm1, %v15867_v36 }
 0x836   : > { %14160 = vmatprep.subr.mxu1 %v15867_v36 }
 0x83c   : > { %14158 = vmatmul.mubr.f32.vlgmr.msra.gmra.mrb[12].mxu1 %v4885_v1  ;;  %v6178_v1 = vand.u32 4294901760, %v13034_v54 }
 0x83d   : > { %14161 = vmatpush3.msra.mxu1 %v4896_v63  ;;  %14162 = vmatprep.mubr.msk.f32.mxu1 %vm15866_vm1, %v15867_v36 }
 0x83e   : > { %14165 = vmatprep.subr.mxu1 %v15867_v36 }
 0x844   : > { %14163 = vmatmul.mubr.f32.vlgmr.msra.gmra.mrb[12].mxu1 %v4883_v60 }
 0x845   : > { %14166 = vmatpush3.msra.mxu1 %v4818_v45  ;;  %14167 = vmatprep.mubr.msk.f32.mxu1 %vm15866_vm1, %v15867_v36  ;;  %v13032_v45 = vld [vmem:[%s17387_s3 + $0x48] sm:$0xff] }
 0x846   : > { %14175 = vmatprep.subr.mxu1 %v15867_v36  ;;  %v6172_v51 = vand.u32 4294901760, %v13032_v45 }
 0x848   : > { %v16593_v63 = vsub.f32 %v13032_v45, %v6172_v51  ;;  %v16625_v13 = vpack.c.bf16 %v6172_v51, %v6169_v50  ;;  %v7152_v45 = vand.u32 4294901760, %v13040_v37 }
 0x84c   : > { %14168 = vmatmul.mubr.f32.vlgmr.msra.gmra.mrb[12].mxu1 %v4883_v60  ;;  %v16591_v60 = vsub.f32 %v13031_v26, %v6169_v50  ;;  %v7155_v50 = vand.u32 4294901760, %v13041_v46 }
 0x84d   : > { %14177 = vmatprep.mubr.msk.f32.mxu1 %vm15866_vm1, %v15867_v36  ;;  %14176 = vmatpush3.msra.mxu1 %v5349_v12  ;;  %v6257_v12 = vand.u32 4294901760, %v16593_v63 }
 0x84e   : > { %14185 = vmatprep.subr.mxu1 %v15867_v36  ;;  %v6250_v11 = vand.u32 4294901760, %v16591_v60  ;;  %v7243_v52 = vsub.f32 %v13041_v46, %v7155_v50 }
 0x91f   : > { %v5259_v16 = vpop.f32.mrb[12].mxu1 }
 0x920   : > { %v5266_v17 = vsel %vm1965_vm2, %v5259_v16, 0  ;;  %v14169_v18 = vpop.f32.mrb[13].mxu1  ;;  %v6756_v16 = vand.u32 4294901760, %v6755_v28 }
 0x921   : > { %v5334_v19 = vand.u32 4294901760, %v5266_v17  ;;  %v6251_v18 = vsub.f32 %v16591_v60, %v6250_v11 }
 0x923   : > { %v5335_v22 = vsub.f32 %v5266_v17, %v5334_v19  ;;  %14178 = vmatmul.mubr.f32.vlgmr.msra.gmra.mrb[14].mxu1 %v5334_v19  ;;  %v6252_v23 = vand.u32 4294901760, %v6251_v18 }
 0x924   : > { %14186 = vmatpush3.msra.mxu1 %v5269_v7  ;;  %14187 = vmatprep.mubr.msk.f32.mxu1 %vm15866_vm1, %v15867_v36 }
 0x925   : > { %v5336_v29 = vand.u32 4294901760, %v5335_v22  ;;  %14195 = vmatprep.subr.mxu1 %v15867_v36 }
 0x927   : > { %v5337_v31 = vsub.f32 %v5335_v22, %v5336_v29  ;;  %14188 = vmatmul.mubr.f32.vlgmr.msra.gmra.mrb[16].mxu1 %v5336_v29 }
 0x928   : > { %14196 = vmatpush3.msra.mxu1 %v5269_v7  ;;  %14197 = vmatprep.mubr.msk.f32.mxu1 %vm15866_vm1, %v15867_v36  ;;  %v6762_v7 = vsub.f32 %v16561_v47, %v6761_v59  ;;  %v13042_v47 = vld [vmem:[%s17389_s5 + $0x58] sm:$0xff]  ;;  %v7244_v59 = vand.u32 4294901760, %v7243_v52 }
 0x929   : > { %v5338_v34 = vand.u32 4294901760, %v5337_v31  ;;  %14205 = vmatprep.subr.mxu1 %v15867_v36  ;;  %v15251_v31 = vpack.c.bf16 %v16543_v42, %v16541_v41  ;;  %v15227_v41 = vpack.c.bf16 %v6257_v12, %v6250_v11  ;;  %v13039_v42 = vld [vmem:[%s17389_s5 + $0x40] sm:$0xff]  ;;  %v7158_v51 = vand.u32 4294901760, %v13042_v47 }
 0x92a   : > { %v6763_v17 = vand.u32 4294901760, %v6762_v7  ;;  %v7149_v26 = vand.u32 4294901760, %v13039_v42 }
 0x92b   : > { %14173 = vmatmul.mubr.f32.vlgmr.msra.gmra.mrb[8].mxu0 %v5338_v34  ;;  %14198 = vmatmul.mubr.f32.vlgmr.msra.gmra.mrb[18].mxu1 %v5334_v19 }
 0x92c   : > { %14181 = vmatpush3.msra.mxu0 %v5346_v8  ;;  %14182 = vmatprep.mubr.msk.f32.mxu0 %vm15866_vm1, %v15867_v36  ;;  %v16612_v8 = vsub.f32 %v13033_v53, %v6175_v0  ;;  %v7250_v53 = vsub.f32 %v13042_v47, %v7158_v51  ;;  %v15275_v56 = vpack.c.bf16 %v7152_v45, %v7149_v26 }
 0x92d   : > { %14206 = vmatpush3.msra.mxu1 %v5798_v40  ;;  %14207 = vmatprep.mubr.msk.f32.mxu1 %vm15866_vm1, %v15867_v36  ;;  %v15263_v40 = vpack.c.bf16 %v6747_v49, %v6740_v48  ;;  %v7229_v48 = vsub.f32 %v13039_v42, %v7149_v26  ;;  %v7236_v49 = vsub.f32 %v13040_v37, %v7152_v45 }
 0x92e   : > { %14190 = vmatprep.subr.mxu0 %v15867_v36  ;;  %14215 = vmatprep.subr.mxu1 %v15867_v36  ;;  %v6264_v21 = vand.u32 4294901760, %v16612_v8 }
 0x92f   : > { %14183 = vmatmul.mubr.f32.vlgmr.msra.gmra.mrb[10].mxu0 %v5335_v22  ;;  %14208 = vmatmul.mubr.f32.vlgmr.msra.gmra.mrb[20].mxu1 %v16523_v25 }
 0x930   : > { %14191 = vmatpush3.msra.mxu0 %v5347_v9  ;;  %14192 = vmatprep.mubr.msk.f32.mxu0 %vm15866_vm1, %v15867_v36  ;;  %v16614_v9 = vsub.f32 %v13034_v54, %v6178_v1  ;;  %v6265_v29 = vsub.f32 %v16612_v8, %v6264_v21  ;;  %v7230_v54 = vand.u32 4294901760, %v7229_v48 }
 0x931   : > { %14216 = vmatpush3.msra.mxu1 %v16506_v14  ;;  %14217 = vmatprep.mubr.msk.f32.mxu1 %vm15866_vm1, %v15867_v36 }
 0x932   : > { %14225 = vmatprep.subr.mxu1 %v15867_v36  ;;  %14200 = vmatprep.subr.mxu0 %v15867_v36  ;;  %v6271_v22 = vand.u32 4294901760, %v16614_v9  ;;  %v6266_v32 = vand.u32 4294901760, %v6265_v29  ;;  %v15218_v34 = vpack.c.bf16 %v16614_v9, %v16612_v8  ;;  %v7231_v57 = vsub.f32 %v7229_v48, %v7230_v54 }
 0x933   : > { %14193 = vmatmul.mubr.f32.vlgmr.msra.gmra.mrb[12].mxu0 %v5334_v19  ;;  %14218 = vmatmul.mubr.f32.vlgmr.msra.gmra.mrb[22].mxu1 %v5785_v44  ;;  %v6258_v19 = vsub.f32 %v16593_v63, %v6257_v12  ;;  %v15287_v8 = vpack.c.bf16 %v7236_v49, %v7229_v48 }
 0x934   : > { %14226 = vmatpush3.msra.mxu1 %v16506_v14  ;;  %14201 = vmatpush3.msra.mxu0 %v16506_v14  ;;  %v15245_v14 = vpack.c.bf16 %v6749_v6, %v6742_v5  ;;  %v6272_v27 = vsub.f32 %v16614_v9, %v6271_v22  ;;  %v15230_v44 = vpack.c.bf16 %v6271_v22, %v6264_v21 }
 0x935   : > { %14202 = vmatprep.mubr.msk.f32.mxu0 %vm15866_vm1, %v15867_v36  ;;  %14227 = vmatprep.mubr.msk.f32.mxu1 %vm15866_vm1, %v15867_v36  ;;  %v6259_v24 = vand.u32 4294901760, %v6258_v19  ;;  %v15290_v9 = vpack.c.bf16 %v7250_v53, %v7243_v52 }
 0x936   : > { %15238 = vmatprep.subr.bf16.mxu1 %v15865_v30  ;;  %14210 = vmatprep.subr.mxu0 %v15867_v36  ;;  %v6273_v33 = vand.u32 4294901760, %v6272_v27 }
 0x937   : > { %14203 = vmatmul.mubr.f32.vlgmr.msra.gmra.mrb[14].mxu0 %v5787_v2  ;;  %14228 = vmatmul.mubr.f32.vlgmr.msra.gmra.mrb[24].mxu1 %v16523_v25  ;;  %v7245_v2 = vsub.f32 %v7243_v52, %v7244_v59 }
 0x938   : > { %15240 = vmatpush3.bf16.msra.mxu1 %v16579_v55  ;;  %14211 = vmatpush3.msra.mxu0 %v16509_v15  ;;  %v16644_v15 = vpack.c.bf16 %v6178_v1, %v6175_v0  ;;  %v15212_v35 = vpack.c.bf16 %v6273_v33, %v6266_v32  ;;  %v7232_v0 = vand.u32 4294901760, %v7231_v57 }
 0x939   : > { %14212 = vmatprep.mubr.msk.f32.mxu0 %vm15866_vm1, %v15867_v36  ;;  %15241 = vmatprep.subr.bf16.mxu1 %v15865_v30  ;;  %v7246_v6 = vand.u32 4294901760, %v7245_v2 }
 0x93a   : > { %14220 = vmatprep.subr.mxu0 %v15867_v36  ;;  %14304 = vmatprep.mubr.msk.f32.mxu1 %vm15866_vm1, %v15867_v36 }
 0x93b   : > { %14213 = vmatmul.mubr.f32.vlgmr.msra.gmra.mrb[16].mxu0 %v16538_v39  ;;  %v15215_v39 = vpack.c.bf16 %v16593_v63, %v16591_v60  ;;  %v7251_v60 = vand.u32 4294901760, %v7250_v53  ;;  %v15278_v63 = vpack.c.bf16 %v7158_v51, %v7155_v50 }
 0x93c   : > { %15243 = vmatpush3.bf16.msra.mxu1 %v16601_v4  ;;  %14221 = vmatpush3.msra.mxu0 %v5796_v20  ;;  %v15248_v20 = vpack.c.bf16 %v6763_v17, %v6756_v16 }
 0x93d   : > { %14222 = vmatprep.mubr.msk.f32.mxu0 %vm15866_vm1, %v15867_v36  ;;  %15202 = vmatprep.subr.bf16.mxu0 %v15865_v30  ;;  %v15302_v12 = vpack.c.bf16 %v7251_v60, %v7244_v59 }
 0x93e   : > { %15244 = vmatprep.subr.bf16.mxu1 %v15865_v30 }
 0x93f   : > { %14305 = vmatmul.mubr.f32.vlgmr.msra.gmra.mrb[26].mxu1 %v16108_v10  ;;  %14223 = vmatmul.mubr.f32.vlgmr.msra.gmra.mrb[18].mxu0 %v16523_v25  ;;  %v15209_v25 = vpack.c.bf16 %v6259_v24, %v6252_v23 }
 0x940   : > { %15204 = vmatpush3.bf16.msra.mxu0 %v16625_v13  ;;  %15246 = vmatpush3.bf16.msra.mxu1 %v15245_v14 }
 0x941   : > { %15205 = vmatprep.subr.bf16.mxu0 %v15865_v30  ;;  %15247 = vmatprep.subr.bf16.mxu1 %v15865_v30 }
 0x942   : > { %14238 = vmatprep.mubr.msk.f32.mxu0 %vm15866_vm1, %v15867_v36  ;;  %14315 = vmatprep.mubr.msk.f32.mxu1 %vm15866_vm1, %v15867_v36 }
 0x944   : > { %15207 = vmatpush3.bf16.msra.mxu0 %v16644_v15  ;;  %15249 = vmatpush3.bf16.msra.mxu1 %v15248_v20 }
 0x945   : > { %15208 = vmatprep.subr.bf16.mxu0 %v15865_v30  ;;  %15250 = vmatprep.subr.bf16.mxu1 %v15865_v30 }
 0x947   : > { %14239 = vmatmul.mubr.f32.vlgmr.msra.gmra.mrb[20].mxu0 %v16108_v10  ;;  %14316 = vmatmul.mubr.f32.vlgmr.msra.gmra.mrb[26].mxu1 %v16077_v61 }
 0x948   : > { %15210 = vmatpush3.bf16.msra.mxu0 %v15209_v25  ;;  %15252 = vmatpush3.bf16.msra.mxu1 %v15251_v31 }
 0x949   : > { %15211 = vmatprep.subr.bf16.mxu0 %v15865_v30  ;;  %15253 = vmatprep.subr.bf16.mxu1 %v15865_v30 }
 0x94a   : > { %14249 = vmatprep.mubr.msk.f32.mxu0 %vm15866_vm1, %v15867_v36  ;;  %14326 = vmatprep.mubr.msk.f32.mxu1 %vm15866_vm1, %v15867_v36 }
 0x94c   : > { %15213 = vmatpush3.bf16.msra.mxu0 %v15212_v35  ;;  %15255 = vmatpush3.bf16.msra.mxu1 %v15254_v38 }
 0x94d   : > { %15214 = vmatprep.subr.bf16.mxu0 %v15865_v30  ;;  %15256 = vmatprep.subr.bf16.mxu1 %v15865_v30 }
 0x94f   : > { %14250 = vmatmul.mubr.f32.vlgmr.msra.gmra.mrb[20].mxu0 %v16077_v61  ;;  %14327 = vmatmul.mubr.f32.vlgmr.msra.gmra.mrb[26].mxu1 %v16080_v62 }
 0x950   : > { %15216 = vmatpush3.bf16.msra.mxu0 %v15215_v39  ;;  %15258 = vmatpush3.bf16.msra.mxu1 %v16579_v55 }
 0x951   : > { %15217 = vmatprep.subr.bf16.mxu0 %v15865_v30  ;;  %15259 = vmatprep.subr.bf16.mxu1 %v15865_v30 }
 0x952   : > { %14260 = vmatprep.mubr.msk.f32.mxu0 %vm15866_vm1, %v15867_v36  ;;  %14337 = vmatprep.mubr.msk.f32.mxu1 %vm15866_vm1, %v15867_v36 }
 0x954   : > { %15219 = vmatpush3.bf16.msra.mxu0 %v15218_v34  ;;  %15261 = vmatpush3.bf16.msra.mxu1 %v16601_v4 }
 0x955   : > { %15220 = vmatprep.subr.bf16.mxu0 %v15865_v30  ;;  %15262 = vmatprep.subr.bf16.mxu1 %v15865_v30 }
 0x957   : > { %14261 = vmatmul.mubr.f32.vlgmr.msra.gmra.mrb[20].mxu0 %v16080_v62  ;;  %14338 = vmatmul.mubr.f32.vlgmr.msra.gmra.mrb[26].mxu1 %v16092_v3 }
 0x958   : > { %15222 = vmatpush3.bf16.msra.mxu0 %v16625_v13  ;;  %15264 = vmatpush3.bf16.msra.mxu1 %v15263_v40 }
 0x959   : > { %15223 = vmatprep.subr.bf16.mxu0 %v15865_v30  ;;  %15265 = vmatprep.subr.bf16.mxu1 %v15865_v30 }
 0x95a   : > { %14271 = vmatprep.mubr.msk.f32.mxu0 %vm15866_vm1, %v15867_v36  ;;  %14348 = vmatprep.mubr.msk.f32.mxu1 %vm15866_vm1, %v15867_v36 }
 0x95c   : > { %15225 = vmatpush3.bf16.msra.mxu0 %v16644_v15  ;;  %15267 = vmatpush3.bf16.msra.mxu1 %v15266_v43 }
 0x95d   : > { %15226 = vmatprep.subr.bf16.mxu0 %v15865_v30  ;;  %15268 = vmatprep.subr.bf16.mxu1 %v15865_v30 }
 0x95f   : > { %14272 = vmatmul.mubr.f32.vlgmr.msra.gmra.mrb[20].mxu0 %v16092_v3  ;;  %14349 = vmatmul.mubr.f32.vlgmr.msra.gmra.mrb[26].mxu1 %v16077_v61 }
 0x960   : > { %15228 = vmatpush3.bf16.msra.mxu0 %v15227_v41  ;;  %15270 = vmatpush3.bf16.msra.mxu1 %v16579_v55  ;;  %v7237_v55 = vand.u32 4294901760, %v7236_v49 }
 0x961   : > { %15229 = vmatprep.subr.bf16.mxu0 %v15865_v30  ;;  %15271 = vmatprep.subr.bf16.mxu1 %v15865_v30 }
 0x962   : > { %14282 = vmatprep.mubr.msk.f32.mxu0 %vm15866_vm1, %v15867_v36  ;;  %14359 = vmatprep.mubr.msk.f32.mxu1 %vm15866_vm1, %v15867_v36  ;;  %v7238_v58 = vsub.f32 %v7236_v49, %v7237_v55  ;;  %v15299_v11 = vpack.c.bf16 %v7237_v55, %v7230_v54 }
 0x964   : > { %15231 = vmatpush3.bf16.msra.mxu0 %v15230_v44  ;;  %15273 = vmatpush3.bf16.msra.mxu1 %v16601_v4  ;;  %v7239_v1 = vand.u32 4294901760, %v7238_v58  ;;  %v7252_v4 = vsub.f32 %v7250_v53, %v7251_v60 }
 0x965   : > { %15232 = vmatprep.subr.bf16.mxu0 %v15865_v30  ;;  %14428 = vmatprep.subr.mxu1 %v15867_v36 }
 0x966   : > { %v15281_v5 = vpack.c.bf16 %v7239_v1, %v7232_v0  ;;  %v7253_v28 = vand.u32 4294901760, %v7252_v4 }
 0x967   : > { %14283 = vmatmul.mubr.f32.vlgmr.msra.gmra.mrb[20].mxu0 %v16077_v61  ;;  %14360 = vmatmul.mubr.f32.vlgmr.msra.gmra.mrb[26].mxu1 %v16077_v61 }
 0x968   : > { %15234 = vmatpush3.bf16.msra.mxu0 %v16625_v13  ;;  %14293 = vmatprep.mubr.msk.f32.mxu0 %vm15866_vm1, %v15867_v36  ;;  %v15284_v7 = vpack.c.bf16 %v7253_v28, %v7246_v6 }
 0x969   : > { %15235 = vmatprep.subr.bf16.mxu0 %v15865_v30  ;;  %14430 = vmatprep.mubr.msk.f32.mxu1 %vm15866_vm1, %v15867_v36 }
 0x96c   : > { %15237 = vmatpush3.bf16.msra.mxu0 %v16644_v15 }
 0x96d   : > { %15274 = vmatprep.subr.bf16.mxu0 %v15865_v30 }
 0x96f   : > { %14294 = vmatmul.mubr.f32.vlgmr.msra.gmra.mrb[20].mxu0 %v16077_v61 }
 0x970   : > { %15276 = vmatpush3.bf16.msra.mxu0 %v15275_v56  ;;  %14370 = vmatprep.mubr.msk.f32.mxu0 %vm15866_vm1, %v15867_v36 }
 0x971   : > { %15277 = vmatprep.subr.bf16.mxu0 %v15865_v30 }
 0x974   : > { %15279 = vmatpush3.bf16.msra.mxu0 %v15278_v63 }
 0x975   : > { %15280 = vmatprep.subr.bf16.mxu0 %v15865_v30 }
 0x977   : > { %14371 = vmatmul.mubr.f32.vlgmr.msra.gmra.mrb[22].mxu0 %v16108_v10 }
 0x978   : > { %15282 = vmatpush3.bf16.msra.mxu0 %v15281_v5  ;;  %14381 = vmatprep.mubr.msk.f32.mxu0 %vm15866_vm1, %v15867_v36 }
 0x979   : > { %15283 = vmatprep.subr.bf16.mxu0 %v15865_v30 }
 0x97c   : > { %15285 = vmatpush3.bf16.msra.mxu0 %v15284_v7 }
 0x97d   : > { %15286 = vmatprep.subr.bf16.mxu0 %v15865_v30 }
 0x97f   : > { %14382 = vmatmul.mubr.f32.vlgmr.msra.gmra.mrb[22].mxu0 %v16077_v61 }
 0x980   : > { %15288 = vmatpush3.bf16.msra.mxu0 %v15287_v8  ;;  %14392 = vmatprep.mubr.msk.f32.mxu0 %vm15866_vm1, %v15867_v36 }
 0x981   : > { %15289 = vmatprep.subr.bf16.mxu0 %v15865_v30 }
 0x984   : > { %15291 = vmatpush3.bf16.msra.mxu0 %v15290_v9 }
 0x985   : > { %15292 = vmatprep.subr.bf16.mxu0 %v15865_v30 }
 0x987   : > { %14393 = vmatmul.mubr.f32.vlgmr.msra.gmra.mrb[22].mxu0 %v16080_v62 }
 0x988   : > { %15294 = vmatpush3.bf16.msra.mxu0 %v15275_v56  ;;  %14403 = vmatprep.mubr.msk.f32.mxu0 %vm15866_vm1, %v15867_v36 }
 0x989   : > { %15295 = vmatprep.subr.bf16.mxu0 %v15865_v30 }
 0x98c   : > { %15297 = vmatpush3.bf16.msra.mxu0 %v15278_v63 }
 0x98d   : > { %15298 = vmatprep.subr.bf16.mxu0 %v15865_v30 }
 0x98f   : > { %14404 = vmatmul.mubr.f32.vlgmr.msra.gmra.mrb[22].mxu0 %v16092_v3 }
 0x990   : > { %15300 = vmatpush3.bf16.msra.mxu0 %v15299_v11  ;;  %14414 = vmatprep.mubr.msk.f32.mxu0 %vm15866_vm1, %v15867_v36 }
 0x991   : > { %15301 = vmatprep.subr.bf16.mxu0 %v15865_v30 }
 0x994   : > { %15303 = vmatpush3.bf16.msra.mxu0 %v15302_v12 }
 0x995   : > { %15304 = vmatprep.subr.bf16.mxu0 %v15865_v30 }
 0x997   : > { %14415 = vmatmul.mubr.f32.vlgmr.msra.gmra.mrb[22].mxu0 %v16077_v61 }
 0x998   : > { %15306 = vmatpush3.bf16.msra.mxu0 %v15275_v56  ;;  %14425 = vmatprep.mubr.msk.f32.mxu0 %vm15866_vm1, %v15867_v36 }
 0x999   : > { %15307 = vmatprep.subr.bf16.mxu0 %v15865_v30 }
 0x99c   : > { %15309 = vmatpush3.bf16.msra.mxu0 %v15278_v63 }
 0x99d   : > { %14488 = vmatprep.subr.mxu0 %v15867_v36 }
 0x99f   : > { %14426 = vmatmul.mubr.f32.vlgmr.msra.gmra.mrb[22].mxu0 %v16077_v61 }
 0x9a0   : > { %14490 = vmatprep.mubr.msk.f32.mxu0 %vm15866_vm1, %v15867_v36 }
 0x9f6   : > { %v5416_v13 = vpop.f32.mrb[14].mxu1 }
 0x9f7   : > { %v14179_v14 = vpop.f32.mrb[15].mxu1 }
 0x9fa   : > { %v5564_v16 = vpop.f32.mrb[16].mxu1 }
 0x9fb   : > { %v14189_v17 = vpop.f32.mrb[17].mxu1 }
 0x9fe   : > { %v5340_v18 = vpop.f32.mrb[8].mxu0  ;;  %v5710_v19 = vpop.f32.mrb[18].mxu1 }
 0x9ff   : > { %v5417_v21 = vadd.f32 %v5416_v13, %v5340_v18  ;;  %v14174_v22 = vpop.f32.mrb[9].mxu0  ;;  %v14199_v15 = vpop.f32.mrb[19].mxu1 }
 0xa02   : > { %v5490_v20 = vpop.f32.mrb[10].mxu0  ;;  %v5865_v23 = vpop.f32.mrb[20].mxu1 }
 0xa03   : > { %v5491_v24 = vadd.f32 %v5490_v20, %v5417_v21  ;;  %v14184_v29 = vpop.f32.mrb[11].mxu0  ;;  %v14209_v27 = vpop.f32.mrb[21].mxu1 }
 0xa05   : > { %v5565_v25 = vadd.f32 %v5564_v16, %v5491_v24 }
 0xa06   : > { %v5638_v31 = vpop.f32.mrb[12].mxu0  ;;  %v6013_v32 = vpop.f32.mrb[22].mxu1 }
 0xa07   : > { %v5639_v33 = vadd.f32 %v5638_v31, %v5565_v25  ;;  %v14194_v35 = vpop.f32.mrb[13].mxu0  ;;  %v14219_v38 = vpop.f32.mrb[23].mxu1 }
 0xa08   : > { %v13043_v35 = vld [vmem:[%s17390_s6 + $0x10] sm:$0xff] }
 0xa09   : > { %v5711_v39 = vadd.f32 %v5710_v19, %v5639_v33  ;;  %v8552_v38 = vand.u32 4294901760, %v13043_v35 }
 0xa0a   : > { %v5789_v34 = vpop.f32.mrb[14].mxu0  ;;  %v6159_v40 = vpop.f32.mrb[24].mxu1 }
 0xa0b   : > { %v5790_v43 = vadd.f32 %v5789_v34, %v5711_v39  ;;  %v14204_v41 = vpop.f32.mrb[15].mxu0  ;;  %v14229_v42 = vpop.f32.mrb[25].mxu1  ;;  %v16833_v39 = vsub.f32 %v13043_v35, %v8552_v38  ;;  %14489 = vmatpush3.msra.mxu0 %v8552_v38 }
 0xa0c   : > { %14498 = vmatprep.subr.mxu0 %v15867_v36  ;;  %v13048_v41 = vld [vmem:[%s17388_s4 + $0x60] sm:$0xff]  ;;  %v13049_v42 = vld [vmem:[%s17388_s4 + $0x68] sm:$0xff] }
 0xa0d   : > { %v5866_v37 = vadd.f32 %v5865_v23, %v5790_v43  ;;  %v8630_v34 = vand.u32 4294901760, %v16833_v39 }
 0xa0e   : > { %v5939_v44 = vpop.f32.mrb[16].mxu0 }
 0xa0f   : > { %v5940_v26 = vadd.f32 %v5939_v44, %v5866_v37  ;;  %v14214_v45 = vpop.f32.mrb[17].mxu0  ;;  %v9494_v37 = vand.u32 4294901760, %v13048_v41  ;;  %v9497_v44 = vand.u32 4294901760, %v13049_v42 }
 0xa10   : > { %v13051_v45 = vld [vmem:[%s17388_s4 + $0x78] sm:$0xff] }
 0xa11   : > { %v6014_v46 = vadd.f32 %v6013_v32, %v5940_v26  ;;  %v13050_v26 = vld [vmem:[%s17388_s4 + $0x70] sm:$0xff] }
 0xa12   : > { %v6087_v47 = vpop.f32.mrb[18].mxu0 }
 0xa13   : > { %v6088_v48 = vadd.f32 %v6087_v47, %v6014_v46  ;;  %v14224_v49 = vpop.f32.mrb[19].mxu0  ;;  %v16853_v46 = vsub.f32 %v13048_v41, %v9494_v37 }
 0xa14   : > { %v9500_v49 = vand.u32 4294901760, %v13050_v26 }
 0xa15   : > { %v16787_v50 = vadd.f32 %v6159_v40, %v6088_v48  ;;  %v8631_v40 = vsub.f32 %v16833_v39, %v8630_v34  ;;  %v16855_v48 = vsub.f32 %v13049_v42, %v9497_v44 }
 0xa17   : > { %v8632_v43 = vand.u32 4294901760, %v8631_v40 }
 0xa3a   : > { %v7139_v51 = vpop.f32.mrb[26].mxu1 }
 0xa3b   : > { %v7637_v52 = vsel %vm1965_vm2, %v7139_v51, 0  ;;  %v14361_v53 = vpop.f32.mrb[27].mxu1  ;;  %v9503_v51 = vand.u32 4294901760, %v13051_v45 }
 0xa3c   : > { %v7640_v54 = vand.u32 4294901760, %v7637_v52 }
 0xa3e   : > { %14429 = vmatpush3.xpose.msra.mxu1 %v7640_v54  ;;  %v7717_v55 = vsub.f32 %v7637_v52, %v7640_v54 }
 0xa3f   : > { %14433 = vmatprep.subr.mxu1 %v15867_v36 }
 0xa40   : > { %v7718_v60 = vand.u32 4294901760, %v7717_v55 }
 0xa42   : > { %v6649_v56 = vpop.f32.mrb[20].mxu0  ;;  %v7719_v1 = vsub.f32 %v7717_v55, %v7718_v60 }
 0xa43   : > { %v7634_v57 = vsel %vm1965_vm2, %v6649_v56, 0  ;;  %v14295_v58 = vpop.f32.mrb[21].mxu0  ;;  %v13045_v56 = vld [vmem:[%s17387_s3 + $0x68] sm:$0xff] }
 0xa44   : > { %v7705_v59 = vand.u32 4294901760, %v7634_v57  ;;  %v7720_v5 = vand.u32 4294901760, %v7719_v1  ;;  %v9007_v1 = vand.u32 4294901760, %v13045_v56 }
 0xa46   : > { %v7706_v63 = vsub.f32 %v7634_v57, %v7705_v59  ;;  %v9575_v57 = vand.u32 4294901760, %v16853_v46 }
 0xa48   : > { %v7707_v0 = vand.u32 4294901760, %v7706_v63 }
 0xa4a   : > { %v7708_v2 = vsub.f32 %v7706_v63, %v7707_v0 }
 0xa4c   : > { %v7709_v4 = vand.u32 4294901760, %v7708_v2 }
 0xa4e   : > { %14431 = vmatmul.mubr.f32.vlgmr.msra.gmra.mrb[28].mxu1 %v7709_v4  ;;  %v13046_v4 = vld [vmem:[%s17387_s3 + $0x70] sm:$0xff] }
 0xa4f   : > { %14434 = vmatpush3.xpose.msra.mxu1 %v7720_v5  ;;  %14435 = vmatprep.mubr.msk.f32.mxu1 %vm15866_vm1, %v15867_v36  ;;  %v13047_v5 = vld [vmem:[%s17387_s3 + $0x78] sm:$0xff] }
 0xa50   : > { %14438 = vmatprep.subr.mxu1 %v15867_v36 }
 0xa56   : > { %14436 = vmatmul.mubr.f32.vlgmr.msra.gmra.mrb[28].mxu1 %v7705_v59 }
 0xa57   : > { %14439 = vmatpush3.xpose.msra.mxu1 %v7717_v55  ;;  %14440 = vmatprep.mubr.msk.f32.mxu1 %vm15866_vm1, %v15867_v36  ;;  %v13044_v55 = vld [vmem:[%s17387_s3 + $0x60] sm:$0xff] }
 0xa58   : > { %14443 = vmatprep.subr.mxu1 %v15867_v36 }
 0xa5e   : > { %14441 = vmatmul.mubr.f32.vlgmr.msra.gmra.mrb[28].mxu1 %v7706_v63  ;;  %v9582_v63 = vand.u32 4294901760, %v16855_v48 }
 0xa5f   : > { %14444 = vmatpush3.xpose.msra.mxu1 %v7640_v54  ;;  %14445 = vmatprep.mubr.msk.f32.mxu1 %vm15866_vm1, %v15867_v36 }
 0xa60   : > { %14448 = vmatprep.subr.mxu1 %v15867_v36 }
 0xa66   : > { %14446 = vmatmul.mubr.f32.vlgmr.msra.gmra.mrb[28].mxu1 %v7707_v0  ;;  %v9004_v0 = vand.u32 4294901760, %v13044_v55 }
 0xa67   : > { %14449 = vmatpush3.xpose.msra.mxu1 %v7718_v60  ;;  %14450 = vmatprep.mubr.msk.f32.mxu1 %vm15866_vm1, %v15867_v36  ;;  %v16871_v60 = vsub.f32 %v13051_v45, %v9503_v51 }
 0xa68   : > { %14453 = vmatprep.subr.mxu1 %v15867_v36 }
 0xa6e   : > { %14451 = vmatmul.mubr.f32.vlgmr.msra.gmra.mrb[28].mxu1 %v7705_v59 }
 0xa6f   : > { %14454 = vmatpush3.xpose.msra.mxu1 %v7640_v54  ;;  %14455 = vmatprep.mubr.msk.f32.mxu1 %vm15866_vm1, %v15867_v36 }
 0xa70   : > { %14458 = vmatprep.subr.mxu1 %v15867_v36 }
 0xa72   : > { %v7629_v6 = vpop.f32.mrb[22].mxu0 }
 0xa73   : > { %v8101_v28 = vand.u32 4294901760, %v7629_v6  ;;  %v14427_v7 = vpop.f32.mrb[23].mxu0 }
 0xa75   : > { %v8178_v22 = vsub.f32 %v7629_v6, %v8101_v28  ;;  %v16883_v6 = vpack.c.bf16 %v9497_v44, %v9494_v37 }
 0xa76   : > { %14456 = vmatmul.mubr.f32.vlgmr.msra.gmra.mrb[28].mxu1 %v7705_v59  ;;  %v16869_v59 = vsub.f32 %v13050_v26, %v9500_v49  ;;  %v15359_v26 = vpack.c.bf16 %v16855_v48, %v16853_v46 }
 0xa77   : > { %14459 = vmatpush3.msra.mxu1 %v8101_v28  ;;  %14460 = vmatprep.mubr.msk.f32.mxu1 %vm15866_vm1, %v15867_v36  ;;  %v8179_v24 = vand.u32 4294901760, %v8178_v22 }
 0xa78   : > { %14463 = vmatprep.subr.mxu1 %v15867_v36 }
 0xa79   : > { %v8180_v25 = vsub.f32 %v8178_v22, %v8179_v24 }
 0xa7b   : > { %v8181_v33 = vand.u32 4294901760, %v8180_v25 }
 0xb49   : > { %v8081_v8 = vpop.f32.mrb[28].mxu1 }
 0xb4a   : > { %v8085_v9 = vmul.f32 0.35355338, %v8081_v8  ;;  %v14457_v11 = vpop.f32.mrb[29].mxu1  ;;  %v9583_v8 = vsub.f32 %v16855_v48, %v9582_v63  ;;  %v13052_v48 = vld [vmem:[%s17389_s5 + $0x60] sm:$0xff] }
 0xb4b   : > { %v9596_v11 = vand.u32 4294901760, %v16871_v60 }
 0xb4c   : > { %v8086_v12 = vsel %vm1965_vm2, %v8085_v9, -inf }
 0xb4d   : > { %8087 = vmax.xlane.f32.xlu0 %v8086_v12  ;;  %v16895_v12 = vsub.f32 %v13044_v55, %v9004_v0 }
 0xbda   : > { %v8088_v13 = vpop.xlane.xlu0 %8087 }
 0xbdb   : > { %v8089_v14 = vsub.f32 %v8085_v9, %v8088_v13  ;;  %v9589_v9 = vand.u32 4294901760, %v16869_v59  ;;  %v16897_v13 = vsub.f32 %v13045_v56, %v9007_v1  ;;  %v13053_v56 = vld [vmem:[%s17389_s5 + $0x68] sm:$0xff] }
 0xbdd   : > { %v8090_v16 = vmul.f32 1.442695, %v8089_v14  ;;  %v9010_v14 = vand.u32 4294901760, %v13046_v4  ;;  %v15374_v55 = vpack.c.bf16 %v9596_v11, %v9589_v9 }
 0xbdf   : > { %15788 = vpow2.f32 %v8090_v16  ;;  %v9013_v16 = vand.u32 4294901760, %v13047_v5 }
 0xbe9   : > { %v15789_v17 = vpop.eup %15788 }
 0xbea   : > { %v8092_v18 = vsel %vm1965_vm2, %v15789_v17, 0.0 }
 0xbeb   : > { %8093 = vadd.xlane.f32.xlu1 %v8092_v18  ;;  %v16900_v18 = vpack.c.bf16 %v9503_v51, %v9500_v49  ;;  %v15362_v51 = vpack.c.bf16 %v16871_v60, %v16869_v59 }
 0xc78   : > { %v8094_v19 = vpop.xlane.xlu1 %8093 }
 0xc79   : > { %15790 = vrcp.f32 %v8094_v19 }
 0xc83   : > { %v15791_v21 = vpop.eup %15790 }
 0xc84   : > { %v8096_v15 = vmul.f32 %v15791_v21, %v15789_v17  ;;  %v9584_v21 = vand.u32 4294901760, %v9583_v8 }
 0xc86   : > { %v8098_v20 = vsel %vm1965_vm2, %v8096_v15, 0  ;;  %v9597_v15 = vsub.f32 %v16871_v60, %v9596_v11  ;;  %v13054_v60 = vld [vmem:[%s17389_s5 + $0x70] sm:$0xff] }
 0xc87   : > { %v8166_v23 = vand.u32 4294901760, %v8098_v20 }
 0xc89   : > { %v8167_v29 = vsub.f32 %v8098_v20, %v8166_v23  ;;  %v16911_v20 = vsub.f32 %v13046_v4, %v9010_v14 }
 0xc8b   : > { %v8168_v27 = vand.u32 4294901760, %v8167_v29 }
 0xc8d   : > { %v8169_v31 = vsub.f32 %v8167_v29, %v8168_v27 }
 0xc8f   : > { %v8170_v32 = vand.u32 4294901760, %v8169_v31 }
 0xc91   : > { %14461 = vmatmul.mubr.f32.vlgmr.msra.gmra.mrb[30].mxu1 %v8170_v32  ;;  %v9598_v32 = vand.u32 4294901760, %v9597_v15 }
 0xc92   : > { %14464 = vmatpush3.msra.mxu1 %v8181_v33  ;;  %14465 = vmatprep.mubr.msk.f32.mxu1 %vm15866_vm1, %v15867_v36 }
 0xc93   : > { %14468 = vmatprep.subr.mxu1 %v15867_v36 }
 0xc99   : > { %14466 = vmatmul.mubr.f32.vlgmr.msra.gmra.mrb[30].mxu1 %v8166_v23 }
 0xc9a   : > { %14469 = vmatpush3.msra.mxu1 %v8178_v22  ;;  %14470 = vmatprep.mubr.msk.f32.mxu1 %vm15866_vm1, %v15867_v36  ;;  %v9590_v22 = vsub.f32 %v16869_v59, %v9589_v9  ;;  %v9987_v59 = vand.u32 4294901760, %v13053_v56 }
 0xc9b   : > { %14473 = vmatprep.subr.mxu1 %v15867_v36 }
 0xc9c   : > { %v9591_v31 = vand.u32 4294901760, %v9590_v22 }
 0xca1   : > { %14471 = vmatmul.mubr.f32.vlgmr.msra.gmra.mrb[30].mxu1 %v8167_v29  ;;  %v9092_v29 = vand.u32 4294901760, %v16897_v13 }
 0xca2   : > { %14474 = vmatpush3.msra.mxu1 %v8101_v28  ;;  %14475 = vmatprep.mubr.msk.f32.mxu1 %vm15866_vm1, %v15867_v36 }
 0xca3   : > { %14478 = vmatprep.subr.mxu1 %v15867_v36  ;;  %v9093_v35 = vsub.f32 %v16897_v13, %v9092_v29 }
 0xca5   : > { %v9094_v41 = vand.u32 4294901760, %v9093_v35 }
 0xca9   : > { %14476 = vmatmul.mubr.f32.vlgmr.msra.gmra.mrb[30].mxu1 %v8168_v27  ;;  %v16923_v27 = vpack.c.bf16 %v9007_v1, %v9004_v0  ;;  %v10071_v1 = vsub.f32 %v13053_v56, %v9987_v59 }
 0xcaa   : > { %14479 = vmatpush3.msra.mxu1 %v8179_v24  ;;  %14480 = vmatprep.mubr.msk.f32.mxu1 %vm15866_vm1, %v15867_v36  ;;  %v9085_v24 = vand.u32 4294901760, %v16895_v12 }
 0xcab   : > { %14483 = vmatprep.subr.mxu1 %v15867_v36 }
 0xcac   : > { %v9086_v33 = vsub.f32 %v16895_v12, %v9085_v24 }
 0xcb1   : > { %14481 = vmatmul.mubr.f32.vlgmr.msra.gmra.mrb[30].mxu1 %v8166_v23 }
 0xcb2   : > { %14484 = vmatpush3.msra.mxu1 %v8101_v28  ;;  %14485 = vmatprep.mubr.msk.f32.mxu1 %vm15866_vm1, %v15867_v36  ;;  %v9576_v28 = vsub.f32 %v16853_v46, %v9575_v57  ;;  %v15335_v46 = vpack.c.bf16 %v9092_v29, %v9085_v24 }
 0xcb3   : > { %14493 = vmatprep.subr.mxu1 %v15867_v36 }
 0xcb4   : > { %v9577_v19 = vand.u32 4294901760, %v9576_v28 }
 0xcb6   : > { %v15353_v25 = vpack.c.bf16 %v9584_v21, %v9577_v19 }
 0xcb9   : > { %14486 = vmatmul.mubr.f32.vlgmr.msra.gmra.mrb[30].mxu1 %v8166_v23  ;;  %v16913_v23 = vsub.f32 %v13047_v5, %v9013_v16 }
 0xcba   : > { %14495 = vmatprep.mubr.msk.f32.mxu1 %vm15866_vm1, %v15867_v36  ;;  %14494 = vmatpush3.msra.mxu1 %v8632_v43  ;;  %v9087_v43 = vand.u32 4294901760, %v9086_v33 }
 0xcbb   : > { %14503 = vmatprep.subr.mxu1 %v15867_v36  ;;  %v9106_v40 = vand.u32 4294901760, %v16913_v23 }
 0xcbc   : > { %v15317_v44 = vpack.c.bf16 %v9094_v41, %v9087_v43 }
 0xcbd   : > { %v9107_v37 = vsub.f32 %v16913_v23, %v9106_v40 }
 0xd8c   : > { %v8542_v47 = vpop.f32.mrb[30].mxu1 }
 0xd8d   : > { %v8549_v52 = vsel %vm1965_vm2, %v8542_v47, 0  ;;  %v14487_v53 = vpop.f32.mrb[31].mxu1  ;;  %v9108_v47 = vand.u32 4294901760, %v9107_v37 }
 0xd8e   : > { %v16858_v54 = vand.u32 4294901760, %v8549_v52  ;;  %v15326_v53 = vpack.c.bf16 %v16913_v23, %v16911_v20 }
 0xd90   : > { %v8618_v58 = vsub.f32 %v8549_v52, %v16858_v54  ;;  %14496 = vmatmul.mubr.f32.vlgmr.msra.gmra.mrb[32].mxu1 %v16858_v54  ;;  %v15323_v52 = vpack.c.bf16 %v16897_v13, %v16895_v12 }
 0xd91   : > { %14504 = vmatpush3.msra.mxu1 %v8552_v38  ;;  %14505 = vmatprep.mubr.msk.f32.mxu1 %vm15866_vm1, %v15867_v36 }
 0xd92   : > { %v8619_v2 = vand.u32 4294901760, %v8618_v58  ;;  %14513 = vmatprep.subr.mxu1 %v15867_v36 }
 0xd94   : > { %v8620_v7 = vsub.f32 %v8618_v58, %v8619_v2  ;;  %14506 = vmatmul.mubr.f32.vlgmr.msra.gmra.mrb[34].mxu1 %v8619_v2  ;;  %v9990_v2 = vand.u32 4294901760, %v13054_v60 }
 0xd95   : > { %14514 = vmatpush3.msra.mxu1 %v8552_v38  ;;  %14515 = vmatprep.mubr.msk.f32.mxu1 %vm15866_vm1, %v15867_v36  ;;  %v9099_v38 = vand.u32 4294901760, %v16911_v20 }
 0xd96   : > { %v8621_v17 = vand.u32 4294901760, %v8620_v7  ;;  %15346 = vmatprep.subr.bf16.mxu1 %v15865_v30  ;;  %v10078_v5 = vsub.f32 %v13054_v60, %v9990_v2  ;;  %v10072_v7 = vand.u32 4294901760, %v10071_v1 }
 0xd97   : > { %v9100_v42 = vsub.f32 %v16911_v20, %v9099_v38 }
 0xd98   : > { %14491 = vmatmul.mubr.f32.vlgmr.msra.gmra.mrb[24].mxu0 %v8621_v17  ;;  %14516 = vmatmul.mubr.f32.vlgmr.msra.gmra.mrb[36].mxu1 %v16858_v54  ;;  %v10073_v11 = vsub.f32 %v10071_v1, %v10072_v7  ;;  %v10079_v12 = vand.u32 4294901760, %v10078_v5 }
 0xd99   : > { %15348 = vmatpush3.bf16.msra.mxu1 %v16883_v6  ;;  %14499 = vmatpush3.msra.mxu0 %v16833_v39  ;;  %v16942_v39 = vpack.c.bf16 %v9013_v16, %v9010_v14  ;;  %v9101_v45 = vand.u32 4294901760, %v9100_v42 }
 0xd9a   : > { %14500 = vmatprep.mubr.msk.f32.mxu0 %vm15866_vm1, %v15867_v36  ;;  %15349 = vmatprep.subr.bf16.mxu1 %v15865_v30  ;;  %v10074_v17 = vand.u32 4294901760, %v10073_v11 }
 0xd9b   : > { %14508 = vmatprep.subr.mxu0 %v15867_v36  ;;  %14592 = vmatprep.mubr.msk.f32.mxu1 %vm15866_vm1, %v15867_v36  ;;  %v15320_v49 = vpack.c.bf16 %v9108_v47, %v9101_v45 }
 0xd9c   : > { %14501 = vmatmul.mubr.f32.vlgmr.msra.gmra.mrb[26].mxu0 %v8618_v58  ;;  %v9984_v58 = vand.u32 4294901760, %v13052_v48 }
 0xd9d   : > { %15351 = vmatpush3.bf16.msra.mxu1 %v16900_v18  ;;  %14509 = vmatpush3.msra.mxu0 %v8630_v34  ;;  %v15356_v34 = vpack.c.bf16 %v9598_v32, %v9591_v31 }
 0xd9e   : > { %14510 = vmatprep.mubr.msk.f32.mxu0 %vm15866_vm1, %v15867_v36  ;;  %15310 = vmatprep.subr.bf16.mxu0 %v15865_v30  ;;  %v10064_v0 = vsub.f32 %v13052_v48, %v9984_v58  ;;  %v15383_v8 = vpack.c.bf16 %v9987_v59, %v9984_v58 }
 0xd9f   : > { %15352 = vmatprep.subr.bf16.mxu1 %v15865_v30 }
 0xda0   : > { %14593 = vmatmul.mubr.f32.vlgmr.msra.gmra.mrb[38].mxu1 %v16108_v10  ;;  %14511 = vmatmul.mubr.f32.vlgmr.msra.gmra.mrb[28].mxu0 %v16858_v54  ;;  %v15371_v54 = vpack.c.bf16 %v9582_v63, %v9575_v57  ;;  %v15338_v57 = vpack.c.bf16 %v9106_v40, %v9099_v38  ;;  %v13055_v63 = vld [vmem:[%s17389_s5 + $0x78] sm:$0xff]  ;;  %v10065_v28 = vand.u32 4294901760, %v10064_v0  ;;  %v15395_v23 = vpack.c.bf16 %v10071_v1, %v10064_v0 }
 0xda1   : > { %15312 = vmatpush3.bf16.msra.mxu0 %v16923_v27  ;;  %15354 = vmatpush3.bf16.msra.mxu1 %v15353_v25  ;;  %v9993_v4 = vand.u32 4294901760, %v13055_v63 }
 0xda2   : > { %15313 = vmatprep.subr.bf16.mxu0 %v15865_v30  ;;  %15355 = vmatprep.subr.bf16.mxu1 %v15865_v30  ;;  %v10066_v9 = vsub.f32 %v10064_v0, %v10065_v28 }
 0xda3   : > { %14526 = vmatprep.mubr.msk.f32.mxu0 %vm15866_vm1, %v15867_v36  ;;  %14603 = vmatprep.mubr.msk.f32.mxu1 %vm15866_vm1, %v15867_v36  ;;  %v15386_v14 = vpack.c.bf16 %v9993_v4, %v9990_v2 }
 0xda4   : > { %v10067_v16 = vand.u32 4294901760, %v10066_v9 }
 0xda5   : > { %15315 = vmatpush3.bf16.msra.mxu0 %v16942_v39  ;;  %15357 = vmatpush3.bf16.msra.mxu1 %v15356_v34 }
 0xda6   : > { %15316 = vmatprep.subr.bf16.mxu0 %v15865_v30  ;;  %15358 = vmatprep.subr.bf16.mxu1 %v15865_v30  ;;  %v15389_v21 = vpack.c.bf16 %v10074_v17, %v10067_v16 }
 0xda8   : > { %14527 = vmatmul.mubr.f32.vlgmr.msra.gmra.mrb[30].mxu0 %v16108_v10  ;;  %14604 = vmatmul.mubr.f32.vlgmr.msra.gmra.mrb[38].mxu1 %v16077_v61 }
 0xda9   : > { %15318 = vmatpush3.bf16.msra.mxu0 %v15317_v44  ;;  %15360 = vmatpush3.bf16.msra.mxu1 %v15359_v26 }
 0xdaa   : > { %15319 = vmatprep.subr.bf16.mxu0 %v15865_v30  ;;  %15361 = vmatprep.subr.bf16.mxu1 %v15865_v30 }
 0xdab   : > { %14537 = vmatprep.mubr.msk.f32.mxu0 %vm15866_vm1, %v15867_v36  ;;  %14614 = vmatprep.mubr.msk.f32.mxu1 %vm15866_vm1, %v15867_v36 }
 0xdad   : > { %15321 = vmatpush3.bf16.msra.mxu0 %v15320_v49  ;;  %15363 = vmatpush3.bf16.msra.mxu1 %v15362_v51 }
 0xdae   : > { %15322 = vmatprep.subr.bf16.mxu0 %v15865_v30  ;;  %15364 = vmatprep.subr.bf16.mxu1 %v15865_v30 }
 0xdb0   : > { %14538 = vmatmul.mubr.f32.vlgmr.msra.gmra.mrb[30].mxu0 %v16077_v61  ;;  %14615 = vmatmul.mubr.f32.vlgmr.msra.gmra.mrb[38].mxu1 %v16080_v62 }
 0xdb1   : > { %15324 = vmatpush3.bf16.msra.mxu0 %v15323_v52  ;;  %15366 = vmatpush3.bf16.msra.mxu1 %v16883_v6 }
 0xdb2   : > { %15325 = vmatprep.subr.bf16.mxu0 %v15865_v30  ;;  %15367 = vmatprep.subr.bf16.mxu1 %v15865_v30 }
 0xdb3   : > { %14548 = vmatprep.mubr.msk.f32.mxu0 %vm15866_vm1, %v15867_v36  ;;  %14625 = vmatprep.mubr.msk.f32.mxu1 %vm15866_vm1, %v15867_v36 }
 0xdb5   : > { %15327 = vmatpush3.bf16.msra.mxu0 %v15326_v53  ;;  %15369 = vmatpush3.bf16.msra.mxu1 %v16900_v18 }
 0xdb6   : > { %15328 = vmatprep.subr.bf16.mxu0 %v15865_v30  ;;  %15370 = vmatprep.subr.bf16.mxu1 %v15865_v30 }
 0xdb8   : > { %14549 = vmatmul.mubr.f32.vlgmr.msra.gmra.mrb[30].mxu0 %v16080_v62  ;;  %14626 = vmatmul.mubr.f32.vlgmr.msra.gmra.mrb[38].mxu1 %v16092_v3 }
 0xdb9   : > { %15330 = vmatpush3.bf16.msra.mxu0 %v16923_v27  ;;  %15372 = vmatpush3.bf16.msra.mxu1 %v15371_v54 }
 0xdba   : > { %15331 = vmatprep.subr.bf16.mxu0 %v15865_v30  ;;  %15373 = vmatprep.subr.bf16.mxu1 %v15865_v30 }
 0xdbb   : > { %14559 = vmatprep.mubr.msk.f32.mxu0 %vm15866_vm1, %v15867_v36  ;;  %14636 = vmatprep.mubr.msk.f32.mxu1 %vm15866_vm1, %v15867_v36 }
 0xdbd   : > { %15333 = vmatpush3.bf16.msra.mxu0 %v16942_v39  ;;  %15375 = vmatpush3.bf16.msra.mxu1 %v15374_v55 }
 0xdbe   : > { %15334 = vmatprep.subr.bf16.mxu0 %v15865_v30  ;;  %15376 = vmatprep.subr.bf16.mxu1 %v15865_v30 }
 0xdc0   : > { %14560 = vmatmul.mubr.f32.vlgmr.msra.gmra.mrb[30].mxu0 %v16092_v3  ;;  %14637 = vmatmul.mubr.f32.vlgmr.msra.gmra.mrb[38].mxu1 %v16077_v61 }
 0xdc1   : > { %15336 = vmatpush3.bf16.msra.mxu0 %v15335_v46  ;;  %15378 = vmatpush3.bf16.msra.mxu1 %v16883_v6  ;;  %v10085_v6 = vsub.f32 %v13055_v63, %v9993_v4 }
 0xdc2   : > { %15337 = vmatprep.subr.bf16.mxu0 %v15865_v30  ;;  %15379 = vmatprep.subr.bf16.mxu1 %v15865_v30 }
 0xdc3   : > { %14570 = vmatprep.mubr.msk.f32.mxu0 %vm15866_vm1, %v15867_v36  ;;  %14647 = vmatprep.mubr.msk.f32.mxu1 %vm15866_vm1, %v15867_v36  ;;  %v10086_v13 = vand.u32 4294901760, %v10085_v6  ;;  %v15398_v24 = vpack.c.bf16 %v10085_v6, %v10078_v5 }
 0xdc5   : > { %15339 = vmatpush3.bf16.msra.mxu0 %v15338_v57  ;;  %15381 = vmatpush3.bf16.msra.mxu1 %v16900_v18  ;;  %v10080_v18 = vsub.f32 %v10078_v5, %v10079_v12  ;;  %v10087_v19 = vsub.f32 %v10085_v6, %v10086_v13  ;;  %v15410_v29 = vpack.c.bf16 %v10086_v13, %v10079_v12 }
 0xdc6   : > { %15340 = vmatprep.subr.bf16.mxu0 %v15865_v30  ;;  %14716 = vmatprep.subr.mxu1 %v15867_v36 }
 0xdc7   : > { %v10081_v22 = vand.u32 4294901760, %v10080_v18  ;;  %v10088_v15 = vand.u32 4294901760, %v10087_v19 }
 0xdc8   : > { %14571 = vmatmul.mubr.f32.vlgmr.msra.gmra.mrb[30].mxu0 %v16077_v61  ;;  %14648 = vmatmul.mubr.f32.vlgmr.msra.gmra.mrb[38].mxu1 %v16077_v61 }
 0xdc9   : > { %15342 = vmatpush3.bf16.msra.mxu0 %v16923_v27  ;;  %14581 = vmatprep.mubr.msk.f32.mxu0 %vm15866_vm1, %v15867_v36  ;;  %v15392_v20 = vpack.c.bf16 %v10088_v15, %v10081_v22 }
 0xdca   : > { %15343 = vmatprep.subr.bf16.mxu0 %v15865_v30  ;;  %14718 = vmatprep.mubr.msk.f32.mxu1 %vm15866_vm1, %v15867_v36 }
 0xdcd   : > { %15345 = vmatpush3.bf16.msra.mxu0 %v16942_v39 }
 0xdce   : > { %15382 = vmatprep.subr.bf16.mxu0 %v15865_v30 }
 0xdd0   : > { %14582 = vmatmul.mubr.f32.vlgmr.msra.gmra.mrb[30].mxu0 %v16077_v61 }
 0xdd1   : > { %15384 = vmatpush3.bf16.msra.mxu0 %v15383_v8  ;;  %14658 = vmatprep.mubr.msk.f32.mxu0 %vm15866_vm1, %v15867_v36 }
 0xdd2   : > { %15385 = vmatprep.subr.bf16.mxu0 %v15865_v30 }
 0xdd5   : > { %15387 = vmatpush3.bf16.msra.mxu0 %v15386_v14 }
 0xdd6   : > { %15388 = vmatprep.subr.bf16.mxu0 %v15865_v30 }
 0xdd8   : > { %14659 = vmatmul.mubr.f32.vlgmr.msra.gmra.mrb[32].mxu0 %v16108_v10  ;;  %v15407_v10 = vpack.c.bf16 %v10072_v7, %v10065_v28 }
 0xdd9   : > { %15390 = vmatpush3.bf16.msra.mxu0 %v15389_v21  ;;  %14669 = vmatprep.mubr.msk.f32.mxu0 %vm15866_vm1, %v15867_v36 }
 0xdda   : > { %15391 = vmatprep.subr.bf16.mxu0 %v15865_v30 }
 0xddd   : > { %15393 = vmatpush3.bf16.msra.mxu0 %v15392_v20 }
 0xdde   : > { %15394 = vmatprep.subr.bf16.mxu0 %v15865_v30 }
 0xde0   : > { %14670 = vmatmul.mubr.f32.vlgmr.msra.gmra.mrb[32].mxu0 %v16077_v61 }
 0xde1   : > { %15396 = vmatpush3.bf16.msra.mxu0 %v15395_v23  ;;  %14680 = vmatprep.mubr.msk.f32.mxu0 %vm15866_vm1, %v15867_v36 }
 0xde2   : > { %15397 = vmatprep.subr.bf16.mxu0 %v15865_v30 }
 0xde5   : > { %15399 = vmatpush3.bf16.msra.mxu0 %v15398_v24  ;;  %v13056_v24 = vld [vmem:[%s17390_s6 + $0x18] sm:$0xff] }
 0xde6   : > { %15400 = vmatprep.subr.bf16.mxu0 %v15865_v30 }
 0xde8   : > { %14681 = vmatmul.mubr.f32.vlgmr.msra.gmra.mrb[32].mxu0 %v16080_v62 }
 0xde9   : > { %15402 = vmatpush3.bf16.msra.mxu0 %v15383_v8  ;;  %14691 = vmatprep.mubr.msk.f32.mxu0 %vm15866_vm1, %v15867_v36 }
 0xdea   : > { %15403 = vmatprep.subr.bf16.mxu0 %v15865_v30 }
 0xded   : > { %15405 = vmatpush3.bf16.msra.mxu0 %v15386_v14 }
 0xdee   : > { %15406 = vmatprep.subr.bf16.mxu0 %v15865_v30 }
 0xdf0   : > { %14692 = vmatmul.mubr.f32.vlgmr.msra.gmra.mrb[32].mxu0 %v16092_v3 }
 0xdf1   : > { %15408 = vmatpush3.bf16.msra.mxu0 %v15407_v10  ;;  %14702 = vmatprep.mubr.msk.f32.mxu0 %vm15866_vm1, %v15867_v36  ;;  %v11387_v10 = vand.u32 4294901760, %v13056_v24 }
 0xdf2   : > { %15409 = vmatprep.subr.bf16.mxu0 %v15865_v30 }
 0xdf5   : > { %15411 = vmatpush3.bf16.msra.mxu0 %v15410_v29  ;;  %v11464_v29 = vsub.f32 %v13056_v24, %v11387_v10 }
 0xdf6   : > { %15412 = vmatprep.subr.bf16.mxu0 %v15865_v30 }
 0xdf8   : > { %14703 = vmatmul.mubr.f32.vlgmr.msra.gmra.mrb[32].mxu0 %v16077_v61 }
 0xdf9   : > { %15414 = vmatpush3.bf16.msra.mxu0 %v15383_v8  ;;  %14713 = vmatprep.mubr.msk.f32.mxu0 %vm15866_vm1, %v15867_v36 }
 0xdfa   : > { %15415 = vmatprep.subr.bf16.mxu0 %v15865_v30 }
 0xdfd   : > { %15417 = vmatpush3.bf16.msra.mxu0 %v15386_v14 }
 0xdfe   : > { %14776 = vmatprep.subr.mxu0 %v15867_v36 }
 0xe00   : > { %14714 = vmatmul.mubr.f32.vlgmr.msra.gmra.mrb[32].mxu0 %v16077_v61 }
 0xe01   : > { %14778 = vmatprep.mubr.msk.f32.mxu0 %vm15866_vm1, %v15867_v36  ;;  %14777 = vmatpush3.msra.mxu0 %v11387_v10 }
 0xe02   : > { %14786 = vmatprep.subr.mxu0 %v15867_v36 }
 0xe63   : > { %v8699_v62 = vpop.f32.mrb[32].mxu1 }
 0xe64   : > { %v14497_v3 = vpop.f32.mrb[33].mxu1 }
 0xe67   : > { %v8847_v27 = vpop.f32.mrb[34].mxu1 }
 0xe68   : > { %v14507_v25 = vpop.f32.mrb[35].mxu1 }
 0xe6b   : > { %v8623_v31 = vpop.f32.mrb[24].mxu0  ;;  %v8993_v32 = vpop.f32.mrb[36].mxu1 }
 0xe6c   : > { %v8700_v33 = vadd.f32 %v8699_v62, %v8623_v31  ;;  %v14492_v35 = vpop.f32.mrb[25].mxu0  ;;  %v14517_v38 = vpop.f32.mrb[37].mxu1  ;;  %v11465_v62 = vand.u32 4294901760, %v11464_v29 }
 0xe6e   : > { %v11466_v3 = vsub.f32 %v11464_v29, %v11465_v62 }
 0xe6f   : > { %v8773_v40 = vpop.f32.mrb[26].mxu0 }
 0xe70   : > { %v8774_v39 = vadd.f32 %v8773_v40, %v8700_v33  ;;  %v14502_v34 = vpop.f32.mrb[27].mxu0 }
 0xe72   : > { %v8848_v43 = vadd.f32 %v8847_v27, %v8774_v39  ;;  %v11467_v27 = vand.u32 4294901760, %v11466_v3 }
 0xe73   : > { %v8921_v41 = vpop.f32.mrb[28].mxu0 }
 0xe74   : > { %v8922_v42 = vadd.f32 %v8921_v41, %v8848_v43  ;;  %v14512_v37 = vpop.f32.mrb[29].mxu0 }
 0xe76   : > { %v8994_v61 = vadd.f32 %v8993_v32, %v8922_v42 }
 0xe78   : > { %v17086_v44 = vadd.f32 %v8994_v61, %v16787_v50 }
 0xe9b   : > { %v9974_v26 = vpop.f32.mrb[38].mxu1 }
 0xe9c   : > { %v10472_v45 = vsel %vm1965_vm2, %v9974_v26, 0  ;;  %v14649_v47 = vpop.f32.mrb[39].mxu1 }
 0xe9d   : > { %v10475_v49 = vand.u32 4294901760, %v10472_v45 }
 0xe9f   : > { %14717 = vmatpush3.xpose.msra.mxu1 %v10475_v49  ;;  %v10552_v51 = vsub.f32 %v10472_v45, %v10475_v49 }
 0xea0   : > { %14721 = vmatprep.subr.mxu1 %v15867_v36 }
 0xea1   : > { %v10553_v46 = vand.u32 4294901760, %v10552_v51 }
 0xea3   : > { %v9484_v52 = vpop.f32.mrb[30].mxu0  ;;  %v10554_v57 = vsub.f32 %v10552_v51, %v10553_v46 }
 0xea4   : > { %v10469_v53 = vsel %vm1965_vm2, %v9484_v52, 0  ;;  %v14583_v54 = vpop.f32.mrb[31].mxu0 }
 0xea5   : > { %v10540_v55 = vand.u32 4294901760, %v10469_v53  ;;  %v10555_v59 = vand.u32 4294901760, %v10554_v57 }
 0xea7   : > { %v10541_v48 = vsub.f32 %v10469_v53, %v10540_v55 }
 0xea9   : > { %v10542_v56 = vand.u32 4294901760, %v10541_v48 }
 0xeab   : > { %v10543_v50 = vsub.f32 %v10541_v48, %v10542_v56 }
 0xead   : > { %v10544_v58 = vand.u32 4294901760, %v10543_v50 }
 0xeaf   : > { %14719 = vmatmul.mubr.f32.vlgmr.msra.gmra.mrb[40].mxu1 %v10544_v58  ;;  %v15800_v58 = vld [vmem:[%s15997_s18] sm:$0xff]  ;;  %s12951_s18 = sshll.u32 %s458_s20, 4  ;;  %s17343_s18 = int_to_ptr.vmem [resolvable:$true] %s12951_s18 }
 0xeb0   : > { %14722 = vmatpush3.xpose.msra.mxu1 %v10555_v59  ;;  %14723 = vmatprep.mubr.msk.f32.mxu1 %vm15866_vm1, %v15867_v36  ;;  %s15801_s28 = scalar_lea.vmem %s17343_s18, 128  ;;  %p15808_p0 = scmp.lt.s32.totalorder %s17343_s18, %s15806_s0 }
 0xeb1   : > { %14726 = vmatprep.subr.mxu1 %v15867_v36  ;;  %p15802_p11 = scmp.ne.s32.totalorder %s17343_s18, %s15801_s28  ;;  %p15809_p1 = scmp.lt.s32.totalorder %s15807_s15, %s15801_s28 }
 0xeb3   : > { %p15803_p12 = pnand %p15802_p11, %p15982_p5  ;;  %p15810_p2 = por %p15809_p1, %p15808_p0 }
 0xeb5   : > { %p15804_p13 = pneg %p15803_p12 }
 0xeb7   : > { %14724 = vmatmul.mubr.f32.vlgmr.msra.gmra.mrb[40].mxu1 %v10540_v55  ;;  %p15811_p3 = pnand %p15810_p2, %p15804_p13 }
 0xeb8   : > { %14727 = vmatpush3.xpose.msra.mxu1 %v10552_v51  ;;  %14728 = vmatprep.mubr.msk.f32.mxu1 %vm15866_vm1, %v15867_v36 }
 0xeb9   : > { %14731 = vmatprep.subr.mxu1 %v15867_v36 }
 0xebf   : > { %14729 = vmatmul.mubr.f32.vlgmr.msra.gmra.mrb[40].mxu1 %v10541_v48 }
 0xec0   : > { %14732 = vmatpush3.xpose.msra.mxu1 %v10475_v49  ;;  %14733 = vmatprep.mubr.msk.f32.mxu1 %vm15866_vm1, %v15867_v36 }
 0xec1   : > { %14736 = vmatprep.subr.mxu1 %v15867_v36 }
 0xec7   : > { %14734 = vmatmul.mubr.f32.vlgmr.msra.gmra.mrb[40].mxu1 %v10542_v56  ;;  %v13057_v56 = vld [vmem:[%s17391_s7] ss:$0 sm:$0xff] }
 0xec8   : > { %14737 = vmatpush3.xpose.msra.mxu1 %v10553_v46  ;;  %14738 = vmatprep.mubr.msk.f32.mxu1 %vm15866_vm1, %v15867_v36 }
 0xec9   : > { %14741 = vmatprep.subr.mxu1 %v15867_v36 }
 0xecf   : > { %14739 = vmatmul.mubr.f32.vlgmr.msra.gmra.mrb[40].mxu1 %v10540_v55 }
 0xed0   : > { %14742 = vmatpush3.xpose.msra.mxu1 %v10475_v49  ;;  %14743 = vmatprep.mubr.msk.f32.mxu1 %vm15866_vm1, %v15867_v36 }
 0xed1   : > { %14746 = vmatprep.subr.mxu1 %v15867_v36 }
 0xed3   : > { %v10464_v60 = vpop.f32.mrb[32].mxu0 }
 0xed4   : > { %v10936_v63 = vand.u32 4294901760, %v10464_v60  ;;  %v14715_v0 = vpop.f32.mrb[33].mxu0 }
 0xed6   : > { %v11013_v13 = vsub.f32 %v10464_v60, %v10936_v63 }
 0xed7   : > { %14744 = vmatmul.mubr.f32.vlgmr.msra.gmra.mrb[40].mxu1 %v10540_v55 }
 0xed8   : > { %14747 = vmatpush3.msra.mxu1 %v10936_v63  ;;  %14748 = vmatprep.mubr.msk.f32.mxu1 %vm15866_vm1, %v15867_v36  ;;  %v11014_v18 = vand.u32 4294901760, %v11013_v13 }
 0xed9   : > { %14751 = vmatprep.subr.mxu1 %v15867_v36 }
 0xeda   : > { %v11015_v22 = vsub.f32 %v11013_v13, %v11014_v18 }
 0xedc   : > { %v11016_v23 = vand.u32 4294901760, %v11015_v22 }
 0xfaa   : > { %v10916_v1 = vpop.f32.mrb[40].mxu1 }
 0xfab   : > { %v10920_v2 = vmul.f32 0.35355338, %v10916_v1  ;;  %v14745_v4 = vpop.f32.mrb[41].mxu1 }
 0xfad   : > { %v10921_v5 = vsel %vm1965_vm2, %v10920_v2, -inf }
 0xfae   : > { %10922 = vmax.xlane.f32.xlu0 %v10921_v5  ;;  %v11872_v5 = vld [vmem:[%s17394_s10 + $0x8] sm:$0xff] }
0x103b   : > { %v10923_v6 = vpop.xlane.xlu0 %10922 }
0x103c   : > { %v10924_v28 = vsub.f32 %v10920_v2, %v10923_v6  ;;  %v11873_v6 = vld [vmem:[%s17394_s10 + $0x10] sm:$0xff] }
0x103e   : > { %v10925_v7 = vmul.f32 1.442695, %v10924_v28 }
0x1040   : > { %15792 = vpow2.f32 %v10925_v7  ;;  %v11889_v7 = vand.u32 4294901760, %v11872_v5 }
0x104a   : > { %v15793_v8 = vpop.eup %15792 }
0x104b   : > { %v10927_v9 = vsel %vm1965_vm2, %v15793_v8, 0.0 }
0x104c   : > { %10928 = vadd.xlane.f32.xlu1 %v10927_v9  ;;  %v11892_v9 = vand.u32 4294901760, %v11873_v6 }
0x10d9   : > { %v10929_v11 = vpop.xlane.xlu1 %10928 }
0x10da   : > { %15794 = vrcp.f32 %v10929_v11 }
0x10e4   : > { %v15795_v12 = vpop.eup %15794 }
0x10e5   : > { %v10931_v14 = vmul.f32 %v15795_v12, %v15793_v8  ;;  %v11874_v8 = vld [vmem:[%s17394_s10 + $0x18] sm:$0xff] }
0x10e6   : > { %v11895_v11 = vand.u32 4294901760, %v11874_v8 }
0x10e7   : > { %v10933_v16 = vsel %vm1965_vm2, %v10931_v14, 0  ;;  %v11973_v14 = vsub.f32 %v11872_v5, %v11889_v7 }
0x10e8   : > { %v11001_v17 = vand.u32 4294901760, %v10933_v16 }
0x10ea   : > { %v11002_v19 = vsub.f32 %v10933_v16, %v11001_v17  ;;  %v11980_v16 = vsub.f32 %v11873_v6, %v11892_v9  ;;  %v12385_v6 = vld [vmem:[%s17396_s12 + $0x30] sm:$0xff] }
0x10ec   : > { %v11003_v21 = vand.u32 4294901760, %v11002_v19  ;;  %v11981_v24 = vand.u32 4294901760, %v11980_v16 }
0x10ee   : > { %v11004_v15 = vsub.f32 %v11002_v19, %v11003_v21 }
0x10f0   : > { %v11005_v20 = vand.u32 4294901760, %v11004_v15 }
0x10f2   : > { %14749 = vmatmul.mubr.f32.vlgmr.msra.gmra.mrb[42].mxu1 %v11005_v20 }
0x10f3   : > { %14752 = vmatpush3.msra.mxu1 %v11016_v23  ;;  %14753 = vmatprep.mubr.msk.f32.mxu1 %vm15866_vm1, %v15867_v36 }
0x10f4   : > { %14756 = vmatprep.subr.mxu1 %v15867_v36 }
0x10fa   : > { %14754 = vmatmul.mubr.f32.vlgmr.msra.gmra.mrb[42].mxu1 %v11001_v17 }
0x10fb   : > { %14757 = vmatpush3.msra.mxu1 %v11013_v13  ;;  %14758 = vmatprep.mubr.msk.f32.mxu1 %vm15866_vm1, %v15867_v36 }
0x10fc   : > { %14761 = vmatprep.subr.mxu1 %v15867_v36 }
0x1102   : > { %14759 = vmatmul.mubr.f32.vlgmr.msra.gmra.mrb[42].mxu1 %v11002_v19 }
0x1103   : > { %14762 = vmatpush3.msra.mxu1 %v10936_v63  ;;  %14763 = vmatprep.mubr.msk.f32.mxu1 %vm15866_vm1, %v15867_v36 }
0x1104   : > { %14766 = vmatprep.subr.mxu1 %v15867_v36 }
0x110a   : > { %14764 = vmatmul.mubr.f32.vlgmr.msra.gmra.mrb[42].mxu1 %v11003_v21  ;;  %v11974_v21 = vand.u32 4294901760, %v11973_v14 }
0x110b   : > { %14767 = vmatpush3.msra.mxu1 %v11014_v18  ;;  %14768 = vmatprep.mubr.msk.f32.mxu1 %vm15866_vm1, %v15867_v36  ;;  %v17177_v18 = vpack.c.bf16 %v11895_v11, %v11892_v9  ;;  %v12417_v9 = vand.u32 4294901760, %v12385_v6 }
0x110c   : > { %14771 = vmatprep.subr.mxu1 %v15867_v36  ;;  %v11975_v15 = vsub.f32 %v11973_v14, %v11974_v21 }
0x110e   : > { %v11976_v23 = vand.u32 4294901760, %v11975_v15 }
0x1112   : > { %14769 = vmatmul.mubr.f32.vlgmr.msra.gmra.mrb[42].mxu1 %v11001_v17 }
0x1113   : > { %14772 = vmatpush3.msra.mxu1 %v10936_v63  ;;  %14773 = vmatprep.mubr.msk.f32.mxu1 %vm15866_vm1, %v15867_v36 }
0x1114   : > { %14781 = vmatprep.subr.mxu1 %v15867_v36 }
0x111a   : > { %14774 = vmatmul.mubr.f32.vlgmr.msra.gmra.mrb[42].mxu1 %v11001_v17  ;;  %v11987_v17 = vsub.f32 %v11874_v8, %v11895_v11 }
0x111b   : > { %14783 = vmatprep.mubr.msk.f32.mxu1 %vm15866_vm1, %v15867_v36  ;;  %14782 = vmatpush3.msra.mxu1 %v11467_v27 }
0x111c   : > { %14791 = vmatprep.subr.mxu1 %v15867_v36 }
0x11ed   : > { %v11377_v25 = vpop.f32.mrb[42].mxu1 }
0x11ee   : > { %v11384_v31 = vsel %vm1965_vm2, %v11377_v25, 0  ;;  %v14775_v32 = vpop.f32.mrb[43].mxu1 }
0x11ef   : > { %v11452_v33 = vand.u32 4294901760, %v11384_v31 }
0x11f1   : > { %v11453_v35 = vsub.f32 %v11384_v31, %v11452_v33  ;;  %14784 = vmatmul.mubr.f32.vlgmr.msra.gmra.mrb[44].mxu1 %v11452_v33 }
0x11f2   : > { %14792 = vmatpush3.msra.mxu1 %v11387_v10  ;;  %14793 = vmatprep.mubr.msk.f32.mxu1 %vm15866_vm1, %v15867_v36 }
0x11f3   : > { %v11454_v38 = vand.u32 4294901760, %v11453_v35  ;;  %14801 = vmatprep.subr.mxu1 %v15867_v36 }
0x11f5   : > { %v11455_v40 = vsub.f32 %v11453_v35, %v11454_v38  ;;  %14794 = vmatmul.mubr.f32.vlgmr.msra.gmra.mrb[46].mxu1 %v11454_v38 }
0x11f6   : > { %14802 = vmatpush3.msra.mxu1 %v11387_v10  ;;  %14803 = vmatprep.mubr.msk.f32.mxu1 %vm15866_vm1, %v15867_v36  ;;  %v11988_v10 = vand.u32 4294901760, %v11987_v17 }
0x11f7   : > { %v11456_v39 = vand.u32 4294901760, %v11455_v40  ;;  %15454 = vmatprep.subr.bf16.mxu1 %v15865_v30 }
0x11f8   : > { %v11989_v3 = vsub.f32 %v11987_v17, %v11988_v10  ;;  %v15446_v38 = vpack.c.bf16 %v11988_v10, %v11981_v24 }
0x11f9   : > { %14779 = vmatmul.mubr.f32.vlgmr.msra.gmra.mrb[34].mxu0 %v11456_v39  ;;  %14804 = vmatmul.mubr.f32.vlgmr.msra.gmra.mrb[48].mxu1 %v11452_v33 }
0x11fa   : > { %14787 = vmatpush3.msra.mxu0 %v11464_v29  ;;  %14788 = vmatprep.mubr.msk.f32.mxu0 %vm15866_vm1, %v15867_v36  ;;  %v11990_v25 = vand.u32 4294901760, %v11989_v3 }
0x11fb   : > { %14796 = vmatprep.subr.mxu0 %v15867_v36  ;;  %14888 = vmatprep.mubr.msk.f32.mxu1 %vm15866_vm1, %v15867_v36 }
0x11fd   : > { %14789 = vmatmul.mubr.f32.vlgmr.msra.gmra.mrb[36].mxu0 %v11453_v35 }
0x11fe   : > { %14797 = vmatpush3.msra.mxu0 %v11465_v62  ;;  %14798 = vmatprep.mubr.msk.f32.mxu0 %vm15866_vm1, %v15867_v36  ;;  %v11982_v62 = vsub.f32 %v11980_v16, %v11981_v24 }
0x11ff   : > { %15418 = vmatprep.subr.bf16.mxu0 %v15865_v30 }
0x1200   : > { %v11983_v27 = vand.u32 4294901760, %v11982_v62 }
0x1201   : > { %14799 = vmatmul.mubr.f32.vlgmr.msra.gmra.mrb[38].mxu0 %v11452_v33  ;;  %v15434_v33 = vpack.c.bf16 %v11987_v17, %v11980_v16  ;;  %v17265_v16 = vsub.f32 %v12385_v6, %v12417_v9 }
0x1202   : > { %14814 = vmatprep.mubr.msk.f32.mxu0 %vm15866_vm1, %v15867_v36  ;;  %v15428_v31 = vpack.c.bf16 %v11990_v25, %v11983_v27 }
0x12c4   : > { %v11534_v34 = vpop.f32.mrb[44].mxu1 }
0x12c5   : > { %v14785_v43 = vpop.f32.mrb[45].mxu1 }
0x12c8   : > { %v11682_v41 = vpop.f32.mrb[46].mxu1 }
0x12c9   : > { %v14795_v42 = vpop.f32.mrb[47].mxu1 }
0x12cc   : > { %v11458_v37 = vpop.f32.mrb[34].mxu0  ;;  %v11828_v61 = vpop.f32.mrb[48].mxu1 }
0x12cd   : > { %v11535_v26 = vadd.f32 %v11534_v34, %v11458_v37  ;;  %v14780_v45 = vpop.f32.mrb[35].mxu0  ;;  %v14805_v47 = vpop.f32.mrb[49].mxu1  ;;  %v13059_v37 = vld [vmem:[%s17393_s9] ss:$0 sm:$0xff] }
0x12d0   : > { %v11608_v49 = vpop.f32.mrb[36].mxu0 }
0x12d1   : > { %v11609_v51 = vadd.f32 %v11608_v49, %v11535_v26  ;;  %v14790_v52 = vpop.f32.mrb[37].mxu0 }
0x12d3   : > { %v11683_v53 = vadd.f32 %v11682_v41, %v11609_v51  ;;  %v13058_v41 = vld [vmem:[%s17392_s8] ss:$0 sm:$0xff] }
0x12d4   : > { %v11756_v54 = vpop.f32.mrb[38].mxu0 }
0x12d5   : > { %v11757_v55 = vadd.f32 %v11756_v54, %v11683_v53  ;;  %v14800_v46 = vpop.f32.mrb[39].mxu0  ;;  %v12379_v54 = vld [vmem:[%s17396_s12] sm:$0xff] }
0x12d6   : > { %v12399_v46 = vand.u32 4294901760, %v12379_v54 }
0x12d7   : > { %v11829_v48 = vadd.f32 %v11828_v61, %v11757_v55  ;;  %v12380_v55 = vld [vmem:[%s17396_s12 + $0x8] sm:$0xff] }
0x12d9   : > { %v11832_v57 = vadd.f32 %v11829_v48, %v17086_v44  ;;  %v11871_v44 = vld [vmem:[%s17394_s10] sm:$0xff]  ;;  %v12402_v48 = vand.u32 4294901760, %v12380_v55 }
0x12da   : > { %v11886_v28 = vand.u32 4294901760, %v11871_v44 }
0x12db   : > { %v11840_v50 = vadd.f32 %v13057_v56, %v11832_v57  ;;  %v17221_v56 = vpack.c.bf16 %v12402_v48, %v12399_v46  ;;  %v12381_v57 = vld [vmem:[%s17396_s12 + $0x10] sm:$0xff] }
0x12dc   : > { %v17174_v12 = vpack.c.bf16 %v11889_v7, %v11886_v28  ;;  %v11966_v13 = vsub.f32 %v11871_v44, %v11886_v28  ;;  %v12386_v28 = vld [vmem:[%s17396_s12 + $0x38] sm:$0xff] }
0x12dd   : > { %v17156_v59 = vadd.f32 %v15800_v58, %v11840_v50  ;;  %v12382_v50 = vld [vmem:[%s17396_s12 + $0x18] sm:$0xff]  ;;  %15456 = vmatpush3.bf16.msra.mxu1 %v17221_v56  ;;  %v12405_v58 = vand.u32 4294901760, %v12381_v57  ;;  %v12420_v11 = vand.u32 4294901760, %v12386_v28 }
0x12de   : > { %15420 = vmatpush3.bf16.msra.mxu0 %v17174_v12  ;;  %v11967_v19 = vand.u32 4294901760, %v11966_v13  ;;  %v15431_v32 = vpack.c.bf16 %v11973_v14, %v11966_v13  ;;  %15457 = vmatprep.subr.bf16.mxu1 %v15865_v30 }
0x12df   : > { %v11842_v60 = vsel %vm464_vm0, %v17156_v59, 0.0  ;;  %15421 = vmatprep.subr.bf16.mxu0 %v15865_v30  ;;  %v17245_v44 = vsub.f32 %v12381_v57, %v12405_v58  ;;  %v17267_v17 = vsub.f32 %v12386_v28, %v12420_v11 }
0x12e0   : > { %11843 = vadd.xlane.f32.xlu0 %v11842_v60  ;;  %v11968_v22 = vsub.f32 %v11966_v13, %v11967_v19  ;;  %v15443_v35 = vpack.c.bf16 %v11974_v21, %v11967_v19  ;;  %v12408_v60 = vand.u32 4294901760, %v12382_v50 }
0x12e1   : > { %v12498_v24 = vand.u32 4294901760, %v17245_v44 }
0x12e2   : > { %15423 = vmatpush3.bf16.msra.mxu0 %v17177_v18  ;;  %v11969_v20 = vand.u32 4294901760, %v11968_v22  ;;  %v17247_v5 = vsub.f32 %v12382_v50, %v12408_v60 }
0x12e3   : > { %15424 = vmatprep.subr.bf16.mxu0 %v15865_v30  ;;  %v12499_v62 = vsub.f32 %v17245_v44, %v12498_v24 }
0x12e4   : > { %v15425_v29 = vpack.c.bf16 %v11976_v23, %v11969_v20  ;;  %v12505_v10 = vand.u32 4294901760, %v17247_v5 }
0x12e5   : > { %v12500_v27 = vand.u32 4294901760, %v12499_v62 }
0x12e6   : > { %v12506_v3 = vsub.f32 %v17247_v5, %v12505_v10 }
0x12e8   : > { %v12507_v25 = vand.u32 4294901760, %v12506_v3 }
0x136d   : > { %v11844_v63 = vpop.xlane.xlu0 %11843 }
0x136e   : > { %v11845_v0 = vmul.f32 0.03125, %v11844_v63  ;;  %v17233_v63 = vpack.c.bf16 %v12408_v60, %v12405_v58 }
0x1370   : > { %v11846_v1 = vsub.f32 %v17156_v59, %v11845_v0  ;;  %v12383_v0 = vld [vmem:[%s17396_s12 + $0x20] sm:$0xff]  ;;  %15459 = vmatpush3.bf16.msra.mxu1 %v17233_v63 }
0x1371   : > { %v12411_v7 = vand.u32 4294901760, %v12383_v0  ;;  %15460 = vmatprep.subr.bf16.mxu1 %v15865_v30 }
0x1372   : > { %v11847_v2 = vmul.f32 %v11846_v1, %v11846_v1 }
0x1373   : > { %v17261_v13 = vsub.f32 %v12383_v0, %v12411_v7 }
0x1374   : > { %v11848_v4 = vsel %vm464_vm0, %v11847_v2, 0.0  ;;  %v17241_v2 = vsub.f32 %v12379_v54, %v12399_v46  ;;  %v15506_v54 = vpack.c.bf16 %v12505_v10, %v12498_v24 }
0x1375   : > { %11849 = vadd.xlane.f32.xlu1 %v11848_v4  ;;  %v17243_v4 = vsub.f32 %v12380_v55, %v12402_v48  ;;  %v13060_v48 = vld [vmem:[%s17395_s11] ss:$0 sm:$0xff] }
0x1376   : > { %v12484_v19 = vand.u32 4294901760, %v17241_v2 }
0x1377   : > { %v12491_v21 = vand.u32 4294901760, %v17243_v4 }
0x1378   : > { %v12485_v22 = vsub.f32 %v17241_v2, %v12484_v19 }
0x1379   : > { %v12492_v15 = vsub.f32 %v17243_v4, %v12491_v21 }
0x137a   : > { %v12486_v20 = vand.u32 4294901760, %v12485_v22 }
0x137b   : > { %v12493_v23 = vand.u32 4294901760, %v12492_v15 }
0x1402   : > { %v11850_v40 = vpop.xlane.xlu1 %11849 }
0x1403   : > { %v11851_v39 = vmul.f32 0.03125, %v11850_v40 }
0x1405   : > { %v11852_v34 = vadd.f32 1e-05, %v11851_v39 }
0x1407   : > { %15796 = vrsqrt.f32 %v11852_v34  ;;  %v12526_v34 = vand.u32 4294901760, %v17265_v16 }
0x1411   : > { %v15797_v43 = vpop.eup %15796 }
0x1412   : > { %v11854_v42 = vmul.f32 %v15797_v43, %v11846_v1  ;;  %v12384_v1 = vld [vmem:[%s17396_s12 + $0x28] sm:$0xff]  ;;  %v12533_v43 = vand.u32 4294901760, %v17267_v17 }
0x1413   : > { %v12414_v8 = vand.u32 4294901760, %v12384_v1 }
0x1414   : > { %v11862_v61 = vmul.f32 %v13058_v41, %v11854_v42  ;;  %v12527_v42 = vsub.f32 %v17265_v16, %v12526_v34  ;;  %v15512_v46 = vpack.c.bf16 %v12533_v43, %v12526_v34 }
0x1415   : > { %v17263_v14 = vsub.f32 %v12384_v1, %v12414_v8 }
0x1416   : > { %v11870_v26 = vadd.f32 %v13059_v37, %v11862_v61  ;;  %v12534_v37 = vsub.f32 %v17267_v17, %v12533_v43  ;;  %v12528_v61 = vand.u32 4294901760, %v12527_v42 }
0x1418   : > { %v11883_v45 = vsel %vm464_vm0, %v11870_v26, 0  ;;  %v12535_v26 = vand.u32 4294901760, %v12534_v37 }
0x1419   : > { %v11954_v47 = vand.u32 4294901760, %v11883_v45 }
0x141b   : > { %v11955_v49 = vsub.f32 %v11883_v45, %v11954_v47  ;;  %v15476_v45 = vpack.c.bf16 %v12535_v26, %v12528_v61 }
0x141d   : > { %v11956_v51 = vand.u32 4294901760, %v11955_v49 }
0x141f   : > { %v11957_v52 = vsub.f32 %v11955_v49, %v11956_v51 }
0x1421   : > { %v11958_v53 = vand.u32 4294901760, %v11957_v52  ;;  %v15488_v52 = vpack.c.bf16 %v17267_v17, %v17265_v16  ;;  %v13061_v17 = vld [vmem:[%s17397_s13] ss:$0 sm:$0xff] }
0x1423   : > { %14815 = vmatmul.mubr.f32.vlgmr.msra.gmra.mrb[40].mxu0 %v11958_v53  ;;  %v15503_v53 = vpack.c.bf16 %v12491_v21, %v12484_v19 }
0x1424   : > { %15426 = vmatpush3.bf16.msra.mxu0 %v15425_v29  ;;  %14825 = vmatprep.mubr.msk.f32.mxu0 %vm15866_vm1, %v15867_v36  ;;  %v15467_v29 = vpack.c.bf16 %v12493_v23, %v12486_v20 }
0x1425   : > { %15427 = vmatprep.subr.bf16.mxu0 %v15865_v30 }
0x1428   : > { %15429 = vmatpush3.bf16.msra.mxu0 %v15428_v31  ;;  %v12512_v31 = vand.u32 4294901760, %v17261_v13 }
0x1429   : > { %15430 = vmatprep.subr.bf16.mxu0 %v15865_v30 }
0x142b   : > { %14826 = vmatmul.mubr.f32.vlgmr.msra.gmra.mrb[40].mxu0 %v11954_v47 }
0x142c   : > { %15432 = vmatpush3.bf16.msra.mxu0 %v15431_v32  ;;  %14836 = vmatprep.mubr.msk.f32.mxu0 %vm15866_vm1, %v15867_v36  ;;  %v12519_v32 = vand.u32 4294901760, %v17263_v14 }
0x142d   : > { %15433 = vmatprep.subr.bf16.mxu0 %v15865_v30 }
0x142e   : > { %v15509_v55 = vpack.c.bf16 %v12519_v32, %v12512_v31 }
0x1430   : > { %15435 = vmatpush3.bf16.msra.mxu0 %v15434_v33  ;;  %v15470_v33 = vpack.c.bf16 %v12507_v25, %v12500_v27 }
0x1431   : > { %15436 = vmatprep.subr.bf16.mxu0 %v15865_v30 }
0x1433   : > { %14837 = vmatmul.mubr.f32.vlgmr.msra.gmra.mrb[40].mxu0 %v11955_v49  ;;  %v15482_v49 = vpack.c.bf16 %v17247_v5, %v17245_v44 }
0x1434   : > { %15438 = vmatpush3.bf16.msra.mxu0 %v17174_v12  ;;  %14847 = vmatprep.mubr.msk.f32.mxu0 %vm15866_vm1, %v15867_v36 }
0x1435   : > { %15439 = vmatprep.subr.bf16.mxu0 %v15865_v30 }
0x1438   : > { %15441 = vmatpush3.bf16.msra.mxu0 %v17177_v18 }
0x1439   : > { %15442 = vmatprep.subr.bf16.mxu0 %v15865_v30 }
0x143b   : > { %14848 = vmatmul.mubr.f32.vlgmr.msra.gmra.mrb[40].mxu0 %v11956_v51  ;;  %v15485_v51 = vpack.c.bf16 %v17263_v14, %v17261_v13 }
0x143c   : > { %15444 = vmatpush3.bf16.msra.mxu0 %v15443_v35  ;;  %14858 = vmatprep.mubr.msk.f32.mxu0 %vm15866_vm1, %v15867_v36  ;;  %v12513_v35 = vsub.f32 %v17261_v13, %v12512_v31 }
0x143d   : > { %15445 = vmatprep.subr.bf16.mxu0 %v15865_v30 }
0x143e   : > { %v12514_v40 = vand.u32 4294901760, %v12513_v35 }
0x1440   : > { %15447 = vmatpush3.bf16.msra.mxu0 %v15446_v38  ;;  %v12520_v38 = vsub.f32 %v17263_v14, %v12519_v32 }
0x1441   : > { %15448 = vmatprep.subr.bf16.mxu0 %v15865_v30 }
0x1442   : > { %v12521_v39 = vand.u32 4294901760, %v12520_v38 }
0x1443   : > { %14859 = vmatmul.mubr.f32.vlgmr.msra.gmra.mrb[40].mxu0 %v11954_v47 }
0x1444   : > { %15450 = vmatpush3.bf16.msra.mxu0 %v17174_v12  ;;  %14869 = vmatprep.mubr.msk.f32.mxu0 %vm15866_vm1, %v15867_v36  ;;  %v17259_v12 = vpack.c.bf16 %v12414_v8, %v12411_v7  ;;  %v15473_v41 = vpack.c.bf16 %v12521_v39, %v12514_v40 }
0x1445   : > { %15451 = vmatprep.subr.bf16.mxu0 %v15865_v30 }
0x1446   : > { %15462 = vmatpush3.bf16.msra.mxu1 %v17259_v12 }
0x1447   : > { %15463 = vmatprep.subr.bf16.mxu1 %v15865_v30 }
0x1448   : > { %15453 = vmatpush3.bf16.msra.mxu0 %v17177_v18  ;;  %v17271_v18 = vpack.c.bf16 %v12420_v11, %v12417_v9 }
0x1449   : > { %15490 = vmatprep.subr.bf16.mxu0 %v15865_v30 }
0x144a   : > { %15465 = vmatpush3.bf16.msra.mxu1 %v17271_v18 }
0x144b   : > { %14870 = vmatmul.mubr.f32.vlgmr.msra.gmra.mrb[40].mxu0 %v11954_v47  ;;  %15466 = vmatprep.subr.bf16.mxu1 %v15865_v30  ;;  %v15479_v47 = vpack.c.bf16 %v17243_v4, %v17241_v2 }
0x144c   : > { %14945 = vmatprep.mubr.msk.f32.mxu0 %vm15866_vm1, %v15867_v36  ;;  %15492 = vmatpush3.bf16.msra.mxu0 %v17221_v56 }
0x144d   : > { %15493 = vmatprep.subr.bf16.mxu0 %v15865_v30 }
0x1450   : > { %15495 = vmatpush3.bf16.msra.mxu0 %v17233_v63 }
0x1451   : > { %15496 = vmatprep.subr.bf16.mxu0 %v15865_v30 }
0x1454   : > { %15498 = vmatpush3.bf16.msra.mxu0 %v17259_v12 }
0x1455   : > { %15499 = vmatprep.subr.bf16.mxu0 %v15865_v30 }
0x1458   : > { %15501 = vmatpush3.bf16.msra.mxu0 %v17271_v18 }
0x1459   : > { %15514 = vmatprep.subr.bf16.mxu0 %v15865_v30 }
0x151e   : > { %v12366_v57 = vpop.f32.mrb[40].mxu0 }
0x151f   : > { %v15527_v50 = vadd.f32 %v13060_v48, %v12366_v57  ;;  %v14871_v58 = vpop.f32.mrb[41].mxu0 }
0x1521   : > { %v12371_v60 = vmul.f32 0.044715, %v15527_v50  ;;  %v12370_v5 = vmul.f32 0.5, %v15527_v50 }
0x1523   : > { %v12372_v0 = vmul.f32 %v15527_v50, %v12371_v60 }
0x1525   : > { %v12373_v1 = vmul.f32 %v15527_v50, %v12372_v0 }
0x1527   : > { %v12374_v2 = vadd.f32 %v15527_v50, %v12373_v1 }
0x1529   : > { %v12375_v4 = vmul.f32 0.7978846, %v12374_v2 }
0x152b   : > { %15798 = vtanh.f32 %v12375_v4 }
0x1535   : > { %v15799_v44 = vpop.eup %15798 }
0x1536   : > { %v12377_v6 = vadd.f32 1.0, %v15799_v44 }
0x1538   : > { %v12378_v28 = vmul.f32 %v12377_v6, %v12370_v5 }
0x153a   : > { %v12396_v7 = vsel %vm12394_vm3, %v12378_v28, 0 }
0x153b   : > { %v12471_v8 = vand.u32 4294901760, %v12396_v7 }
0x153d   : > { %v12472_v9 = vsub.f32 %v12396_v7, %v12471_v8 }
0x153f   : > { %v12473_v11 = vand.u32 4294901760, %v12472_v9 }
0x1541   : > { %14946 = vmatmul.mubr.f32.vlgmr.msra.gmra.mrb[42].mxu0 %v12473_v11  ;;  %v12474_v13 = vsub.f32 %v12472_v9, %v12473_v11 }
0x1542   : > { %15516 = vmatpush3.bf16.msra.mxu0 %v17221_v56  ;;  %14983 = vmatprep.mubr.msk.f32.mxu0 %vm15866_vm1, %v15867_v36 }
0x1543   : > { %15517 = vmatprep.subr.bf16.mxu0 %v15865_v30  ;;  %v12475_v14 = vand.u32 4294901760, %v12474_v13 }
0x1545   : > { %14889 = vmatmul.mubr.f32.vlgmr.msra.gmra.mrb[50].mxu1 %v12475_v14 }
0x1546   : > { %15468 = vmatpush3.bf16.msra.mxu1 %v15467_v29  ;;  %15519 = vmatpush3.bf16.msra.mxu0 %v17233_v63 }
0x1547   : > { %15469 = vmatprep.subr.bf16.mxu1 %v15865_v30  ;;  %15520 = vmatprep.subr.bf16.mxu0 %v15865_v30 }
0x1548   : > { %14907 = vmatprep.mubr.msk.f32.mxu1 %vm15866_vm1, %v15867_v36 }
0x154a   : > { %15471 = vmatpush3.bf16.msra.mxu1 %v15470_v33  ;;  %15522 = vmatpush3.bf16.msra.mxu0 %v17259_v12 }
0x154b   : > { %15472 = vmatprep.subr.bf16.mxu1 %v15865_v30  ;;  %15523 = vmatprep.subr.bf16.mxu0 %v15865_v30 }
0x154e   : > { %15474 = vmatpush3.bf16.msra.mxu1 %v15473_v41  ;;  %15525 = vmatpush3.bf16.msra.mxu0 %v17271_v18 }
0x154f   : > { %15475 = vmatprep.subr.bf16.mxu1 %v15865_v30 }
0x1551   : > { %14984 = vmatmul.mubr.f32.vlgmr.msra.gmra.mrb[44].mxu0 %v12471_v8 }
0x1552   : > { %15477 = vmatpush3.bf16.msra.mxu1 %v15476_v45 }
0x1553   : > { %15478 = vmatprep.subr.bf16.mxu1 %v15865_v30 }
0x1555   : > { %14908 = vmatmul.mubr.f32.vlgmr.msra.gmra.mrb[52].mxu1 %v12471_v8 }
0x1556   : > { %15480 = vmatpush3.bf16.msra.mxu1 %v15479_v47  ;;  %14926 = vmatprep.mubr.msk.f32.mxu1 %vm15866_vm1, %v15867_v36 }
0x1557   : > { %15481 = vmatprep.subr.bf16.mxu1 %v15865_v30 }
0x155a   : > { %15483 = vmatpush3.bf16.msra.mxu1 %v15482_v49 }
0x155b   : > { %15484 = vmatprep.subr.bf16.mxu1 %v15865_v30 }
0x155e   : > { %15486 = vmatpush3.bf16.msra.mxu1 %v15485_v51 }
0x155f   : > { %15487 = vmatprep.subr.bf16.mxu1 %v15865_v30 }
0x1562   : > { %15489 = vmatpush3.bf16.msra.mxu1 %v15488_v52 }
0x1563   : > { %15502 = vmatprep.subr.bf16.mxu1 %v15865_v30 }
0x1565   : > { %14927 = vmatmul.mubr.f32.vlgmr.msra.gmra.mrb[54].mxu1 %v12472_v9 }
0x1566   : > { %15504 = vmatpush3.bf16.msra.mxu1 %v15503_v53  ;;  %14964 = vmatprep.mubr.msk.f32.mxu1 %vm15866_vm1, %v15867_v36 }
0x1567   : > { %15505 = vmatprep.subr.bf16.mxu1 %v15865_v30 }
0x156a   : > { %15507 = vmatpush3.bf16.msra.mxu1 %v15506_v54 }
0x156b   : > { %15508 = vmatprep.subr.bf16.mxu1 %v15865_v30 }
0x156e   : > { %15510 = vmatpush3.bf16.msra.mxu1 %v15509_v55 }
0x156f   : > { %15511 = vmatprep.subr.bf16.mxu1 %v15865_v30 }
0x1572   : > { %15513 = vmatpush3.bf16.msra.mxu1 %v15512_v46 }
0x1575   : > { %14965 = vmatmul.mubr.f32.vlgmr.msra.gmra.mrb[56].mxu1 %v12471_v8 }
0x1614   : > { %v12757_v56 = vpop.f32.mrb[42].mxu0 }
0x1615   : > { %v14947_v63 = vpop.f32.mrb[43].mxu0 }
0x1618   : > { %v12477_v12 = vpop.f32.mrb[50].mxu1 }
0x1619   : > { %v14890_v16 = vpop.f32.mrb[51].mxu1  ;;  %v12478_v19 = vadd.f32 %v13061_v17, %v12477_v12 }
0x1624   : > { %v12931_v36 = vpop.f32.mrb[44].mxu0 }
0x1625   : > { %v14985_v18 = vpop.f32.mrb[45].mxu0 }
0x1628   : > { %v12588_v21 = vpop.f32.mrb[52].mxu1 }
0x1629   : > { %v12589_v22 = vadd.f32 %v12588_v21, %v12478_v19  ;;  %v14909_v15 = vpop.f32.mrb[53].mxu1 }
0x1638   : > { %v12676_v20 = vpop.f32.mrb[54].mxu1 }
0x1639   : > { %v12677_v30 = vadd.f32 %v12676_v20, %v12589_v22  ;;  %v14928_v23 = vpop.f32.mrb[55].mxu1 }
0x163b   : > { %v12758_v24 = vadd.f32 %v12757_v56, %v12677_v30 }
0x1648   : > { %v12852_v10 = vpop.f32.mrb[56].mxu1 }
0x1649   : > { %v12853_v29 = vadd.f32 %v12852_v10, %v12758_v24  ;;  %v14966_v62 = vpop.f32.mrb[57].mxu1 }
0x164b   : > { %v12932_v3 = vadd.f32 %v12931_v36, %v12853_v29 }
0x164d   : > { %v12935_v27 = vadd.f32 %v12932_v3, %v17156_v59 }
0x164f   : > { %12936 = vst.msk [vmem:[%s458_s20] sm:$0xff] %vm464_vm0, %v12935_v27 }
0x1650   : > { %15814 = shalt.err (!%p15811_p3)
}
0x1651   : > { %s15815_s22 = scalar_lea.hbm %s17341_s27, 128  ;;  %s15819_s21 = scalar_lea.hbm %s17398_s14, 256 }
0x1652   : > { %p15816_p4 = scmp.ne.s32.totalorder %s17341_s27, %s15815_s22  ;;  %p15820_p9 = scmp.lt.u32.totalorder %s17341_s27, %s17398_s14 }
0x1653   : > { %p15821_p10 = scmp.lt.u32.totalorder %s15819_s21, %s15815_s22  ;;  %p15823_p12 = scmp.lt.u32.totalorder %s15815_s22, %s17341_s27 }
0x1654   : > { %p15817_p7 = pnand %p15816_p4, %p15982_p5 }
0x1655   : > { %p15822_p11 = por %p15821_p10, %p15820_p9 }
0x1656   : > { %p15818_p8 = pneg %p15817_p7 }
0x1657   : > { %p15824_p13 = por %p15823_p12, %p15822_p11 }
0x1659   : > { %p15825_p0 = pnand %p15824_p13, %p15818_p8 }
0x165b   : > { %15828 = shalt.err (!%p15825_p0)
}
0x165c   : > { %15736 = dma.vmem_to_hbm [thread:$0]  (%p15982_p5), %s17343_s18, 128, %s17341_s27, %s12938_s26  }
0x165d PF: > { %p15742_p1 = scmp.ge.s32.totalorder %s15863_s16, 2  ;;  %s12963_s28 = sand.u32 1, %s15851_s29  }
0x165e   : > { %s12964_s0 = scalar_lea.sflag [#allocation3], %s12963_s28 }
0x165f   : > { %p15739_p2 = pnand %p15742_p1, %p15986_p6 }
0x1661   : > { %15846 = dma.done.wait (!%p15739_p2), %s12964_s0, 128  }
0x1662   : > { %15848 = vsyncadd (!%p15739_p2), %s12964_s0, 4294967168  ;;  %s17409_s16 = sld [smem:[#allocation6_spill]]  ;;  %s17410_s15 = sld [smem:[#allocation5_spill]] }
0x1663   : > { %s17411_s22 = sld [smem:[#allocation7_spill]]  ;;  %s17412_s29 = smov %s15855_s30 }
0x1668   : > { %p24_p3 = scmp.ge.s32.totalorder %s17409_s16, 4   ;;  %s17413_s30 = smov %s17410_s15 }
0x1669   : > { %s17414_s15 = smov %s17411_s22 }
0x166a   :  { %26 = sbr.rel (!%p24_p3) target bundleno = 5 (0x5), region = 123 }
0x1671   :  { %12969 = vsyncpa [#allocation3], 1 }
0x1672   :  { %12971 = vsyncpa [#allocation3 + $0x1], 1 }

</bundles_post_ra>
